<compile_context>
chip_gen: v5e
topology: v5e:2x2
jax: 0.10.0
libtpu: 0.0.40
codegen_flags: <defaults>
</compile_context>

<pallas_src>
import functools

import jax
import jax.numpy as jnp
from jax.experimental import pallas as pl
from jax.experimental.pallas import tpu as pltpu


# ---------------------------------------------------------------------------
# Pallas kernel 1: fused matmul + bias + ReLU (encoder layers)
# ---------------------------------------------------------------------------
def _mm_bias_act_kernel(x_ref, w_ref, b_ref, o_ref, *, relu):
    acc = jnp.dot(x_ref[...], w_ref[...], preferred_element_type=jnp.float32)
    acc = acc + b_ref[...]
    if relu:
        acc = jnp.maximum(acc, 0.0)
    o_ref[...] = acc


def matmul_bias_act(x, w, b, *, relu):
    """(M,K)@(K,N)+b (+ReLU). bf16 MXU operands, f32 accumulate/output."""
    M, K = x.shape
    N = w.shape[1]
    M0 = M
    if M <= 256:
        TM = M                               # single full block (exempt from 8/128 rule)
    else:
        TM = 256 if M <= 4096 else 512       # bounded tile, >=2 parallel steps
        pad = (-M) % TM
        if pad:
            x = jnp.pad(x, ((0, pad), (0, 0)))
            M += pad
    b2 = b.reshape(1, N).astype(jnp.float32)
    kern = functools.partial(_mm_bias_act_kernel, relu=relu)
    out = pl.pallas_call(
        kern,
        out_shape=jax.ShapeDtypeStruct((M, N), jnp.float32),
        grid=(M // TM,),
        in_specs=[
            pl.BlockSpec((TM, K), lambda i: (i, 0)),
            pl.BlockSpec((K, N), lambda i: (0, 0)),
            pl.BlockSpec((1, N), lambda i: (0, 0)),
        ],
        out_specs=pl.BlockSpec((TM, N), lambda i: (i, 0)),
        compiler_params=pltpu.CompilerParams(dimension_semantics=("parallel",)),
    )(x.astype(jnp.bfloat16), w.astype(jnp.bfloat16), b2)
    return out if M == M0 else out[:M0]


# ---------------------------------------------------------------------------
# Pallas kernel 2: transposed matmul + bias (final conv, lane-dense output)
# ---------------------------------------------------------------------------
def _mm_t_kernel(w_ref, p_ref, b_ref, o_ref):
    acc = jnp.dot(w_ref[...], p_ref[...], preferred_element_type=jnp.float32)
    o_ref[...] = acc + b_ref[...]


def matmul_t_bias(wT, pT, b):
    """(Cout,K)@(K,M)+b -> (Cout, M); M (large) sits on lanes."""
    Cout, K = wT.shape
    M = pT.shape[1]
    TN = 512 if (M % 512 == 0 and M > 512) else M
    b2 = b.reshape(Cout, 1).astype(jnp.float32)
    return pl.pallas_call(
        _mm_t_kernel,
        out_shape=jax.ShapeDtypeStruct((Cout, M), jnp.float32),
        grid=(M // TN,),
        in_specs=[
            pl.BlockSpec((Cout, K), lambda i: (0, 0)),
            pl.BlockSpec((K, TN), lambda i: (0, i)),
            pl.BlockSpec((Cout, 1), lambda i: (0, 0)),
        ],
        out_specs=pl.BlockSpec((Cout, TN), lambda i: (0, i)),
        compiler_params=pltpu.CompilerParams(dimension_semantics=("parallel",)),
    )(wT.astype(jnp.bfloat16), pT.astype(jnp.bfloat16), b2)


# ---------------------------------------------------------------------------
# Pallas kernel 3: fused enc5 + dec0..dec4, activations resident in VMEM
# ---------------------------------------------------------------------------
def _enc5_dec_fused_kernel(p5_ref, w5_ref, b5_ref,
                           w0_ref, w1_ref, w2_ref, w3_ref, w4_ref,
                           b0_ref, b1_ref, b2_ref, b3_ref, b4_ref,
                           enc_ref, dec_ref, buf_a, buf_b):
    # enc5 (stride-2 conv, already im2col'ed):  enc = relu(W5^T @ p5 + b5)
    enc = jnp.dot(w5_ref[...], p5_ref[...], preferred_element_type=jnp.float32)
    enc = jnp.maximum(enc + b5_ref[...], 0.0)            # (8, Nb)
    enc_ref[...] = enc

    w_refs = (w0_ref, w1_ref, w2_ref, w3_ref, w4_ref)
    b_refs = (b0_ref, b1_ref, b2_ref, b3_ref, b4_ref)
    x = enc                                              # (Cin, m) channel-major
    m = p5_ref.shape[1]                                  # pixels per layer input
    for l in range(5):
        wf = w_refs[l]                                   # (4, Cout, Cin) bf16
        bias = b_refs[l][...]                            # (Cout, 1) f32
        cout = wf.shape[1]
        xb = x.astype(jnp.bfloat16)
        dst = dec_ref if l == 4 else (buf_a if l % 2 == 0 else buf_b)
        for t in range(4):                               # tap t = ki*2 + kj
            y = jnp.dot(wf[t], xb, preferred_element_type=jnp.float32)
            y = jnp.maximum(y + bias, 0.0)
            dst[0:cout, t * m:(t + 1) * m] = y           # columns stay "scrambled"
        m = 4 * m
        if l < 4:
            x = dst[0:cout, 0:m]


def enc5_decoder_fused(p5T, params):
    Nb = p5T.shape[1]
    w5, b5 = params["enc5"]
    w5T = jnp.transpose(w5, (0, 2, 3, 1)).reshape(w5.shape[0], -1)   # (8, 72)
    args_w, args_b = [], []
    for name in ("dec0", "dec1", "dec2", "dec3", "dec4"):
        w_t, bb = params[name]                    # torch layout (Cin, Cout, 2, 2)
        cin, cout = w_t.shape[0], w_t.shape[1]
        args_w.append(
            jnp.transpose(w_t, (2, 3, 1, 0)).reshape(4, cout, cin)
            .astype(jnp.bfloat16))
        args_b.append(bb.reshape(cout, 1).astype(jnp.float32))
    m_final = Nb * 4 ** 5
    enc_t, dec_scr = pl.pallas_call(
        _enc5_dec_fused_kernel,
        out_shape=(jax.ShapeDtypeStruct((8, Nb), jnp.float32),
                   jax.ShapeDtypeStruct((64, m_final), jnp.float32)),
        scratch_shapes=[pltpu.VMEM((16, 64 * Nb), jnp.float32),
                        pltpu.VMEM((32, 256 * Nb), jnp.float32)],
    )(p5T.astype(jnp.bfloat16), w5T.astype(jnp.bfloat16),
      b5.reshape(-1, 1).astype(jnp.float32), *args_w, *args_b)
    return enc_t, dec_scr


# ---------------------------------------------------------------------------
# XLA-side layout glue
# ---------------------------------------------------------------------------
def _im2col3x3(x, stride):
    """x: (N,H,W,C) -> patches (N*Ho*Wo, 9*C) for a 3x3, padding=1 conv."""
    N, H, W, C = x.shape
    Ho = (H + 2 - 3) // stride + 1
    Wo = (W + 2 - 3) // stride + 1
    xp = jnp.pad(x, ((0, 0), (1, 1), (1, 1), (0, 0)))
    taps = []
    for ki in range(3):
        for kj in range(3):
            taps.append(jax.lax.slice(
                xp, (0, ki, kj, 0),
                (N, ki + (Ho - 1) * stride + 1, kj + (Wo - 1) * stride + 1, C),
                (1, stride, stride, 1)))
    p = jnp.stack(taps, axis=3).reshape(N * Ho * Wo, 9 * C)
    return p, Ho, Wo


def conv3x3_enc(x, w_t, b, *, stride):
    """3x3 conv, padding=1, bias + ReLU. x NHWC, w_t torch (Cout,Cin,3,3)."""
    N = x.shape[0]
    Cout, Cin = w_t.shape[0], w_t.shape[1]
    p, Ho, Wo = _im2col3x3(x, stride)
    wm = jnp.transpose(w_t, (2, 3, 1, 0)).reshape(9 * Cin, Cout)
    y = matmul_bias_act(p, wm, b, relu=True)
    return y.reshape(N, Ho, Wo, Cout)


def _unscramble_decoder(dec_scr, Nb):
    """(64, Nb*1024) kernel-ordered columns -> (64, Nb, 32, 32) channel-major."""
    C = dec_scr.shape[0]
    d = dec_scr.reshape(C, 2, 2, 2, 2, 2, 2, 2, 2, 2, 2, Nb)
    # axes: (c, ki4,kj4, ki3,kj3, ki2,kj2, ki1,kj1, ki0,kj0, n)
    d = jnp.transpose(d, (0, 11, 9, 7, 5, 3, 1, 10, 8, 6, 4, 2))
    # axes: (c, n, ki0..ki4, kj0..kj4);  ki0/kj0 are the MSBs of the pixel index
    return d.reshape(C, Nb, 32, 32)


def out_conv3x3_T(d_cnhw, w_t, b):
    """Final 3x3 stride-1 conv computed transposed -> lane-dense (Cout, N*H*W)."""
    Cin, Nb, H, W = d_cnhw.shape
    Cout = w_t.shape[0]
    dp = jnp.pad(d_cnhw, ((0, 0), (0, 0), (1, 1), (1, 1)))
    taps = []
    for ki in range(3):
        for kj in range(3):
            taps.append(jax.lax.slice(dp, (0, 0, ki, kj),
                                      (Cin, Nb, ki + H, kj + W)))
    pT = jnp.stack(taps, axis=0).reshape(9 * Cin, Nb * H * W)
    wT = jnp.transpose(w_t, (0, 2, 3, 1)).reshape(Cout, 9 * Cin)
    y = matmul_t_bias(wT, pT, b)                         # (Cout, Nb*H*W)
    return y.reshape(Cout, Nb, H, W)


# ---------------------------------------------------------------------------
# Parameter init (deterministic, PyTorch-shaped weights)
# ---------------------------------------------------------------------------
def _conv_params(key, cout, cin, k):
    fan_in = cin * k * k
    bound = 1.0 / (fan_in ** 0.5)
    kw, kb = jax.random.split(key)
    w = jax.random.uniform(kw, (cout, cin, k, k), jnp.float32, -bound, bound)
    b = jax.random.uniform(kb, (cout,), jnp.float32, -bound, bound)
    return w, b


def _deconv_params(key, cin, cout, k):
    fan_in = cout * k * k
    bound = 1.0 / (fan_in ** 0.5)
    kw, kb = jax.random.split(key)
    w = jax.random.uniform(kw, (cin, cout, k, k), jnp.float32, -bound, bound)
    b = jax.random.uniform(kb, (cout,), jnp.float32, -bound, bound)
    return w, b


def init_ae2_params(key, num_channels=3):
    keys = jax.random.split(key, 11)
    return {
        "enc1": _conv_params(keys[0], 64, num_channels, 3),
        "enc2": _conv_params(keys[1], 32, 64, 3),
        "enc3": _conv_params(keys[2], 16, 32, 3),
        "enc4": _conv_params(keys[3], 8, 16, 3),
        "enc5": _conv_params(keys[4], 8, 8, 3),
        "dec0": _deconv_params(keys[5], 8, 8, 2),
        "dec1": _deconv_params(keys[6], 8, 8, 2),
        "dec2": _deconv_params(keys[7], 8, 16, 2),
        "dec3": _deconv_params(keys[8], 16, 32, 2),
        "dec4": _deconv_params(keys[9], 32, 64, 2),
        "out": _conv_params(keys[10], num_channels, 64, 3),
    }


# ---------------------------------------------------------------------------
# AE2.forward
# ---------------------------------------------------------------------------
def ae2_forward(params, x_nchw):
    Nb = x_nchw.shape[0]
    x = jnp.transpose(x_nchw, (0, 2, 3, 1))              # NCHW -> NHWC
    x = conv3x3_enc(x, *params["enc1"], stride=2)
    x = conv3x3_enc(x, *params["enc2"], stride=2)
    x = conv3x3_enc(x, *params["enc3"], stride=2)
    x = conv3x3_enc(x, *params["enc4"], stride=2)        # (Nb, 2, 2, 8)

    p5, Ho, Wo = _im2col3x3(x, 2)                        # enc5 patches (Nb, 72)
    # TODO(synk): generalize the in-kernel column bookkeeping for enc spatial > 1x1
    assert Ho == 1 and Wo == 1, "fused decoder expects a 1x1 bottleneck (32x32 input)"
    p5T = jnp.transpose(p5)                              # (72, Nb)

    enc_t, dec_scr = enc5_decoder_fused(p5T, params)     # (8, Nb), (64, Nb*1024)
    d = _unscramble_decoder(dec_scr, Nb)                 # (64, Nb, 32, 32)
    res_cnhw = out_conv3x3_T(d, *params["out"])          # (C, Nb, 32, 32)

    enc_nchw = jnp.transpose(enc_t).reshape(Nb, 8, 1, 1)
    res_nchw = jnp.transpose(res_cnhw, (1, 0, 2, 3))
    return enc_nchw, res_nchw


# ---------------------------------------------------------------------------
# Pure-XLA f32 reference (for a loose numerical sanity check)
# ---------------------------------------------------------------------------
def ae2_reference(params, x):
    def conv(a, w, b, stride):
        y = jax.lax.conv_general_dilated(
            a, w, (stride, stride), ((1, 1), (1, 1)),
            dimension_numbers=("NCHW", "OIHW", "NCHW"))
        return y + b[None, :, None, None]

    def deconv(a, w, b):
        n, _, h, ww = a.shape
        co = w.shape[1]
        t = jnp.einsum("ncij,cokl->noikjl", a, w)
        return t.reshape(n, co, 2 * h, 2 * ww) + b[None, :, None, None]

    r = jax.nn.relu
    a = r(conv(x, *params["enc1"], 2))
    a = r(conv(a, *params["enc2"], 2))
    a = r(conv(a, *params["enc3"], 2))
    a = r(conv(a, *params["enc4"], 2))
    enc = r(conv(a, *params["enc5"], 2))
    d = r(deconv(enc, *params["dec0"]))
    d = r(deconv(d, *params["dec1"]))
    d = r(deconv(d, *params["dec2"]))
    d = r(deconv(d, *params["dec3"]))
    d = r(deconv(d, *params["dec4"]))
    res = conv(d, *params["out"], 1)
    return enc, res


if __name__ == "__main__":
    key = jax.random.PRNGKey(0)
    kp, kx = jax.random.split(key)
    num_channels = 3
    params = init_ae2_params(kp, num_channels)
    # H=W=32: five stride-2 convs reach 1x1, five 2x deconvs return to 32x32
    x = jax.random.normal(kx, (2, num_channels, 32, 32), jnp.float32)

    enc, res = jax.jit(ae2_forward)(params, x)
    jax.block_until_ready((enc, res))

    assert enc.shape == (2, 8, 1, 1), enc.shape
    assert res.shape == (2, num_channels, 32, 32), res.shape
    assert bool(jnp.all(jnp.isfinite(enc))) and bool(jnp.all(jnp.isfinite(res)))

    # loose tolerance check vs. f32 XLA reference (bf16 MXU operands in kernels)
    enc_ref, res_ref = jax.jit(ae2_reference)(params, x)
    enc_err = jnp.max(jnp.abs(enc - enc_ref)) / (jnp.max(jnp.abs(enc_ref)) + 1e-6)
    res_err = jnp.max(jnp.abs(res - res_ref)) / (jnp.max(jnp.abs(res_ref)) + 1e-6)
    assert float(enc_err) < 0.1, float(enc_err)
    assert float(res_err) < 0.1, float(res_err)

    print("KERNEL_OK")
</pallas_src>

<mosaic_0001>
module attributes {stable_mosaic.version = 11 : i64} {
  func.func @_mm_bias_act_kernel(%arg0: i32, %arg1: memref<256x27xbf16, #tpu.memory_space<vmem>>, %arg2: memref<27x64xbf16, #tpu.memory_space<vmem>>, %arg3: memref<1x64xf32, #tpu.memory_space<vmem>>, %arg4: memref<256x64xf32, #tpu.memory_space<vmem>>) attributes {dimension_semantics = [#tpu.dimension_semantics<parallel>], iteration_bounds = array<i64: 2>, scalar_prefetch = 0 : i64, scratch_operands = 0 : i64, tpu.core_type = #tpu.core_type<tc>, window_params = [{transform_indices = @transform_0, window_bounds = array<i64: 256, 27>}, {pipeline_mode = #tpu.pipeline_mode<synchronous>, transform_indices = @transform_1, window_bounds = array<i64: 27, 64>}, {pipeline_mode = #tpu.pipeline_mode<synchronous>, transform_indices = @transform_2, window_bounds = array<i64: 1, 64>}, {transform_indices = @transform_3, window_bounds = array<i64: 256, 64>}]} {
    %c0 = arith.constant 0 : index
    %c0_0 = arith.constant 0 : index
    %0 = vector.load %arg1[%c0, %c0_0] : memref<256x27xbf16, #tpu.memory_space<vmem>>, vector<256x27xbf16>
    %c0_1 = arith.constant 0 : index
    %c0_2 = arith.constant 0 : index
    %1 = vector.load %arg2[%c0_1, %c0_2] : memref<27x64xbf16, #tpu.memory_space<vmem>>, vector<27x64xbf16>
    %cst = arith.constant dense<0.000000e+00> : vector<256x64xf32>
    %2 = tpu.matmul %0, %1, %cst {dimension_numbers = #tpu.dot_dimension_numbers<[1], [0], [0], [1], [0, 0, 1, 1], [], []>} : vector<256x27xbf16>, vector<27x64xbf16>, vector<256x64xf32> -> vector<256x64xf32>
    %c0_3 = arith.constant 0 : index
    %c0_4 = arith.constant 0 : index
    %3 = vector.load %arg3[%c0_3, %c0_4] : memref<1x64xf32, #tpu.memory_space<vmem>>, vector<1x64xf32>
    %4 = vector.broadcast %3 : vector<1x64xf32> to vector<256x64xf32>
    %5 = arith.addf %2, %4 : vector<256x64xf32>
    %cst_5 = arith.constant 0.000000e+00 : f32
    %6 = vector.broadcast %cst_5 : f32 to vector<256x64xf32>
    %7 = arith.maximumf %5, %6 : vector<256x64xf32>
    %c0_6 = arith.constant 0 : index
    %c0_7 = arith.constant 0 : index
    %8 = vector.load %arg4[%c0_6, %c0_7] : memref<256x64xf32, #tpu.memory_space<vmem>>, vector<256x64xf32>
    tpu.vector_store %arg4[%c0_6, %c0_7], %7 {strides = array<i32>} : memref<256x64xf32, #tpu.memory_space<vmem>>, vector<256x64xf32>,
    return
  }
  func.func @transform_0(%arg0: i32) -> (i32, i32) {
    %c0_i32 = arith.constant 0 : i32
    %c0_i32_0 = arith.constant 0 : i32
    return %arg0, %c0_i32 : i32, i32
  }
  func.func @transform_1(%arg0: i32) -> (i32, i32) {
    %c0_i32 = arith.constant 0 : i32
    %c0_i32_0 = arith.constant 0 : i32
    %c0_i32_1 = arith.constant 0 : i32
    return %c0_i32, %c0_i32_0 : i32, i32
  }
  func.func @transform_2(%arg0: i32) -> (i32, i32) {
    %c0_i32 = arith.constant 0 : i32
    %c0_i32_0 = arith.constant 0 : i32
    %c0_i32_1 = arith.constant 0 : i32
    return %c0_i32, %c0_i32_0 : i32, i32
  }
  func.func @transform_3(%arg0: i32) -> (i32, i32) {
    %c0_i32 = arith.constant 0 : i32
    %c0_i32_0 = arith.constant 0 : i32
    return %arg0, %c0_i32 : i32, i32
  }
}

module attributes {stable_mosaic.version = 11 : i64} {
  func.func @_mm_bias_act_kernel(%arg0: i32, %arg1: memref<128x576xbf16, #tpu.memory_space<vmem>>, %arg2: memref<576x32xbf16, #tpu.memory_space<vmem>>, %arg3: memref<1x32xf32, #tpu.memory_space<vmem>>, %arg4: memref<128x32xf32, #tpu.memory_space<vmem>>) attributes {dimension_semantics = [#tpu.dimension_semantics<parallel>], iteration_bounds = array<i64: 1>, scalar_prefetch = 0 : i64, scratch_operands = 0 : i64, tpu.core_type = #tpu.core_type<tc>, window_params = [{transform_indices = @transform_0, window_bounds = array<i64: 128, 576>}, {pipeline_mode = #tpu.pipeline_mode<synchronous>, transform_indices = @transform_1, window_bounds = array<i64: 576, 32>}, {pipeline_mode = #tpu.pipeline_mode<synchronous>, transform_indices = @transform_2, window_bounds = array<i64: 1, 32>}, {transform_indices = @transform_3, window_bounds = array<i64: 128, 32>}]} {
    %c0 = arith.constant 0 : index
    %c0_0 = arith.constant 0 : index
    %0 = vector.load %arg1[%c0, %c0_0] : memref<128x576xbf16, #tpu.memory_space<vmem>>, vector<128x576xbf16>
    %c0_1 = arith.constant 0 : index
    %c0_2 = arith.constant 0 : index
    %1 = vector.load %arg2[%c0_1, %c0_2] : memref<576x32xbf16, #tpu.memory_space<vmem>>, vector<576x32xbf16>
    %cst = arith.constant dense<0.000000e+00> : vector<128x32xf32>
    %2 = tpu.matmul %0, %1, %cst {dimension_numbers = #tpu.dot_dimension_numbers<[1], [0], [0], [1], [0, 0, 1, 1], [], []>} : vector<128x576xbf16>, vector<576x32xbf16>, vector<128x32xf32> -> vector<128x32xf32>
    %c0_3 = arith.constant 0 : index
    %c0_4 = arith.constant 0 : index
    %3 = vector.load %arg3[%c0_3, %c0_4] : memref<1x32xf32, #tpu.memory_space<vmem>>, vector<1x32xf32>
    %4 = vector.broadcast %3 : vector<1x32xf32> to vector<128x32xf32>
    %5 = arith.addf %2, %4 : vector<128x32xf32>
    %cst_5 = arith.constant 0.000000e+00 : f32
    %6 = vector.broadcast %cst_5 : f32 to vector<128x32xf32>
    %7 = arith.maximumf %5, %6 : vector<128x32xf32>
    %c0_6 = arith.constant 0 : index
    %c0_7 = arith.constant 0 : index
    %8 = vector.load %arg4[%c0_6, %c0_7] : memref<128x32xf32, #tpu.memory_space<vmem>>, vector<128x32xf32>
    tpu.vector_store %arg4[%c0_6, %c0_7], %7 {strides = array<i32>} : memref<128x32xf32, #tpu.memory_space<vmem>>, vector<128x32xf32>,
    return
  }
  func.func @transform_0(%arg0: i32) -> (i32, i32) {
    %c0_i32 = arith.constant 0 : i32
    %c0_i32_0 = arith.constant 0 : i32
    return %arg0, %c0_i32 : i32, i32
  }
  func.func @transform_1(%arg0: i32) -> (i32, i32) {
    %c0_i32 = arith.constant 0 : i32
    %c0_i32_0 = arith.constant 0 : i32
    %c0_i32_1 = arith.constant 0 : i32
    return %c0_i32, %c0_i32_0 : i32, i32
  }
  func.func @transform_2(%arg0: i32) -> (i32, i32) {
    %c0_i32 = arith.constant 0 : i32
    %c0_i32_0 = arith.constant 0 : i32
    %c0_i32_1 = arith.constant 0 : i32
    return %c0_i32, %c0_i32_0 : i32, i32
  }
  func.func @transform_3(%arg0: i32) -> (i32, i32) {
    %c0_i32 = arith.constant 0 : i32
    %c0_i32_0 = arith.constant 0 : i32
    return %arg0, %c0_i32 : i32, i32
  }
}

module attributes {stable_mosaic.version = 11 : i64} {
  func.func @_mm_bias_act_kernel(%arg0: i32, %arg1: memref<32x288xbf16, #tpu.memory_space<vmem>>, %arg2: memref<288x16xbf16, #tpu.memory_space<vmem>>, %arg3: memref<1x16xf32, #tpu.memory_space<vmem>>, %arg4: memref<32x16xf32, #tpu.memory_space<vmem>>) attributes {dimension_semantics = [#tpu.dimension_semantics<parallel>], iteration_bounds = array<i64: 1>, scalar_prefetch = 0 : i64, scratch_operands = 0 : i64, tpu.core_type = #tpu.core_type<tc>, window_params = [{transform_indices = @transform_0, window_bounds = array<i64: 32, 288>}, {pipeline_mode = #tpu.pipeline_mode<synchronous>, transform_indices = @transform_1, window_bounds = array<i64: 288, 16>}, {pipeline_mode = #tpu.pipeline_mode<synchronous>, transform_indices = @transform_2, window_bounds = array<i64: 1, 16>}, {transform_indices = @transform_3, window_bounds = array<i64: 32, 16>}]} {
    %c0 = arith.constant 0 : index
    %c0_0 = arith.constant 0 : index
    %0 = vector.load %arg1[%c0, %c0_0] : memref<32x288xbf16, #tpu.memory_space<vmem>>, vector<32x288xbf16>
    %c0_1 = arith.constant 0 : index
    %c0_2 = arith.constant 0 : index
    %1 = vector.load %arg2[%c0_1, %c0_2] : memref<288x16xbf16, #tpu.memory_space<vmem>>, vector<288x16xbf16>
    %cst = arith.constant dense<0.000000e+00> : vector<32x16xf32>
    %2 = tpu.matmul %0, %1, %cst {dimension_numbers = #tpu.dot_dimension_numbers<[1], [0], [0], [1], [0, 0, 1, 1], [], []>} : vector<32x288xbf16>, vector<288x16xbf16>, vector<32x16xf32> -> vector<32x16xf32>
    %c0_3 = arith.constant 0 : index
    %c0_4 = arith.constant 0 : index
    %3 = vector.load %arg3[%c0_3, %c0_4] : memref<1x16xf32, #tpu.memory_space<vmem>>, vector<1x16xf32>
    %4 = vector.broadcast %3 : vector<1x16xf32> to vector<32x16xf32>
    %5 = arith.addf %2, %4 : vector<32x16xf32>
    %cst_5 = arith.constant 0.000000e+00 : f32
    %6 = vector.broadcast %cst_5 : f32 to vector<32x16xf32>
    %7 = arith.maximumf %5, %6 : vector<32x16xf32>
    %c0_6 = arith.constant 0 : index
    %c0_7 = arith.constant 0 : index
    %8 = vector.load %arg4[%c0_6, %c0_7] : memref<32x16xf32, #tpu.memory_space<vmem>>, vector<32x16xf32>
    tpu.vector_store %arg4[%c0_6, %c0_7], %7 {strides = array<i32>} : memref<32x16xf32, #tpu.memory_space<vmem>>, vector<32x16xf32>,
    return
  }
  func.func @transform_0(%arg0: i32) -> (i32, i32) {
    %c0_i32 = arith.constant 0 : i32
    %c0_i32_0 = arith.constant 0 : i32
    return %arg0, %c0_i32 : i32, i32
  }
  func.func @transform_1(%arg0: i32) -> (i32, i32) {
    %c0_i32 = arith.constant 0 : i32
    %c0_i32_0 = arith.constant 0 : i32
    %c0_i32_1 = arith.constant 0 : i32
    return %c0_i32, %c0_i32_0 : i32, i32
  }
  func.func @transform_2(%arg0: i32) -> (i32, i32) {
    %c0_i32 = arith.constant 0 : i32
    %c0_i32_0 = arith.constant 0 : i32
    %c0_i32_1 = arith.constant 0 : i32
    return %c0_i32, %c0_i32_0 : i32, i32
  }
  func.func @transform_3(%arg0: i32) -> (i32, i32) {
    %c0_i32 = arith.constant 0 : i32
    %c0_i32_0 = arith.constant 0 : i32
    return %arg0, %c0_i32 : i32, i32
  }
}

module attributes {stable_mosaic.version = 11 : i64} {
  func.func @_mm_bias_act_kernel(%arg0: i32, %arg1: memref<8x144xbf16, #tpu.memory_space<vmem>>, %arg2: memref<144x8xbf16, #tpu.memory_space<vmem>>, %arg3: memref<1x8xf32, #tpu.memory_space<vmem>>, %arg4: memref<8x8xf32, #tpu.memory_space<vmem>>) attributes {dimension_semantics = [#tpu.dimension_semantics<parallel>], iteration_bounds = array<i64: 1>, scalar_prefetch = 0 : i64, scratch_operands = 0 : i64, tpu.core_type = #tpu.core_type<tc>, window_params = [{transform_indices = @transform_0, window_bounds = array<i64: 8, 144>}, {pipeline_mode = #tpu.pipeline_mode<synchronous>, transform_indices = @transform_1, window_bounds = array<i64: 144, 8>}, {pipeline_mode = #tpu.pipeline_mode<synchronous>, transform_indices = @transform_2, window_bounds = array<i64: 1, 8>}, {transform_indices = @transform_3, window_bounds = array<i64: 8, 8>}]} {
    %c0 = arith.constant 0 : index
    %c0_0 = arith.constant 0 : index
    %0 = vector.load %arg1[%c0, %c0_0] : memref<8x144xbf16, #tpu.memory_space<vmem>>, vector<8x144xbf16>
    %c0_1 = arith.constant 0 : index
    %c0_2 = arith.constant 0 : index
    %1 = vector.load %arg2[%c0_1, %c0_2] : memref<144x8xbf16, #tpu.memory_space<vmem>>, vector<144x8xbf16>
    %cst = arith.constant dense<0.000000e+00> : vector<8x8xf32>
    %2 = tpu.matmul %0, %1, %cst {dimension_numbers = #tpu.dot_dimension_numbers<[1], [0], [0], [1], [0, 0, 1, 1], [], []>} : vector<8x144xbf16>, vector<144x8xbf16>, vector<8x8xf32> -> vector<8x8xf32>
    %c0_3 = arith.constant 0 : index
    %c0_4 = arith.constant 0 : index
    %3 = vector.load %arg3[%c0_3, %c0_4] : memref<1x8xf32, #tpu.memory_space<vmem>>, vector<1x8xf32>
    %4 = vector.broadcast %3 : vector<1x8xf32> to vector<8x8xf32>
    %5 = arith.addf %2, %4 : vector<8x8xf32>
    %cst_5 = arith.constant 0.000000e+00 : f32
    %6 = vector.broadcast %cst_5 : f32 to vector<8x8xf32>
    %7 = arith.maximumf %5, %6 : vector<8x8xf32>
    %c0_6 = arith.constant 0 : index
    %c0_7 = arith.constant 0 : index
    %8 = vector.load %arg4[%c0_6, %c0_7] : memref<8x8xf32, #tpu.memory_space<vmem>>, vector<8x8xf32>
    tpu.vector_store %arg4[%c0_6, %c0_7], %7 {strides = array<i32>} : memref<8x8xf32, #tpu.memory_space<vmem>>, vector<8x8xf32>,
    return
  }
  func.func @transform_0(%arg0: i32) -> (i32, i32) {
    %c0_i32 = arith.constant 0 : i32
    %c0_i32_0 = arith.constant 0 : i32
    return %arg0, %c0_i32 : i32, i32
  }
  func.func @transform_1(%arg0: i32) -> (i32, i32) {
    %c0_i32 = arith.constant 0 : i32
    %c0_i32_0 = arith.constant 0 : i32
    %c0_i32_1 = arith.constant 0 : i32
    return %c0_i32, %c0_i32_0 : i32, i32
  }
  func.func @transform_2(%arg0: i32) -> (i32, i32) {
    %c0_i32 = arith.constant 0 : i32
    %c0_i32_0 = arith.constant 0 : i32
    %c0_i32_1 = arith.constant 0 : i32
    return %c0_i32, %c0_i32_0 : i32, i32
  }
  func.func @transform_3(%arg0: i32) -> (i32, i32) {
    %c0_i32 = arith.constant 0 : i32
    %c0_i32_0 = arith.constant 0 : i32
    return %arg0, %c0_i32 : i32, i32
  }
}

module attributes {stable_mosaic.version = 11 : i64} {
  func.func @_enc5_dec_fused_kernel(%arg0: memref<72x2xbf16, #tpu.memory_space<vmem>>, %arg1: memref<8x72xbf16, #tpu.memory_space<vmem>>, %arg2: memref<8x1xf32, #tpu.memory_space<vmem>>, %arg3: memref<4x8x8xbf16, #tpu.memory_space<vmem>>, %arg4: memref<4x8x8xbf16, #tpu.memory_space<vmem>>, %arg5: memref<4x16x8xbf16, #tpu.memory_space<vmem>>, %arg6: memref<4x32x16xbf16, #tpu.memory_space<vmem>>, %arg7: memref<4x64x32xbf16, #tpu.memory_space<vmem>>, %arg8: memref<8x1xf32, #tpu.memory_space<vmem>>, %arg9: memref<8x1xf32, #tpu.memory_space<vmem>>, %arg10: memref<16x1xf32, #tpu.memory_space<vmem>>, %arg11: memref<32x1xf32, #tpu.memory_space<vmem>>, %arg12: memref<64x1xf32, #tpu.memory_space<vmem>>, %arg13: memref<8x2xf32, #tpu.memory_space<vmem>>, %arg14: memref<64x2048xf32, #tpu.memory_space<vmem>>, %arg15: memref<16x128xf32, #tpu.memory_space<vmem>>, %arg16: memref<32x512xf32, #tpu.memory_space<vmem>>) attributes {dimension_semantics = [], scalar_prefetch = 0 : i64, scratch_operands = 2 : i64, tpu.core_type = #tpu.core_type<tc>} {
    %c0 = arith.constant 0 : index
    %c0_0 = arith.constant 0 : index
    %0 = vector.load %arg1[%c0, %c0_0] : memref<8x72xbf16, #tpu.memory_space<vmem>>, vector<8x72xbf16>
    %c0_1 = arith.constant 0 : index
    %c0_2 = arith.constant 0 : index
    %1 = vector.load %arg0[%c0_1, %c0_2] : memref<72x2xbf16, #tpu.memory_space<vmem>>, vector<72x2xbf16>
    %cst = arith.constant dense<0.000000e+00> : vector<8x2xf32>
    %2 = tpu.matmul %0, %1, %cst {dimension_numbers = #tpu.dot_dimension_numbers<[1], [0], [0], [1], [0, 0, 1, 1], [], []>} : vector<8x72xbf16>, vector<72x2xbf16>, vector<8x2xf32> -> vector<8x2xf32>
    %c0_3 = arith.constant 0 : index
    %c0_4 = arith.constant 0 : index
    %3 = vector.load %arg2[%c0_3, %c0_4] : memref<8x1xf32, #tpu.memory_space<vmem>>, vector<8x1xf32>
    %4 = vector.broadcast %3 : vector<8x1xf32> to vector<8x2xf32>
    %5 = arith.addf %2, %4 : vector<8x2xf32>
    %cst_5 = arith.constant 0.000000e+00 : f32
    %6 = vector.broadcast %cst_5 : f32 to vector<8x2xf32>
    %7 = arith.maximumf %5, %6 : vector<8x2xf32>
    %c0_6 = arith.constant 0 : index
    %c0_7 = arith.constant 0 : index
    %8 = vector.load %arg13[%c0_6, %c0_7] : memref<8x2xf32, #tpu.memory_space<vmem>>, vector<8x2xf32>
    tpu.vector_store %arg13[%c0_6, %c0_7], %7 {strides = array<i32>} : memref<8x2xf32, #tpu.memory_space<vmem>>, vector<8x2xf32>,
    %c0_8 = arith.constant 0 : index
    %c0_9 = arith.constant 0 : index
    %9 = vector.load %arg8[%c0_8, %c0_9] : memref<8x1xf32, #tpu.memory_space<vmem>>, vector<8x1xf32>
    %10 = arith.truncf %7 : vector<8x2xf32> to vector<8x2xbf16>
    %c0_10 = arith.constant 0 : index
    %c0_11 = arith.constant 0 : index
    %c0_12 = arith.constant 0 : index
    %11 = vector.load %arg3[%c0_10, %c0_11, %c0_12] : memref<4x8x8xbf16, #tpu.memory_space<vmem>>, vector<1x8x8xbf16>
    %12 = vector.shape_cast %11 : vector<1x8x8xbf16> to vector<8x8xbf16>
    %cst_13 = arith.constant dense<0.000000e+00> : vector<8x2xf32>
    %13 = tpu.matmul %12, %10, %cst_13 {dimension_numbers = #tpu.dot_dimension_numbers<[1], [0], [0], [1], [0, 0, 1, 1], [], []>} : vector<8x8xbf16>, vector<8x2xbf16>, vector<8x2xf32> -> vector<8x2xf32>
    %14 = vector.broadcast %9 : vector<8x1xf32> to vector<8x2xf32>
    %15 = arith.addf %13, %14 : vector<8x2xf32>
    %cst_14 = arith.constant 0.000000e+00 : f32
    %16 = vector.broadcast %cst_14 : f32 to vector<8x2xf32>
    %17 = arith.maximumf %15, %16 : vector<8x2xf32>
    %c0_15 = arith.constant 0 : index
    %c0_16 = arith.constant 0 : index
    %18 = vector.load %arg15[%c0_15, %c0_16] : memref<16x128xf32, #tpu.memory_space<vmem>>, vector<8x2xf32>
    tpu.vector_store %arg15[%c0_15, %c0_16], %17 {strides = array<i32>} : memref<16x128xf32, #tpu.memory_space<vmem>>, vector<8x2xf32>,
    %c1 = arith.constant 1 : index
    %c0_17 = arith.constant 0 : index
    %c0_18 = arith.constant 0 : index
    %19 = vector.load %arg3[%c1, %c0_17, %c0_18] : memref<4x8x8xbf16, #tpu.memory_space<vmem>>, vector<1x8x8xbf16>
    %20 = vector.shape_cast %19 : vector<1x8x8xbf16> to vector<8x8xbf16>
    %cst_19 = arith.constant dense<0.000000e+00> : vector<8x2xf32>
    %21 = tpu.matmul %20, %10, %cst_19 {dimension_numbers = #tpu.dot_dimension_numbers<[1], [0], [0], [1], [0, 0, 1, 1], [], []>} : vector<8x8xbf16>, vector<8x2xbf16>, vector<8x2xf32> -> vector<8x2xf32>
    %22 = vector.broadcast %9 : vector<8x1xf32> to vector<8x2xf32>
    %23 = arith.addf %21, %22 : vector<8x2xf32>
    %cst_20 = arith.constant 0.000000e+00 : f32
    %24 = vector.broadcast %cst_20 : f32 to vector<8x2xf32>
    %25 = arith.maximumf %23, %24 : vector<8x2xf32>
    %c0_21 = arith.constant 0 : index
    %c2 = arith.constant 2 : index
    %26 = vector.load %arg15[%c0_21, %c2] : memref<16x128xf32, #tpu.memory_space<vmem>>, vector<8x2xf32>
    tpu.vector_store %arg15[%c0_21, %c2], %25 {strides = array<i32>} : memref<16x128xf32, #tpu.memory_space<vmem>>, vector<8x2xf32>,
    %c2_22 = arith.constant 2 : index
    %c0_23 = arith.constant 0 : index
    %c0_24 = arith.constant 0 : index
    %27 = vector.load %arg3[%c2_22, %c0_23, %c0_24] : memref<4x8x8xbf16, #tpu.memory_space<vmem>>, vector<1x8x8xbf16>
    %28 = vector.shape_cast %27 : vector<1x8x8xbf16> to vector<8x8xbf16>
    %cst_25 = arith.constant dense<0.000000e+00> : vector<8x2xf32>
    %29 = tpu.matmul %28, %10, %cst_25 {dimension_numbers = #tpu.dot_dimension_numbers<[1], [0], [0], [1], [0, 0, 1, 1], [], []>} : vector<8x8xbf16>, vector<8x2xbf16>, vector<8x2xf32> -> vector<8x2xf32>
    %30 = vector.broadcast %9 : vector<8x1xf32> to vector<8x2xf32>
    %31 = arith.addf %29, %30 : vector<8x2xf32>
    %cst_26 = arith.constant 0.000000e+00 : f32
    %32 = vector.broadcast %cst_26 : f32 to vector<8x2xf32>
    %33 = arith.maximumf %31, %32 : vector<8x2xf32>
    %c0_27 = arith.constant 0 : index
    %c4 = arith.constant 4 : index
    %34 = vector.load %arg15[%c0_27, %c4] : memref<16x128xf32, #tpu.memory_space<vmem>>, vector<8x2xf32>
    tpu.vector_store %arg15[%c0_27, %c4], %33 {strides = array<i32>} : memref<16x128xf32, #tpu.memory_space<vmem>>, vector<8x2xf32>,
    %c3 = arith.constant 3 : index
    %c0_28 = arith.constant 0 : index
    %c0_29 = arith.constant 0 : index
    %35 = vector.load %arg3[%c3, %c0_28, %c0_29] : memref<4x8x8xbf16, #tpu.memory_space<vmem>>, vector<1x8x8xbf16>
    %36 = vector.shape_cast %35 : vector<1x8x8xbf16> to vector<8x8xbf16>
    %cst_30 = arith.constant dense<0.000000e+00> : vector<8x2xf32>
    %37 = tpu.matmul %36, %10, %cst_30 {dimension_numbers = #tpu.dot_dimension_numbers<[1], [0], [0], [1], [0, 0, 1, 1], [], []>} : vector<8x8xbf16>, vector<8x2xbf16>, vector<8x2xf32> -> vector<8x2xf32>
    %38 = vector.broadcast %9 : vector<8x1xf32> to vector<8x2xf32>
    %39 = arith.addf %37, %38 : vector<8x2xf32>
    %cst_31 = arith.constant 0.000000e+00 : f32
    %40 = vector.broadcast %cst_31 : f32 to vector<8x2xf32>
    %41 = arith.maximumf %39, %40 : vector<8x2xf32>
    %c0_32 = arith.constant 0 : index
    %c6 = arith.constant 6 : index
    %42 = vector.load %arg15[%c0_32, %c6] : memref<16x128xf32, #tpu.memory_space<vmem>>, vector<8x2xf32>
    tpu.vector_store %arg15[%c0_32, %c6], %41 {strides = array<i32>} : memref<16x128xf32, #tpu.memory_space<vmem>>, vector<8x2xf32>,
    %c0_33 = arith.constant 0 : index
    %c0_34 = arith.constant 0 : index
    %43 = vector.load %arg15[%c0_33, %c0_34] : memref<16x128xf32, #tpu.memory_space<vmem>>, vector<8x8xf32>
    %c0_35 = arith.constant 0 : index
    %c0_36 = arith.constant 0 : index
    %44 = vector.load %arg9[%c0_35, %c0_36] : memref<8x1xf32, #tpu.memory_space<vmem>>, vector<8x1xf32>
    %45 = arith.truncf %43 : vector<8x8xf32> to vector<8x8xbf16>
    %c0_37 = arith.constant 0 : index
    %c0_38 = arith.constant 0 : index
    %c0_39 = arith.constant 0 : index
    %46 = vector.load %arg4[%c0_37, %c0_38, %c0_39] : memref<4x8x8xbf16, #tpu.memory_space<vmem>>, vector<1x8x8xbf16>
    %47 = vector.shape_cast %46 : vector<1x8x8xbf16> to vector<8x8xbf16>
    %cst_40 = arith.constant dense<0.000000e+00> : vector<8x8xf32>
    %48 = tpu.matmul %47, %45, %cst_40 {dimension_numbers = #tpu.dot_dimension_numbers<[1], [0], [0], [1], [0, 0, 1, 1], [], []>} : vector<8x8xbf16>, vector<8x8xbf16>, vector<8x8xf32> -> vector<8x8xf32>
    %49 = vector.broadcast %44 : vector<8x1xf32> to vector<8x8xf32>
    %50 = arith.addf %48, %49 : vector<8x8xf32>
    %cst_41 = arith.constant 0.000000e+00 : f32
    %51 = vector.broadcast %cst_41 : f32 to vector<8x8xf32>
    %52 = arith.maximumf %50, %51 : vector<8x8xf32>
    %c0_42 = arith.constant 0 : index
    %c0_43 = arith.constant 0 : index
    %53 = vector.load %arg16[%c0_42, %c0_43] : memref<32x512xf32, #tpu.memory_space<vmem>>, vector<8x8xf32>
    tpu.vector_store %arg16[%c0_42, %c0_43], %52 {strides = array<i32>} : memref<32x512xf32, #tpu.memory_space<vmem>>, vector<8x8xf32>,
    %c1_44 = arith.constant 1 : index
    %c0_45 = arith.constant 0 : index
    %c0_46 = arith.constant 0 : index
    %54 = vector.load %arg4[%c1_44, %c0_45, %c0_46] : memref<4x8x8xbf16, #tpu.memory_space<vmem>>, vector<1x8x8xbf16>
    %55 = vector.shape_cast %54 : vector<1x8x8xbf16> to vector<8x8xbf16>
    %cst_47 = arith.constant dense<0.000000e+00> : vector<8x8xf32>
    %56 = tpu.matmul %55, %45, %cst_47 {dimension_numbers = #tpu.dot_dimension_numbers<[1], [0], [0], [1], [0, 0, 1, 1], [], []>} : vector<8x8xbf16>, vector<8x8xbf16>, vector<8x8xf32> -> vector<8x8xf32>
    %57 = vector.broadcast %44 : vector<8x1xf32> to vector<8x8xf32>
    %58 = arith.addf %56, %57 : vector<8x8xf32>
    %cst_48 = arith.constant 0.000000e+00 : f32
    %59 = vector.broadcast %cst_48 : f32 to vector<8x8xf32>
    %60 = arith.maximumf %58, %59 : vector<8x8xf32>
    %c0_49 = arith.constant 0 : index
    %c8 = arith.constant 8 : index
    %61 = vector.load %arg16[%c0_49, %c8] : memref<32x512xf32, #tpu.memory_space<vmem>>, vector<8x8xf32>
    tpu.vector_store %arg16[%c0_49, %c8], %60 {strides = array<i32>} : memref<32x512xf32, #tpu.memory_space<vmem>>, vector<8x8xf32>,
    %c2_50 = arith.constant 2 : index
    %c0_51 = arith.constant 0 : index
    %c0_52 = arith.constant 0 : index
    %62 = vector.load %arg4[%c2_50, %c0_51, %c0_52] : memref<4x8x8xbf16, #tpu.memory_space<vmem>>, vector<1x8x8xbf16>
    %63 = vector.shape_cast %62 : vector<1x8x8xbf16> to vector<8x8xbf16>
    %cst_53 = arith.constant dense<0.000000e+00> : vector<8x8xf32>
    %64 = tpu.matmul %63, %45, %cst_53 {dimension_numbers = #tpu.dot_dimension_numbers<[1], [0], [0], [1], [0, 0, 1, 1], [], []>} : vector<8x8xbf16>, vector<8x8xbf16>, vector<8x8xf32> -> vector<8x8xf32>
    %65 = vector.broadcast %44 : vector<8x1xf32> to vector<8x8xf32>
    %66 = arith.addf %64, %65 : vector<8x8xf32>
    %cst_54 = arith.constant 0.000000e+00 : f32
    %67 = vector.broadcast %cst_54 : f32 to vector<8x8xf32>
    %68 = arith.maximumf %66, %67 : vector<8x8xf32>
    %c0_55 = arith.constant 0 : index
    %c16 = arith.constant 16 : index
    %69 = vector.load %arg16[%c0_55, %c16] : memref<32x512xf32, #tpu.memory_space<vmem>>, vector<8x8xf32>
    tpu.vector_store %arg16[%c0_55, %c16], %68 {strides = array<i32>} : memref<32x512xf32, #tpu.memory_space<vmem>>, vector<8x8xf32>,
    %c3_56 = arith.constant 3 : index
    %c0_57 = arith.constant 0 : index
    %c0_58 = arith.constant 0 : index
    %70 = vector.load %arg4[%c3_56, %c0_57, %c0_58] : memref<4x8x8xbf16, #tpu.memory_space<vmem>>, vector<1x8x8xbf16>
    %71 = vector.shape_cast %70 : vector<1x8x8xbf16> to vector<8x8xbf16>
    %cst_59 = arith.constant dense<0.000000e+00> : vector<8x8xf32>
    %72 = tpu.matmul %71, %45, %cst_59 {dimension_numbers = #tpu.dot_dimension_numbers<[1], [0], [0], [1], [0, 0, 1, 1], [], []>} : vector<8x8xbf16>, vector<8x8xbf16>, vector<8x8xf32> -> vector<8x8xf32>
    %73 = vector.broadcast %44 : vector<8x1xf32> to vector<8x8xf32>
    %74 = arith.addf %72, %73 : vector<8x8xf32>
    %cst_60 = arith.constant 0.000000e+00 : f32
    %75 = vector.broadcast %cst_60 : f32 to vector<8x8xf32>
    %76 = arith.maximumf %74, %75 : vector<8x8xf32>
    %c0_61 = arith.constant 0 : index
    %c24 = arith.constant 24 : index
    %77 = vector.load %arg16[%c0_61, %c24] : memref<32x512xf32, #tpu.memory_space<vmem>>, vector<8x8xf32>
    tpu.vector_store %arg16[%c0_61, %c24], %76 {strides = array<i32>} : memref<32x512xf32, #tpu.memory_space<vmem>>, vector<8x8xf32>,
    %c0_62 = arith.constant 0 : index
    %c0_63 = arith.constant 0 : index
    %78 = vector.load %arg16[%c0_62, %c0_63] : memref<32x512xf32, #tpu.memory_space<vmem>>, vector<8x32xf32>
    %c0_64 = arith.constant 0 : index
    %c0_65 = arith.constant 0 : index
    %79 = vector.load %arg10[%c0_64, %c0_65] : memref<16x1xf32, #tpu.memory_space<vmem>>, vector<16x1xf32>
    %80 = arith.truncf %78 : vector<8x32xf32> to vector<8x32xbf16>
    %c0_66 = arith.constant 0 : index
    %c0_67 = arith.constant 0 : index
    %c0_68 = arith.constant 0 : index
    %81 = vector.load %arg5[%c0_66, %c0_67, %c0_68] : memref<4x16x8xbf16, #tpu.memory_space<vmem>>, vector<1x16x8xbf16>
    %82 = vector.shape_cast %81 : vector<1x16x8xbf16> to vector<16x8xbf16>
    %cst_69 = arith.constant dense<0.000000e+00> : vector<16x32xf32>
    %83 = tpu.matmul %82, %80, %cst_69 {dimension_numbers = #tpu.dot_dimension_numbers<[1], [0], [0], [1], [0, 0, 1, 1], [], []>} : vector<16x8xbf16>, vector<8x32xbf16>, vector<16x32xf32> -> vector<16x32xf32>
    %84 = vector.broadcast %79 : vector<16x1xf32> to vector<16x32xf32>
    %85 = arith.addf %83, %84 : vector<16x32xf32>
    %cst_70 = arith.constant 0.000000e+00 : f32
    %86 = vector.broadcast %cst_70 : f32 to vector<16x32xf32>
    %87 = arith.maximumf %85, %86 : vector<16x32xf32>
    %c0_71 = arith.constant 0 : index
    %c0_72 = arith.constant 0 : index
    %88 = vector.load %arg15[%c0_71, %c0_72] : memref<16x128xf32, #tpu.memory_space<vmem>>, vector<16x32xf32>
    tpu.vector_store %arg15[%c0_71, %c0_72], %87 {strides = array<i32>} : memref<16x128xf32, #tpu.memory_space<vmem>>, vector<16x32xf32>,
    %c1_73 = arith.constant 1 : index
    %c0_74 = arith.constant 0 : index
    %c0_75 = arith.constant 0 : index
    %89 = vector.load %arg5[%c1_73, %c0_74, %c0_75] : memref<4x16x8xbf16, #tpu.memory_space<vmem>>, vector<1x16x8xbf16>
    %90 = vector.shape_cast %89 : vector<1x16x8xbf16> to vector<16x8xbf16>
    %cst_76 = arith.constant dense<0.000000e+00> : vector<16x32xf32>
    %91 = tpu.matmul %90, %80, %cst_76 {dimension_numbers = #tpu.dot_dimension_numbers<[1], [0], [0], [1], [0, 0, 1, 1], [], []>} : vector<16x8xbf16>, vector<8x32xbf16>, vector<16x32xf32> -> vector<16x32xf32>
    %92 = vector.broadcast %79 : vector<16x1xf32> to vector<16x32xf32>
    %93 = arith.addf %91, %92 : vector<16x32xf32>
    %cst_77 = arith.constant 0.000000e+00 : f32
    %94 = vector.broadcast %cst_77 : f32 to vector<16x32xf32>
    %95 = arith.maximumf %93, %94 : vector<16x32xf32>
    %c0_78 = arith.constant 0 : index
    %c32 = arith.constant 32 : index
    %96 = vector.load %arg15[%c0_78, %c32] : memref<16x128xf32, #tpu.memory_space<vmem>>, vector<16x32xf32>
    tpu.vector_store %arg15[%c0_78, %c32], %95 {strides = array<i32>} : memref<16x128xf32, #tpu.memory_space<vmem>>, vector<16x32xf32>,
    %c2_79 = arith.constant 2 : index
    %c0_80 = arith.constant 0 : index
    %c0_81 = arith.constant 0 : index
    %97 = vector.load %arg5[%c2_79, %c0_80, %c0_81] : memref<4x16x8xbf16, #tpu.memory_space<vmem>>, vector<1x16x8xbf16>
    %98 = vector.shape_cast %97 : vector<1x16x8xbf16> to vector<16x8xbf16>
    %cst_82 = arith.constant dense<0.000000e+00> : vector<16x32xf32>
    %99 = tpu.matmul %98, %80, %cst_82 {dimension_numbers = #tpu.dot_dimension_numbers<[1], [0], [0], [1], [0, 0, 1, 1], [], []>} : vector<16x8xbf16>, vector<8x32xbf16>, vector<16x32xf32> -> vector<16x32xf32>
    %100 = vector.broadcast %79 : vector<16x1xf32> to vector<16x32xf32>
    %101 = arith.addf %99, %100 : vector<16x32xf32>
    %cst_83 = arith.constant 0.000000e+00 : f32
    %102 = vector.broadcast %cst_83 : f32 to vector<16x32xf32>
    %103 = arith.maximumf %101, %102 : vector<16x32xf32>
    %c0_84 = arith.constant 0 : index
    %c64 = arith.constant 64 : index
    %104 = vector.load %arg15[%c0_84, %c64] : memref<16x128xf32, #tpu.memory_space<vmem>>, vector<16x32xf32>
    tpu.vector_store %arg15[%c0_84, %c64], %103 {strides = array<i32>} : memref<16x128xf32, #tpu.memory_space<vmem>>, vector<16x32xf32>,
    %c3_85 = arith.constant 3 : index
    %c0_86 = arith.constant 0 : index
    %c0_87 = arith.constant 0 : index
    %105 = vector.load %arg5[%c3_85, %c0_86, %c0_87] : memref<4x16x8xbf16, #tpu.memory_space<vmem>>, vector<1x16x8xbf16>
    %106 = vector.shape_cast %105 : vector<1x16x8xbf16> to vector<16x8xbf16>
    %cst_88 = arith.constant dense<0.000000e+00> : vector<16x32xf32>
    %107 = tpu.matmul %106, %80, %cst_88 {dimension_numbers = #tpu.dot_dimension_numbers<[1], [0], [0], [1], [0, 0, 1, 1], [], []>} : vector<16x8xbf16>, vector<8x32xbf16>, vector<16x32xf32> -> vector<16x32xf32>
    %108 = vector.broadcast %79 : vector<16x1xf32> to vector<16x32xf32>
    %109 = arith.addf %107, %108 : vector<16x32xf32>
    %cst_89 = arith.constant 0.000000e+00 : f32
    %110 = vector.broadcast %cst_89 : f32 to vector<16x32xf32>
    %111 = arith.maximumf %109, %110 : vector<16x32xf32>
    %c0_90 = arith.constant 0 : index
    %c96 = arith.constant 96 : index
    %112 = vector.load %arg15[%c0_90, %c96] : memref<16x128xf32, #tpu.memory_space<vmem>>, vector<16x32xf32>
    tpu.vector_store %arg15[%c0_90, %c96], %111 {strides = array<i32>} : memref<16x128xf32, #tpu.memory_space<vmem>>, vector<16x32xf32>,
    %c0_91 = arith.constant 0 : index
    %c0_92 = arith.constant 0 : index
    %113 = vector.load %arg15[%c0_91, %c0_92] : memref<16x128xf32, #tpu.memory_space<vmem>>, vector<16x128xf32>
    %c0_93 = arith.constant 0 : index
    %c0_94 = arith.constant 0 : index
    %114 = vector.load %arg11[%c0_93, %c0_94] : memref<32x1xf32, #tpu.memory_space<vmem>>, vector<32x1xf32>
    %115 = arith.truncf %113 : vector<16x128xf32> to vector<16x128xbf16>
    %c0_95 = arith.constant 0 : index
    %c0_96 = arith.constant 0 : index
    %c0_97 = arith.constant 0 : index
    %116 = vector.load %arg6[%c0_95, %c0_96, %c0_97] : memref<4x32x16xbf16, #tpu.memory_space<vmem>>, vector<1x32x16xbf16>
    %117 = vector.shape_cast %116 : vector<1x32x16xbf16> to vector<32x16xbf16>
    %cst_98 = arith.constant dense<0.000000e+00> : vector<32x128xf32>
    %118 = tpu.matmul %117, %115, %cst_98 {dimension_numbers = #tpu.dot_dimension_numbers<[1], [0], [0], [1], [0, 0, 1, 1], [], []>} : vector<32x16xbf16>, vector<16x128xbf16>, vector<32x128xf32> -> vector<32x128xf32>
    %119 = vector.broadcast %114 : vector<32x1xf32> to vector<32x128xf32>
    %120 = arith.addf %118, %119 : vector<32x128xf32>
    %cst_99 = arith.constant 0.000000e+00 : f32
    %121 = vector.broadcast %cst_99 : f32 to vector<32x128xf32>
    %122 = arith.maximumf %120, %121 : vector<32x128xf32>
    %c0_100 = arith.constant 0 : index
    %c0_101 = arith.constant 0 : index
    %123 = vector.load %arg16[%c0_100, %c0_101] : memref<32x512xf32, #tpu.memory_space<vmem>>, vector<32x128xf32>
    tpu.vector_store %arg16[%c0_100, %c0_101], %122 {strides = array<i32>} : memref<32x512xf32, #tpu.memory_space<vmem>>, vector<32x128xf32>,
    %c1_102 = arith.constant 1 : index
    %c0_103 = arith.constant 0 : index
    %c0_104 = arith.constant 0 : index
    %124 = vector.load %arg6[%c1_102, %c0_103, %c0_104] : memref<4x32x16xbf16, #tpu.memory_space<vmem>>, vector<1x32x16xbf16>
    %125 = vector.shape_cast %124 : vector<1x32x16xbf16> to vector<32x16xbf16>
    %cst_105 = arith.constant dense<0.000000e+00> : vector<32x128xf32>
    %126 = tpu.matmul %125, %115, %cst_105 {dimension_numbers = #tpu.dot_dimension_numbers<[1], [0], [0], [1], [0, 0, 1, 1], [], []>} : vector<32x16xbf16>, vector<16x128xbf16>, vector<32x128xf32> -> vector<32x128xf32>
    %127 = vector.broadcast %114 : vector<32x1xf32> to vector<32x128xf32>
    %128 = arith.addf %126, %127 : vector<32x128xf32>
    %cst_106 = arith.constant 0.000000e+00 : f32
    %129 = vector.broadcast %cst_106 : f32 to vector<32x128xf32>
    %130 = arith.maximumf %128, %129 : vector<32x128xf32>
    %c0_107 = arith.constant 0 : index
    %c128 = arith.constant 128 : index
    %131 = vector.load %arg16[%c0_107, %c128] : memref<32x512xf32, #tpu.memory_space<vmem>>, vector<32x128xf32>
    tpu.vector_store %arg16[%c0_107, %c128], %130 {strides = array<i32>} : memref<32x512xf32, #tpu.memory_space<vmem>>, vector<32x128xf32>,
    %c2_108 = arith.constant 2 : index
    %c0_109 = arith.constant 0 : index
    %c0_110 = arith.constant 0 : index
    %132 = vector.load %arg6[%c2_108, %c0_109, %c0_110] : memref<4x32x16xbf16, #tpu.memory_space<vmem>>, vector<1x32x16xbf16>
    %133 = vector.shape_cast %132 : vector<1x32x16xbf16> to vector<32x16xbf16>
    %cst_111 = arith.constant dense<0.000000e+00> : vector<32x128xf32>
    %134 = tpu.matmul %133, %115, %cst_111 {dimension_numbers = #tpu.dot_dimension_numbers<[1], [0], [0], [1], [0, 0, 1, 1], [], []>} : vector<32x16xbf16>, vector<16x128xbf16>, vector<32x128xf32> -> vector<32x128xf32>
    %135 = vector.broadcast %114 : vector<32x1xf32> to vector<32x128xf32>
    %136 = arith.addf %134, %135 : vector<32x128xf32>
    %cst_112 = arith.constant 0.000000e+00 : f32
    %137 = vector.broadcast %cst_112 : f32 to vector<32x128xf32>
    %138 = arith.maximumf %136, %137 : vector<32x128xf32>
    %c0_113 = arith.constant 0 : index
    %c256 = arith.constant 256 : index
    %139 = vector.load %arg16[%c0_113, %c256] : memref<32x512xf32, #tpu.memory_space<vmem>>, vector<32x128xf32>
    tpu.vector_store %arg16[%c0_113, %c256], %138 {strides = array<i32>} : memref<32x512xf32, #tpu.memory_space<vmem>>, vector<32x128xf32>,
    %c3_114 = arith.constant 3 : index
    %c0_115 = arith.constant 0 : index
    %c0_116 = arith.constant 0 : index
    %140 = vector.load %arg6[%c3_114, %c0_115, %c0_116] : memref<4x32x16xbf16, #tpu.memory_space<vmem>>, vector<1x32x16xbf16>
    %141 = vector.shape_cast %140 : vector<1x32x16xbf16> to vector<32x16xbf16>
    %cst_117 = arith.constant dense<0.000000e+00> : vector<32x128xf32>
    %142 = tpu.matmul %141, %115, %cst_117 {dimension_numbers = #tpu.dot_dimension_numbers<[1], [0], [0], [1], [0, 0, 1, 1], [], []>} : vector<32x16xbf16>, vector<16x128xbf16>, vector<32x128xf32> -> vector<32x128xf32>
    %143 = vector.broadcast %114 : vector<32x1xf32> to vector<32x128xf32>
    %144 = arith.addf %142, %143 : vector<32x128xf32>
    %cst_118 = arith.constant 0.000000e+00 : f32
    %145 = vector.broadcast %cst_118 : f32 to vector<32x128xf32>
    %146 = arith.maximumf %144, %145 : vector<32x128xf32>
    %c0_119 = arith.constant 0 : index
    %c384 = arith.constant 384 : index
    %147 = vector.load %arg16[%c0_119, %c384] : memref<32x512xf32, #tpu.memory_space<vmem>>, vector<32x128xf32>
    tpu.vector_store %arg16[%c0_119, %c384], %146 {strides = array<i32>} : memref<32x512xf32, #tpu.memory_space<vmem>>, vector<32x128xf32>,
    %c0_120 = arith.constant 0 : index
    %c0_121 = arith.constant 0 : index
    %148 = vector.load %arg16[%c0_120, %c0_121] : memref<32x512xf32, #tpu.memory_space<vmem>>, vector<32x512xf32>
    %c0_122 = arith.constant 0 : index
    %c0_123 = arith.constant 0 : index
    %149 = vector.load %arg12[%c0_122, %c0_123] : memref<64x1xf32, #tpu.memory_space<vmem>>, vector<64x1xf32>
    %150 = arith.truncf %148 : vector<32x512xf32> to vector<32x512xbf16>
    %c0_124 = arith.constant 0 : index
    %c0_125 = arith.constant 0 : index
    %c0_126 = arith.constant 0 : index
    %151 = vector.load %arg7[%c0_124, %c0_125, %c0_126] : memref<4x64x32xbf16, #tpu.memory_space<vmem>>, vector<1x64x32xbf16>
    %152 = vector.shape_cast %151 : vector<1x64x32xbf16> to vector<64x32xbf16>
    %cst_127 = arith.constant dense<0.000000e+00> : vector<64x512xf32>
    %153 = tpu.matmul %152, %150, %cst_127 {dimension_numbers = #tpu.dot_dimension_numbers<[1], [0], [0], [1], [0, 0, 1, 1], [], []>} : vector<64x32xbf16>, vector<32x512xbf16>, vector<64x512xf32> -> vector<64x512xf32>
    %154 = vector.broadcast %149 : vector<64x1xf32> to vector<64x512xf32>
    %155 = arith.addf %153, %154 : vector<64x512xf32>
    %cst_128 = arith.constant 0.000000e+00 : f32
    %156 = vector.broadcast %cst_128 : f32 to vector<64x512xf32>
    %157 = arith.maximumf %155, %156 : vector<64x512xf32>
    %c0_129 = arith.constant 0 : index
    %c0_130 = arith.constant 0 : index
    %158 = vector.load %arg14[%c0_129, %c0_130] : memref<64x2048xf32, #tpu.memory_space<vmem>>, vector<64x512xf32>
    tpu.vector_store %arg14[%c0_129, %c0_130], %157 {strides = array<i32>} : memref<64x2048xf32, #tpu.memory_space<vmem>>, vector<64x512xf32>,
    %c1_131 = arith.constant 1 : index
    %c0_132 = arith.constant 0 : index
    %c0_133 = arith.constant 0 : index
    %159 = vector.load %arg7[%c1_131, %c0_132, %c0_133] : memref<4x64x32xbf16, #tpu.memory_space<vmem>>, vector<1x64x32xbf16>
    %160 = vector.shape_cast %159 : vector<1x64x32xbf16> to vector<64x32xbf16>
    %cst_134 = arith.constant dense<0.000000e+00> : vector<64x512xf32>
    %161 = tpu.matmul %160, %150, %cst_134 {dimension_numbers = #tpu.dot_dimension_numbers<[1], [0], [0], [1], [0, 0, 1, 1], [], []>} : vector<64x32xbf16>, vector<32x512xbf16>, vector<64x512xf32> -> vector<64x512xf32>
    %162 = vector.broadcast %149 : vector<64x1xf32> to vector<64x512xf32>
    %163 = arith.addf %161, %162 : vector<64x512xf32>
    %cst_135 = arith.constant 0.000000e+00 : f32
    %164 = vector.broadcast %cst_135 : f32 to vector<64x512xf32>
    %165 = arith.maximumf %163, %164 : vector<64x512xf32>
    %c0_136 = arith.constant 0 : index
    %c512 = arith.constant 512 : index
    %166 = vector.load %arg14[%c0_136, %c512] : memref<64x2048xf32, #tpu.memory_space<vmem>>, vector<64x512xf32>
    tpu.vector_store %arg14[%c0_136, %c512], %165 {strides = array<i32>} : memref<64x2048xf32, #tpu.memory_space<vmem>>, vector<64x512xf32>,
    %c2_137 = arith.constant 2 : index
    %c0_138 = arith.constant 0 : index
    %c0_139 = arith.constant 0 : index
    %167 = vector.load %arg7[%c2_137, %c0_138, %c0_139] : memref<4x64x32xbf16, #tpu.memory_space<vmem>>, vector<1x64x32xbf16>
    %168 = vector.shape_cast %167 : vector<1x64x32xbf16> to vector<64x32xbf16>
    %cst_140 = arith.constant dense<0.000000e+00> : vector<64x512xf32>
    %169 = tpu.matmul %168, %150, %cst_140 {dimension_numbers = #tpu.dot_dimension_numbers<[1], [0], [0], [1], [0, 0, 1, 1], [], []>} : vector<64x32xbf16>, vector<32x512xbf16>, vector<64x512xf32> -> vector<64x512xf32>
    %170 = vector.broadcast %149 : vector<64x1xf32> to vector<64x512xf32>
    %171 = arith.addf %169, %170 : vector<64x512xf32>
    %cst_141 = arith.constant 0.000000e+00 : f32
    %172 = vector.broadcast %cst_141 : f32 to vector<64x512xf32>
    %173 = arith.maximumf %171, %172 : vector<64x512xf32>
    %c0_142 = arith.constant 0 : index
    %c1024 = arith.constant 1024 : index
    %174 = vector.load %arg14[%c0_142, %c1024] : memref<64x2048xf32, #tpu.memory_space<vmem>>, vector<64x512xf32>
    tpu.vector_store %arg14[%c0_142, %c1024], %173 {strides = array<i32>} : memref<64x2048xf32, #tpu.memory_space<vmem>>, vector<64x512xf32>,
    %c3_143 = arith.constant 3 : index
    %c0_144 = arith.constant 0 : index
    %c0_145 = arith.constant 0 : index
    %175 = vector.load %arg7[%c3_143, %c0_144, %c0_145] : memref<4x64x32xbf16, #tpu.memory_space<vmem>>, vector<1x64x32xbf16>
    %176 = vector.shape_cast %175 : vector<1x64x32xbf16> to vector<64x32xbf16>
    %cst_146 = arith.constant dense<0.000000e+00> : vector<64x512xf32>
    %177 = tpu.matmul %176, %150, %cst_146 {dimension_numbers = #tpu.dot_dimension_numbers<[1], [0], [0], [1], [0, 0, 1, 1], [], []>} : vector<64x32xbf16>, vector<32x512xbf16>, vector<64x512xf32> -> vector<64x512xf32>
    %178 = vector.broadcast %149 : vector<64x1xf32> to vector<64x512xf32>
    %179 = arith.addf %177, %178 : vector<64x512xf32>
    %cst_147 = arith.constant 0.000000e+00 : f32
    %180 = vector.broadcast %cst_147 : f32 to vector<64x512xf32>
    %181 = arith.maximumf %179, %180 : vector<64x512xf32>
    %c0_148 = arith.constant 0 : index
    %c1536 = arith.constant 1536 : index
    %182 = vector.load %arg14[%c0_148, %c1536] : memref<64x2048xf32, #tpu.memory_space<vmem>>, vector<64x512xf32>
    tpu.vector_store %arg14[%c0_148, %c1536], %181 {strides = array<i32>} : memref<64x2048xf32, #tpu.memory_space<vmem>>, vector<64x512xf32>,
    return
  }
}

module attributes {stable_mosaic.version = 11 : i64} {
  func.func @_mm_t_kernel(%arg0: i32, %arg1: memref<3x576xbf16, #tpu.memory_space<vmem>>, %arg2: memref<576x512xbf16, #tpu.memory_space<vmem>>, %arg3: memref<3x1xf32, #tpu.memory_space<vmem>>, %arg4: memref<3x512xf32, #tpu.memory_space<vmem>>) attributes {dimension_semantics = [#tpu.dimension_semantics<parallel>], iteration_bounds = array<i64: 4>, scalar_prefetch = 0 : i64, scratch_operands = 0 : i64, tpu.core_type = #tpu.core_type<tc>, window_params = [{pipeline_mode = #tpu.pipeline_mode<synchronous>, transform_indices = @transform_0, window_bounds = array<i64: 3, 576>}, {transform_indices = @transform_1, window_bounds = array<i64: 576, 512>}, {pipeline_mode = #tpu.pipeline_mode<synchronous>, transform_indices = @transform_2, window_bounds = array<i64: 3, 1>}, {transform_indices = @transform_3, window_bounds = array<i64: 3, 512>}]} {
    %c0 = arith.constant 0 : index
    %c0_0 = arith.constant 0 : index
    %0 = vector.load %arg1[%c0, %c0_0] : memref<3x576xbf16, #tpu.memory_space<vmem>>, vector<3x576xbf16>
    %c0_1 = arith.constant 0 : index
    %c0_2 = arith.constant 0 : index
    %1 = vector.load %arg2[%c0_1, %c0_2] : memref<576x512xbf16, #tpu.memory_space<vmem>>, vector<576x512xbf16>
    %cst = arith.constant dense<0.000000e+00> : vector<3x512xf32>
    %2 = tpu.matmul %0, %1, %cst {dimension_numbers = #tpu.dot_dimension_numbers<[1], [0], [0], [1], [0, 0, 1, 1], [], []>} : vector<3x576xbf16>, vector<576x512xbf16>, vector<3x512xf32> -> vector<3x512xf32>
    %c0_3 = arith.constant 0 : index
    %c0_4 = arith.constant 0 : index
    %3 = vector.load %arg3[%c0_3, %c0_4] : memref<3x1xf32, #tpu.memory_space<vmem>>, vector<3x1xf32>
    %4 = vector.broadcast %3 : vector<3x1xf32> to vector<3x512xf32>
    %5 = arith.addf %2, %4 : vector<3x512xf32>
    %c0_5 = arith.constant 0 : index
    %c0_6 = arith.constant 0 : index
    %6 = vector.load %arg4[%c0_5, %c0_6] : memref<3x512xf32, #tpu.memory_space<vmem>>, vector<3x512xf32>
    tpu.vector_store %arg4[%c0_5, %c0_6], %5 {strides = array<i32>} : memref<3x512xf32, #tpu.memory_space<vmem>>, vector<3x512xf32>,
    return
  }
  func.func @transform_0(%arg0: i32) -> (i32, i32) {
    %c0_i32 = arith.constant 0 : i32
    %c0_i32_0 = arith.constant 0 : i32
    %c0_i32_1 = arith.constant 0 : i32
    return %c0_i32, %c0_i32_0 : i32, i32
  }
  func.func @transform_1(%arg0: i32) -> (i32, i32) {
    %c0_i32 = arith.constant 0 : i32
    %c0_i32_0 = arith.constant 0 : i32
    return %c0_i32, %arg0 : i32, i32
  }
  func.func @transform_2(%arg0: i32) -> (i32, i32) {
    %c0_i32 = arith.constant 0 : i32
    %c0_i32_0 = arith.constant 0 : i32
    %c0_i32_1 = arith.constant 0 : i32
    return %c0_i32, %c0_i32_0 : i32, i32
  }
  func.func @transform_3(%arg0: i32) -> (i32, i32) {
    %c0_i32 = arith.constant 0 : i32
    %c0_i32_0 = arith.constant 0 : i32
    return %c0_i32, %arg0 : i32, i32
  }
}

</mosaic_0001>

<bundles_post_ra>
// kernel: ae2_forward.6
= control target key start
LH: loop header
LB: loop body
LE: loop exit
PB: predicated region body
PF: predicated region fallthrough
CT: control target
= control target key end

     0   :  { %8 = vsyncpa [#allocation3], 0  ;;  %s809_s12 = smov 0   ;;  %s976_s0 = inlined_call_operand.vmem [shape: bf16[512,27], index: 0, kind: input, shape index: {}]   ;;  %s977_s1 = inlined_call_operand.vmem [shape: bf16[27,64], index: 1, kind: input, shape index: {}]   ;;  %s978_s2 = inlined_call_operand.hbm [shape: f32[1,64], index: 2, kind: input, shape index: {}]   ;;  %s979_s3 = inlined_call_operand.vmem [shape: f32[512,64], index: 3, kind: output, shape index: {}]  }
   0x1 LB: > { %s599_s13 = sadd.s32 4294967295, %s785_s12   ;;  %p601_p0 = scmp.ge.s32.totalorder %s785_s12, 1  ;;  %s785_s12 = sphi %s809_s12, %s14_s12  }
   0x2   : > { %p113_p1 = scmp.lt.s32.totalorder %s785_s12, 3  ;;  %s128_s16 = sshll.u32 %s978_s2, 4  ;;  %s129_s16 = int_to_ptr.hbm [resolvable:$true] %s128_s16 }
   0x3   : > { %p732_p3 = scmp.eq.s32.totalorder %s599_s13, 0  ;;  %s787_s17 = smov [#allocation2]  }
   0x4   : > { %p114_p2 = pnand %p601_p0, %p113_p1  ;;  %s130_s18 = sshll.u32 %s787_s17, 4  ;;  %s131_s18 = int_to_ptr.vmem [resolvable:$true] %s130_s18 }
   0x6   : > { %p728_p4 = pneg %p114_p2  ;;  %152 = sbr.rel (%p114_p2) target bundleno = 220 (0xdc), region = 32 }
   0x8   : > { %p729_p5 = pnand %p732_p3, %p728_p4 }
   0xa   : > { %731 = dma.hbm_to_vmem [thread:$0]  (!%p729_p5), %s129_s16, 16, %s131_s18, [#allocation3]  }
   0xb   : > { %780 = dma.done.wait (%p732_p3), [#allocation3], 16  }
   0xc   : > { %782 = vsyncadd (%p732_p3), [#allocation3], 4294967280  ;;  %s606_s19 = sshll.u32 %s599_s13, 5  ;;  %vm370_vm0 = vcmask 1044480   ;;  %vm371_vm1 = vcmask 1045504   ;;  %v788_v0 = vmov 65535  }
   0xd   : > { %p178_p6 = scmp.lt.s32.totalorder %s606_s19, 63  ;;  %v372_v1 = vsel %vm370_vm0, 4294967295, %v788_v0  ;;  %v680_v2 = vld [vmem:[%s977_s1 + $0x8] sm:$0xf]  ;;  %v717_v3 = vld [vmem:[%s977_s1 + $0x8] sm:$0x30] }
   0xe   : > { %v373_v4 = vsel %vm371_vm1, %v372_v1, 0  ;;  %v681_v5 = vor.u32 %v717_v3, %v680_v2  ;;  %v716_v7 = vld [vmem:[%s977_s1] sm:$0xff]  ;;  %vm321_vm2 = vcmask 220160   ;;  %vm498_vm3 = vcmask 523264  }
   0xf   : > { %s981_s19 = smov (!%p178_p6, %s606_s19), 63  ;;  %v869_v24 = vld [vmem:[#allocation2] ss:$0 sm:$0xff] }
  0x10   : > { %s607_s24 = sshll.u32 %s981_s19, 2  ;;  %v375_v6 = vand.u32 %v681_v5, %v373_v4  ;;  %s609_s30 = sshll.u32 %s981_s19, 3 }
  0x11   : > { %s835_s29 = scalar_lea.vmem %s976_s0, %s607_s24  ;;  %s877_s6 = scalar_lea.vmem %s979_s3, %s609_s30 }
  0x12   : > { %383 = vmatpush.bf16.msra.mxu0 %v375_v6  ;;  %718 = vmatpush.bf16.msra.mxu1 %v375_v6  ;;  %v700_v8 = vld [vmem:[%s835_s29] sm:$0xff]  ;;  %v701_v12 = vld [vmem:[%s835_s29 + $0x8] sm:$0xff]  ;;  %v702_v16 = vld [vmem:[%s835_s29 + $0x10] sm:$0xff] }
  0x13   : > { %719 = vmatpush.bf16.msra.mxu2 %v375_v6  ;;  %720 = vmatpush.bf16.msra.mxu3 %v375_v6  ;;  %v704_v9 = vld [vmem:[%s835_s29 + $0x20] sm:$0xff]  ;;  %v705_v13 = vld [vmem:[%s835_s29 + $0x28] sm:$0xff]  ;;  %v706_v17 = vld [vmem:[%s835_s29 + $0x30] sm:$0xff] }
  0x14   : > { %v708_v10 = vld [vmem:[%s835_s29 + $0x40] sm:$0xff]  ;;  %v709_v14 = vld [vmem:[%s835_s29 + $0x48] sm:$0xff]  ;;  %v710_v18 = vld [vmem:[%s835_s29 + $0x50] sm:$0xff] }
  0x15   : > { %v712_v11 = vld [vmem:[%s835_s29 + $0x60] sm:$0xff]  ;;  %v713_v15 = vld [vmem:[%s835_s29 + $0x68] sm:$0xff]  ;;  %v714_v19 = vld [vmem:[%s835_s29 + $0x70] sm:$0xff] }
  0x16   : > { %384 = vmatpush.bf16.msra.mxu0 %v716_v7  ;;  %721 = vmatpush.bf16.msra.mxu1 %v716_v7  ;;  %v703_v20 = vld [vmem:[%s835_s29 + $0x18] sm:$0xff] }
  0x17   : > { %722 = vmatpush.bf16.msra.mxu2 %v716_v7  ;;  %723 = vmatpush.bf16.msra.mxu3 %v716_v7  ;;  %v707_v21 = vld [vmem:[%s835_s29 + $0x38] sm:$0xff] }
  0x18   : > { %v711_v22 = vld [vmem:[%s835_s29 + $0x58] sm:$0xff] }
  0x19   : > { %682 = vmatmul.msk.bf16.vlgmr.msra.gmra.mxu0 %vm321_vm2, %v700_v8  ;;  %686 = vmatmul.msk.bf16.vlgmr.msra.gmra.mxu1 %vm321_vm2, %v704_v9  ;;  %v715_v23 = vld [vmem:[%s835_s29 + $0x78] sm:$0xff] }
  0x1a   : > { %690 = vmatmul.msk.bf16.vlgmr.msra.gmra.mxu2 %vm321_vm2, %v708_v10  ;;  %694 = vmatmul.msk.bf16.vlgmr.msra.gmra.mxu3 %vm321_vm2, %v712_v11 }
  0x29   : > { %683 = vmatmul.msk.bf16.gmra.mxu0 %vm321_vm2, %v701_v12  ;;  %687 = vmatmul.msk.bf16.gmra.mxu1 %vm321_vm2, %v705_v13 }
  0x2a   : > { %691 = vmatmul.msk.bf16.gmra.mxu2 %vm321_vm2, %v709_v14  ;;  %695 = vmatmul.msk.bf16.gmra.mxu3 %vm321_vm2, %v713_v15 }
  0x39   : > { %684 = vmatmul.msk.bf16.gmra.mxu0 %vm321_vm2, %v702_v16  ;;  %688 = vmatmul.msk.bf16.gmra.mxu1 %vm321_vm2, %v706_v17 }
  0x3a   : > { %692 = vmatmul.msk.bf16.gmra.mxu2 %vm321_vm2, %v710_v18  ;;  %696 = vmatmul.msk.bf16.gmra.mxu3 %vm321_vm2, %v714_v19 }
  0x49   : > { %685 = vmatmul.msk.bf16.gmra.mxu0 %vm321_vm2, %v703_v20  ;;  %689 = vmatmul.msk.bf16.gmra.mxu1 %vm321_vm2, %v707_v21 }
  0x4a   : > { %693 = vmatmul.msk.bf16.gmra.mxu2 %vm321_vm2, %v711_v22  ;;  %697 = vmatmul.msk.bf16.gmra.mxu3 %vm321_vm2, %v715_v23 }
  0x96   : > { %v386_v25 = vpop.f32.mrf.mxu0  ;;  %v406_v26 = vpop.f32.mrf.mxu1 }
  0x97   : > { %v387_v27 = vadd.f32 %v869_v24, %v386_v25  ;;  %v407_v28 = vadd.f32 %v869_v24, %v406_v26 }
  0x99   : > { %v466_v29 = vmax.f32 %v387_v27, 0.0  ;;  %v474_v30 = vmax.f32 %v407_v28, 0.0 }
  0x9b   : > { %499 = vst.msk [vmem:[%s877_s6] sm:$0xff] %vm498_vm3, %v466_v29 }
  0x9c   : > { %507 = vst.msk [vmem:[%s877_s6 + $0x40] sm:$0xff] %vm498_vm3, %v474_v30 }
  0x9d   : > { %v426_v31 = vpop.f32.mrf.mxu2  ;;  %v446_v32 = vpop.f32.mrf.mxu3 }
  0x9e   : > { %v427_v33 = vadd.f32 %v869_v24, %v426_v31  ;;  %v447_v34 = vadd.f32 %v869_v24, %v446_v32  ;;  %v388_v35 = vpop.f32.mrf.mxu0  ;;  %v408_v36 = vpop.f32.mrf.mxu1 }
  0x9f   : > { %v389_v37 = vadd.f32 %v869_v24, %v388_v35  ;;  %v409_v38 = vadd.f32 %v869_v24, %v408_v36 }
  0xa0   : > { %v482_v39 = vmax.f32 %v427_v33, 0.0  ;;  %v490_v40 = vmax.f32 %v447_v34, 0.0 }
  0xa1   : > { %v467_v41 = vmax.f32 %v389_v37, 0.0  ;;  %v475_v42 = vmax.f32 %v409_v38, 0.0 }
  0xa2   : > { %515 = vst.msk [vmem:[%s877_s6 + $0x80] sm:$0xff] %vm498_vm3, %v482_v39 }
  0xa3   : > { %523 = vst.msk [vmem:[%s877_s6 + $0xc0] sm:$0xff] %vm498_vm3, %v490_v40 }
  0xa4   : > { %500 = vst.msk [vmem:[%s877_s6 + $0x8] sm:$0xff] %vm498_vm3, %v467_v41 }
  0xa5   : > { %508 = vst.msk [vmem:[%s877_s6 + $0x48] sm:$0xff] %vm498_vm3, %v475_v42  ;;  %v428_v43 = vpop.f32.mrf.mxu2  ;;  %v448_v44 = vpop.f32.mrf.mxu3 }
  0xa6   : > { %v429_v45 = vadd.f32 %v869_v24, %v428_v43  ;;  %v449_v46 = vadd.f32 %v869_v24, %v448_v44  ;;  %v391_v47 = vpop.f32.mrf.mxu0  ;;  %v411_v48 = vpop.f32.mrf.mxu1 }
  0xa7   : > { %v392_v49 = vadd.f32 %v869_v24, %v391_v47  ;;  %v412_v50 = vadd.f32 %v869_v24, %v411_v48 }
  0xa8   : > { %v483_v51 = vmax.f32 %v429_v45, 0.0  ;;  %v491_v52 = vmax.f32 %v449_v46, 0.0 }
  0xa9   : > { %v468_v53 = vmax.f32 %v392_v49, 0.0  ;;  %v476_v54 = vmax.f32 %v412_v50, 0.0 }
  0xaa   : > { %516 = vst.msk [vmem:[%s877_s6 + $0x88] sm:$0xff] %vm498_vm3, %v483_v51 }
  0xab   : > { %524 = vst.msk [vmem:[%s877_s6 + $0xc8] sm:$0xff] %vm498_vm3, %v491_v52 }
  0xac   : > { %501 = vst.msk [vmem:[%s877_s6 + $0x10] sm:$0xff] %vm498_vm3, %v468_v53 }
  0xad   : > { %509 = vst.msk [vmem:[%s877_s6 + $0x50] sm:$0xff] %vm498_vm3, %v476_v54  ;;  %v431_v55 = vpop.f32.mrf.mxu2  ;;  %v451_v56 = vpop.f32.mrf.mxu3 }
  0xae   : > { %v432_v57 = vadd.f32 %v869_v24, %v431_v55  ;;  %v452_v58 = vadd.f32 %v869_v24, %v451_v56  ;;  %v393_v59 = vpop.f32.mrf.mxu0  ;;  %v413_v60 = vpop.f32.mrf.mxu1 }
  0xaf   : > { %v394_v61 = vadd.f32 %v869_v24, %v393_v59  ;;  %v414_v62 = vadd.f32 %v869_v24, %v413_v60 }
  0xb0   : > { %v484_v63 = vmax.f32 %v432_v57, 0.0  ;;  %v492_v0 = vmax.f32 %v452_v58, 0.0 }
  0xb1   : > { %v469_v1 = vmax.f32 %v394_v61, 0.0  ;;  %v477_v2 = vmax.f32 %v414_v62, 0.0 }
  0xb2   : > { %517 = vst.msk [vmem:[%s877_s6 + $0x90] sm:$0xff] %vm498_vm3, %v484_v63 }
  0xb3   : > { %525 = vst.msk [vmem:[%s877_s6 + $0xd0] sm:$0xff] %vm498_vm3, %v492_v0 }
  0xb4   : > { %502 = vst.msk [vmem:[%s877_s6 + $0x18] sm:$0xff] %vm498_vm3, %v469_v1 }
  0xb5   : > { %510 = vst.msk [vmem:[%s877_s6 + $0x58] sm:$0xff] %vm498_vm3, %v477_v2  ;;  %v433_v3 = vpop.f32.mrf.mxu2  ;;  %v453_v4 = vpop.f32.mrf.mxu3 }
  0xb6   : > { %v434_v5 = vadd.f32 %v869_v24, %v433_v3  ;;  %v454_v6 = vadd.f32 %v869_v24, %v453_v4  ;;  %v396_v7 = vpop.f32.mrf.mxu0  ;;  %v416_v8 = vpop.f32.mrf.mxu1 }
  0xb7   : > { %v397_v9 = vadd.f32 %v869_v24, %v396_v7  ;;  %v417_v10 = vadd.f32 %v869_v24, %v416_v8 }
  0xb8   : > { %v485_v11 = vmax.f32 %v434_v5, 0.0  ;;  %v493_v12 = vmax.f32 %v454_v6, 0.0 }
  0xb9   : > { %v470_v13 = vmax.f32 %v397_v9, 0.0  ;;  %v478_v14 = vmax.f32 %v417_v10, 0.0 }
  0xba   : > { %518 = vst.msk [vmem:[%s877_s6 + $0x98] sm:$0xff] %vm498_vm3, %v485_v11 }
  0xbb   : > { %526 = vst.msk [vmem:[%s877_s6 + $0xd8] sm:$0xff] %vm498_vm3, %v493_v12 }
  0xbc   : > { %503 = vst.msk [vmem:[%s877_s6 + $0x20] sm:$0xff] %vm498_vm3, %v470_v13 }
  0xbd   : > { %511 = vst.msk [vmem:[%s877_s6 + $0x60] sm:$0xff] %vm498_vm3, %v478_v14  ;;  %v436_v15 = vpop.f32.mrf.mxu2  ;;  %v456_v16 = vpop.f32.mrf.mxu3 }
  0xbe   : > { %v437_v17 = vadd.f32 %v869_v24, %v436_v15  ;;  %v457_v18 = vadd.f32 %v869_v24, %v456_v16  ;;  %v398_v19 = vpop.f32.mrf.mxu0  ;;  %v418_v20 = vpop.f32.mrf.mxu1 }
  0xbf   : > { %v399_v21 = vadd.f32 %v869_v24, %v398_v19  ;;  %v419_v22 = vadd.f32 %v869_v24, %v418_v20 }
  0xc0   : > { %v486_v23 = vmax.f32 %v437_v17, 0.0  ;;  %v494_v25 = vmax.f32 %v457_v18, 0.0 }
  0xc1   : > { %v471_v26 = vmax.f32 %v399_v21, 0.0  ;;  %v479_v27 = vmax.f32 %v419_v22, 0.0 }
  0xc2   : > { %519 = vst.msk [vmem:[%s877_s6 + $0xa0] sm:$0xff] %vm498_vm3, %v486_v23 }
  0xc3   : > { %527 = vst.msk [vmem:[%s877_s6 + $0xe0] sm:$0xff] %vm498_vm3, %v494_v25 }
  0xc4   : > { %504 = vst.msk [vmem:[%s877_s6 + $0x28] sm:$0xff] %vm498_vm3, %v471_v26 }
  0xc5   : > { %512 = vst.msk [vmem:[%s877_s6 + $0x68] sm:$0xff] %vm498_vm3, %v479_v27  ;;  %v438_v28 = vpop.f32.mrf.mxu2  ;;  %v458_v29 = vpop.f32.mrf.mxu3 }
  0xc6   : > { %v439_v30 = vadd.f32 %v869_v24, %v438_v28  ;;  %v459_v31 = vadd.f32 %v869_v24, %v458_v29  ;;  %v401_v32 = vpop.f32.mrf.mxu0  ;;  %v421_v33 = vpop.f32.mrf.mxu1 }
  0xc7   : > { %v402_v34 = vadd.f32 %v869_v24, %v401_v32  ;;  %v422_v35 = vadd.f32 %v869_v24, %v421_v33 }
  0xc8   : > { %v487_v36 = vmax.f32 %v439_v30, 0.0  ;;  %v495_v37 = vmax.f32 %v459_v31, 0.0 }
  0xc9   : > { %v472_v38 = vmax.f32 %v402_v34, 0.0  ;;  %v480_v39 = vmax.f32 %v422_v35, 0.0 }
  0xca   : > { %520 = vst.msk [vmem:[%s877_s6 + $0xa8] sm:$0xff] %vm498_vm3, %v487_v36 }
  0xcb   : > { %528 = vst.msk [vmem:[%s877_s6 + $0xe8] sm:$0xff] %vm498_vm3, %v495_v37 }
  0xcc   : > { %505 = vst.msk [vmem:[%s877_s6 + $0x30] sm:$0xff] %vm498_vm3, %v472_v38 }
  0xcd   : > { %513 = vst.msk [vmem:[%s877_s6 + $0x70] sm:$0xff] %vm498_vm3, %v480_v39  ;;  %v441_v40 = vpop.f32.mrf.mxu2  ;;  %v461_v41 = vpop.f32.mrf.mxu3 }
  0xce   : > { %v442_v42 = vadd.f32 %v869_v24, %v441_v40  ;;  %v462_v43 = vadd.f32 %v869_v24, %v461_v41  ;;  %v403_v44 = vpop.f32.mrf.mxu0  ;;  %v423_v45 = vpop.f32.mrf.mxu1 }
  0xcf   : > { %v404_v46 = vadd.f32 %v869_v24, %v403_v44  ;;  %v424_v47 = vadd.f32 %v869_v24, %v423_v45 }
  0xd0   : > { %v488_v48 = vmax.f32 %v442_v42, 0.0  ;;  %v496_v49 = vmax.f32 %v462_v43, 0.0 }
  0xd1   : > { %v473_v50 = vmax.f32 %v404_v46, 0.0  ;;  %v481_v51 = vmax.f32 %v424_v47, 0.0 }
  0xd2   : > { %521 = vst.msk [vmem:[%s877_s6 + $0xb0] sm:$0xff] %vm498_vm3, %v488_v48 }
  0xd3   : > { %529 = vst.msk [vmem:[%s877_s6 + $0xf0] sm:$0xff] %vm498_vm3, %v496_v49 }
  0xd4   : > { %506 = vst.msk [vmem:[%s877_s6 + $0x38] sm:$0xff] %vm498_vm3, %v473_v50 }
  0xd5   : > { %514 = vst.msk [vmem:[%s877_s6 + $0x78] sm:$0xff] %vm498_vm3, %v481_v51  ;;  %v443_v52 = vpop.f32.mrf.mxu2  ;;  %v463_v53 = vpop.f32.mrf.mxu3 }
  0xd6   : > { %v444_v54 = vadd.f32 %v869_v24, %v443_v52  ;;  %v464_v55 = vadd.f32 %v869_v24, %v463_v53 }
  0xd8   : > { %v489_v56 = vmax.f32 %v444_v54, 0.0  ;;  %v497_v57 = vmax.f32 %v464_v55, 0.0 }
  0xda   : > { %522 = vst.msk [vmem:[%s877_s6 + $0xb8] sm:$0xff] %vm498_vm3, %v489_v56 }
  0xdb   : > { %530 = vst.msk [vmem:[%s877_s6 + $0xf8] sm:$0xff] %vm498_vm3, %v497_v57 }
  0xdc PF: > { %s14_s12 = sadd.s32 1, %s785_s12  }
  0xdd   : > { %p11_p7 = scmp.ge.s32.totalorder %s14_s12, 4  }
  0xdf   :  { %13 = sbr.rel (!%p11_p7) target bundleno = 1 (0x1), region = 67 }
  0xe4   :  { %553 = vsyncpa [#allocation3], 1 }
  0xe5   :  { %555 = vsyncpa [#allocation3 + $0x1], 1 }

// kernel: ae2_forward.7
= control target key start
LH: loop header
LB: loop body
LE: loop exit
PB: predicated region body
PF: predicated region fallthrough
CT: control target
= control target key end

     0   :  { %vm555_vm0 = vcmask 523264   ;;  %vm841_vm1 = vcmask 261120   ;;  %s1772_s1 = inlined_call_operand.vmem [shape: bf16[576,32], index: 1, kind: input, shape index: {}]   ;;  %s1773_s2 = inlined_call_operand.vmem [shape: f32[1,32], index: 2, kind: input, shape index: {}]   ;;  %s1774_s0 = inlined_call_operand.vmem [shape: bf16[128,576], index: 0, kind: input, shape index: {}]   ;;  %s1775_s3 = inlined_call_operand.vmem [shape: f32[128,32], index: 3, kind: output, shape index: {}]  }
   0x1   :  { %v1221_v0 = vld [vmem:[%s1772_s1 + $0x38] sm:$0xff]  ;;  %v1220_v1 = vld [vmem:[%s1772_s1 + $0x30] sm:$0xff]  ;;  %v1219_v2 = vld [vmem:[%s1772_s1 + $0x28] sm:$0xff] }
   0x2   :  { %1250 = vmatpush.bf16.msra.mxu1 %v1221_v0  ;;  %1251 = vmatpush.bf16.msra.mxu2 %v1221_v0  ;;  %v1218_v3 = vld [vmem:[%s1772_s1 + $0x20] sm:$0xff]  ;;  %v1217_v4 = vld [vmem:[%s1772_s1 + $0x18] sm:$0xff]  ;;  %v1216_v5 = vld [vmem:[%s1772_s1 + $0x10] sm:$0xff] }
   0x3   :  { %1252 = vmatpush.bf16.msra.mxu3 %v1221_v0  ;;  %580 = vmatpush.bf16.msra.mxu0 %v1221_v0  ;;  %v1215_v6 = vld [vmem:[%s1772_s1 + $0x8] sm:$0xff]  ;;  %v1214_v7 = vld [vmem:[%s1772_s1] sm:$0xff]  ;;  %v904_v8 = vld [vmem:[%s1774_s0 + $0x50] sm:$0xf] }
   0x4   :  { %v1186_v9 = vld [vmem:[%s1774_s0 + $0x60] sm:$0xf0]  ;;  %v944_v10 = vld [vmem:[%s1774_s0 + $0xa0] sm:$0xf]  ;;  %v1196_v11 = vld [vmem:[%s1774_s0 + $0xb0] sm:$0xf0] }
   0x5   :  { %v984_v12 = vld [vmem:[%s1774_s0 + $0xf0] sm:$0xf]  ;;  %v1206_v13 = vld [vmem:[%s1774_s0 + $0x100] sm:$0xf0]  ;;  %v864_v14 = vld [vmem:[%s1774_s0] sm:$0xf]  ;;  %v905_v18 = vor.u32 %v1186_v9, %v904_v8  ;;  %v945_v19 = vor.u32 %v1196_v11, %v944_v10 }
   0x6   :  { %1253 = vmatpush.bf16.msra.mxu1 %v1220_v1  ;;  %1254 = vmatpush.bf16.msra.mxu2 %v1220_v1  ;;  %v1176_v15 = vld [vmem:[%s1774_s0 + $0x10] sm:$0xf0]  ;;  %v1237_v16 = vld [vmem:[%s1772_s1 + $0xb8] sm:$0xff]  ;;  %v985_v20 = vor.u32 %v1206_v13, %v984_v12  ;;  %v1235_v28 = vld [vmem:[%s1772_s1 + $0xa8] sm:$0xff] }
   0x7   :  { %1255 = vmatpush.bf16.msra.mxu3 %v1220_v1  ;;  %581 = vmatpush.bf16.msra.mxu0 %v1220_v1  ;;  %v1229_v17 = vld [vmem:[%s1772_s1 + $0x78] sm:$0xff]  ;;  %v865_v21 = vor.u32 %v1176_v15, %v864_v14  ;;  %v1236_v24 = vld [vmem:[%s1772_s1 + $0xb0] sm:$0xff]  ;;  %v1227_v29 = vld [vmem:[%s1772_s1 + $0x68] sm:$0xff] }
   0x8   :  { %v1245_v22 = vld [vmem:[%s1772_s1 + $0xf8] sm:$0xff]  ;;  %v1228_v25 = vld [vmem:[%s1772_s1 + $0x70] sm:$0xff]  ;;  %v1243_v30 = vld [vmem:[%s1772_s1 + $0xe8] sm:$0xff] }
   0x9   :  { %v1249_v23 = vld [vmem:[%s1772_s1 + $0x118] sm:$0xff]  ;;  %v1244_v26 = vld [vmem:[%s1772_s1 + $0xf0] sm:$0xff]  ;;  %v1247_v31 = vld [vmem:[%s1772_s1 + $0x108] sm:$0xff] }
   0xa   :  { %1256 = vmatpush.bf16.msra.mxu1 %v1219_v2  ;;  %1257 = vmatpush.bf16.msra.mxu2 %v1219_v2  ;;  %v1248_v27 = vld [vmem:[%s1772_s1 + $0x110] sm:$0xff]  ;;  %v1234_v32 = vld [vmem:[%s1772_s1 + $0xa0] sm:$0xff]  ;;  %v924_v35 = vld [vmem:[%s1774_s0 + $0x78] sm:$0xf] }
   0xb   :  { %1258 = vmatpush.bf16.msra.mxu3 %v1219_v2  ;;  %582 = vmatpush.bf16.msra.mxu0 %v1219_v2  ;;  %v1226_v33 = vld [vmem:[%s1772_s1 + $0x60] sm:$0xff]  ;;  %v1191_v36 = vld [vmem:[%s1774_s0 + $0x88] sm:$0xf0]  ;;  %v964_v37 = vld [vmem:[%s1774_s0 + $0xc8] sm:$0xf] }
   0xc   :  { %v1242_v34 = vld [vmem:[%s1772_s1 + $0xe0] sm:$0xff]  ;;  %v1201_v38 = vld [vmem:[%s1774_s0 + $0xd8] sm:$0xf0]  ;;  %v1004_v39 = vld [vmem:[%s1774_s0 + $0x118] sm:$0xf]  ;;  %v925_v46 = vor.u32 %v1191_v36, %v924_v35 }
   0xd   :  { %v1211_v40 = vld [vmem:[%s1774_s0 + $0x128] sm:$0xf0]  ;;  %v884_v41 = vld [vmem:[%s1774_s0 + $0x28] sm:$0xf]  ;;  %v1181_v42 = vld [vmem:[%s1774_s0 + $0x38] sm:$0xf0]  ;;  %v965_v47 = vor.u32 %v1201_v38, %v964_v37 }
   0xe   :  { %1259 = vmatpush.bf16.msra.mxu1 %v1218_v3  ;;  %1260 = vmatpush.bf16.msra.mxu2 %v1218_v3  ;;  %v1246_v43 = vld [vmem:[%s1772_s1 + $0x100] sm:$0xff]  ;;  %v1233_v44 = vld [vmem:[%s1772_s1 + $0x98] sm:$0xff]  ;;  %v1005_v48 = vor.u32 %v1211_v40, %v1004_v39  ;;  %v885_v49 = vor.u32 %v1181_v42, %v884_v41  ;;  %v1232_v51 = vld [vmem:[%s1772_s1 + $0x90] sm:$0xff] }
   0xf   :  { %1261 = vmatpush.bf16.msra.mxu3 %v1218_v3  ;;  %583 = vmatpush.bf16.msra.mxu0 %v1218_v3  ;;  %v1225_v45 = vld [vmem:[%s1772_s1 + $0x58] sm:$0xff]  ;;  %v1224_v52 = vld [vmem:[%s1772_s1 + $0x50] sm:$0xff]  ;;  %v1231_v54 = vld [vmem:[%s1772_s1 + $0x88] sm:$0xff] }
  0x10   :  { %v1241_v50 = vld [vmem:[%s1772_s1 + $0xd8] sm:$0xff]  ;;  %v1240_v53 = vld [vmem:[%s1772_s1 + $0xd0] sm:$0xff]  ;;  %v1223_v55 = vld [vmem:[%s1772_s1 + $0x48] sm:$0xff] }
  0x11   :  { %v1239_v56 = vld [vmem:[%s1772_s1 + $0xc8] sm:$0xff]  ;;  %v1230_v57 = vld [vmem:[%s1772_s1 + $0x80] sm:$0xff]  ;;  %v866_v61 = vld [vmem:[%s1774_s0 + $0x14] sm:$0xf0] }
  0x12   :  { %1262 = vmatpush.bf16.msra.mxu1 %v1217_v4  ;;  %1263 = vmatpush.bf16.msra.mxu2 %v1217_v4  ;;  %v1222_v58 = vld [vmem:[%s1772_s1 + $0x40] sm:$0xff]  ;;  %v872_v62 = vld [vmem:[%s1774_s0 + $0x8] sm:$0xf]  ;;  %v1177_v63 = vld [vmem:[%s1774_s0 + $0x18] sm:$0xf0] }
  0x13   :  { %1264 = vmatpush.bf16.msra.mxu3 %v1217_v4  ;;  %584 = vmatpush.bf16.msra.mxu0 %v1217_v4  ;;  %v1238_v59 = vld [vmem:[%s1772_s1 + $0xc0] sm:$0xff]  ;;  %v1175_v0 = vld [vmem:[%s1774_s0 + $0xc] sm:$0xf]  ;;  %v880_v2 = vld [vmem:[%s1774_s0 + $0x10] sm:$0xf] }
  0x14   :  { %v1174_v60 = vld [vmem:[%s1774_s0 + $0x4] sm:$0xf]  ;;  %v874_v1 = vld [vmem:[%s1774_s0 + $0x1c] sm:$0xf0]  ;;  %v1179_v8 = vld [vmem:[%s1774_s0 + $0x2c] sm:$0xf] }
  0x15   :  { %v1178_v3 = vld [vmem:[%s1774_s0 + $0x20] sm:$0xf0]  ;;  %v869_v4 = vor.u32 %v1174_v60, %v866_v61  ;;  %v886_v9 = vld [vmem:[%s1774_s0 + $0x3c] sm:$0xf0]  ;;  %v892_v10 = vld [vmem:[%s1774_s0 + $0x30] sm:$0xf] }
  0x16   :  { %1265 = vmatpush.bf16.msra.mxu1 %v1216_v5  ;;  %1266 = vmatpush.bf16.msra.mxu2 %v1216_v5  ;;  %v1182_v11 = vld [vmem:[%s1774_s0 + $0x40] sm:$0xf0]  ;;  %v1180_v12 = vld [vmem:[%s1774_s0 + $0x34] sm:$0xf]  ;;  %v894_v13 = vld [vmem:[%s1774_s0 + $0x44] sm:$0xf0] }
  0x17   :  { %1267 = vmatpush.bf16.msra.mxu3 %v1216_v5  ;;  %585 = vmatpush.bf16.msra.mxu0 %v1216_v5  ;;  %v873_v5 = vor.u32 %v1177_v63, %v872_v62  ;;  %v900_v14 = vld [vmem:[%s1774_s0 + $0x38] sm:$0xf]  ;;  %v1183_v15 = vld [vmem:[%s1774_s0 + $0x48] sm:$0xf0]  ;;  %v1192_v35 = vld [vmem:[%s1774_s0 + $0x90] sm:$0xf0] }
  0x18   :  { %v1190_v36 = vld [vmem:[%s1774_s0 + $0x84] sm:$0xf]  ;;  %v934_v37 = vld [vmem:[%s1774_s0 + $0x94] sm:$0xf0]  ;;  %v940_v38 = vld [vmem:[%s1774_s0 + $0x88] sm:$0xf] }
  0x19   :  { %v1193_v39 = vld [vmem:[%s1774_s0 + $0x98] sm:$0xf0]  ;;  %v937_v42 = vor.u32 %v1190_v36, %v934_v37  ;;  %v1200_v60 = vld [vmem:[%s1774_s0 + $0xd4] sm:$0xf]  ;;  %v974_v61 = vld [vmem:[%s1774_s0 + $0xe4] sm:$0xf0] }
  0x1a   :  { %1268 = vmatpush.bf16.msra.mxu1 %v1215_v6  ;;  %1269 = vmatpush.bf16.msra.mxu2 %v1215_v6  ;;  %v980_v62 = vld [vmem:[%s1774_s0 + $0xd8] sm:$0xf]  ;;  %v1203_v63 = vld [vmem:[%s1774_s0 + $0xe8] sm:$0xf0] }
  0x1b   :  { %1270 = vmatpush.bf16.msra.mxu3 %v1215_v6  ;;  %586 = vmatpush.bf16.msra.mxu0 %v1215_v6  ;;  %v877_v6 = vor.u32 %v1175_v0, %v874_v1 }
  0x1e   :  { %1271 = vmatpush.bf16.msra.mxu1 %v1214_v7  ;;  %1272 = vmatpush.bf16.msra.mxu2 %v1214_v7 }
  0x1f   :  { %1273 = vmatpush.bf16.msra.mxu3 %v1214_v7  ;;  %587 = vmatpush.bf16.msra.mxu0 %v1214_v7  ;;  %v881_v7 = vor.u32 %v1178_v3, %v880_v2  ;;  %v977_v2 = vor.u32 %v1200_v60, %v974_v61  ;;  %v981_v3 = vor.u32 %v1203_v63, %v980_v62 }
  0x21   :  { %598 = vmatmul.bf16.vlgmr.msra.gmra.mxu1 %v905_v18  ;;  %608 = vmatmul.bf16.vlgmr.msra.gmra.mxu2 %v945_v19  ;;  %v897_v18 = vor.u32 %v1180_v12, %v894_v13  ;;  %v901_v19 = vor.u32 %v1183_v15, %v900_v14 }
  0x22   :  { %678 = vmatpush.bf16.msrb.mxu2 %v1237_v16  ;;  %629 = vmatpush.bf16.msrb.mxu1 %v1229_v17  ;;  %v889_v16 = vor.u32 %v1179_v8, %v886_v9  ;;  %v893_v17 = vor.u32 %v1182_v11, %v892_v10  ;;  %v1205_v8 = vld [vmem:[%s1774_s0 + $0xfc] sm:$0xf]  ;;  %v994_v9 = vld [vmem:[%s1774_s0 + $0x10c] sm:$0xf0]  ;;  %v1000_v10 = vld [vmem:[%s1774_s0 + $0x100] sm:$0xf] }
  0x23   :  { %618 = vmatmul.bf16.vlgmr.msra.gmra.mxu3 %v985_v20  ;;  %588 = vmatmul.bf16.vlgmr.msra.gmra.mxu0 %v865_v21  ;;  %v1184_v20 = vld [vmem:[%s1774_s0 + $0x54] sm:$0xf]  ;;  %v906_v21 = vld [vmem:[%s1774_s0 + $0x64] sm:$0xf0]  ;;  %v997_v15 = vor.u32 %v1205_v8, %v994_v9 }
  0x24   :  { %727 = vmatpush.bf16.msrb.mxu3 %v1245_v22  ;;  %780 = vmatpush.bf16.msrb.mxu0 %v1249_v23  ;;  %v912_v22 = vld [vmem:[%s1774_s0 + $0x58] sm:$0xf]  ;;  %v1187_v23 = vld [vmem:[%s1774_s0 + $0x68] sm:$0xf0]  ;;  %v1208_v11 = vld [vmem:[%s1774_s0 + $0x110] sm:$0xf0] }
  0x26   :  { %679 = vmatpush.bf16.msrb.mxu2 %v1236_v24  ;;  %630 = vmatpush.bf16.msrb.mxu1 %v1228_v25  ;;  %v1185_v24 = vld [vmem:[%s1774_s0 + $0x5c] sm:$0xf]  ;;  %v914_v25 = vld [vmem:[%s1774_s0 + $0x6c] sm:$0xf0] }
  0x28   :  { %728 = vmatpush.bf16.msrb.mxu3 %v1244_v26  ;;  %781 = vmatpush.bf16.msrb.mxu0 %v1248_v27  ;;  %v920_v26 = vld [vmem:[%s1774_s0 + $0x60] sm:$0xf]  ;;  %v1188_v27 = vld [vmem:[%s1774_s0 + $0x70] sm:$0xf0] }
  0x2a   :  { %680 = vmatpush.bf16.msrb.mxu2 %v1235_v28  ;;  %631 = vmatpush.bf16.msrb.mxu1 %v1227_v29  ;;  %v909_v28 = vor.u32 %v1184_v20, %v906_v21  ;;  %v913_v29 = vor.u32 %v1187_v23, %v912_v22 }
  0x2c   :  { %729 = vmatpush.bf16.msrb.mxu3 %v1243_v30  ;;  %782 = vmatpush.bf16.msrb.mxu0 %v1247_v31  ;;  %v917_v30 = vor.u32 %v1185_v24, %v914_v25  ;;  %v921_v31 = vor.u32 %v1188_v27, %v920_v26  ;;  %v1209_v25 = vld [vmem:[%s1774_s0 + $0x11c] sm:$0xf]  ;;  %v1006_v26 = vld [vmem:[%s1774_s0 + $0x12c] sm:$0xf0]  ;;  %v1012_v27 = vld [vmem:[%s1774_s0 + $0x120] sm:$0xf] }
  0x2d   :  { %v1009_v36 = vor.u32 %v1209_v25, %v1006_v26 }
  0x2e   :  { %681 = vmatpush.bf16.msrb.mxu2 %v1234_v32  ;;  %632 = vmatpush.bf16.msrb.mxu1 %v1226_v33  ;;  %v1189_v32 = vld [vmem:[%s1774_s0 + $0x7c] sm:$0xf]  ;;  %v926_v33 = vld [vmem:[%s1774_s0 + $0x8c] sm:$0xf0] }
  0x2f   :  { %v929_v40 = vor.u32 %v1189_v32, %v926_v33  ;;  %v1213_v32 = vld [vmem:[%s1774_s0 + $0x138] sm:$0xf0] }
  0x30   :  { %730 = vmatpush.bf16.msrb.mxu3 %v1242_v34  ;;  %783 = vmatpush.bf16.msrb.mxu0 %v1246_v43  ;;  %v932_v34 = vld [vmem:[%s1774_s0 + $0x80] sm:$0xf]  ;;  %v941_v43 = vor.u32 %v1193_v39, %v940_v38 }
  0x31   :  { %603 = vmatmul.bf16.gmra.mxu1 %v925_v46  ;;  %613 = vmatmul.bf16.gmra.mxu2 %v965_v47  ;;  %v933_v41 = vor.u32 %v1192_v35, %v932_v34  ;;  %v952_v46 = vld [vmem:[%s1774_s0 + $0xa8] sm:$0xf]  ;;  %v1197_v47 = vld [vmem:[%s1774_s0 + $0xb8] sm:$0xf0] }
  0x32   :  { %682 = vmatpush.bf16.msrb.mxu2 %v1233_v44  ;;  %633 = vmatpush.bf16.msrb.mxu1 %v1225_v45  ;;  %v1194_v44 = vld [vmem:[%s1774_s0 + $0xa4] sm:$0xf]  ;;  %v946_v45 = vld [vmem:[%s1774_s0 + $0xb4] sm:$0xf0] }
  0x33   :  { %623 = vmatmul.bf16.gmra.mxu3 %v1005_v48  ;;  %593 = vmatmul.bf16.gmra.mxu0 %v885_v49  ;;  %v1195_v48 = vld [vmem:[%s1774_s0 + $0xac] sm:$0xf]  ;;  %v954_v49 = vld [vmem:[%s1774_s0 + $0xbc] sm:$0xf0] }
  0x34   :  { %731 = vmatpush.bf16.msrb.mxu3 %v1241_v50  ;;  %v960_v50 = vld [vmem:[%s1774_s0 + $0xb0] sm:$0xf] }
  0x36   :  { %683 = vmatpush.bf16.msrb.mxu2 %v1232_v51  ;;  %634 = vmatpush.bf16.msrb.mxu1 %v1224_v52  ;;  %v1198_v51 = vld [vmem:[%s1774_s0 + $0xc0] sm:$0xf0]  ;;  %v949_v52 = vor.u32 %v1194_v44, %v946_v45 }
  0x38   :  { %732 = vmatpush.bf16.msrb.mxu3 %v1240_v53  ;;  %v953_v53 = vor.u32 %v1197_v47, %v952_v46 }
  0x3a   :  { %684 = vmatpush.bf16.msrb.mxu2 %v1231_v54  ;;  %635 = vmatpush.bf16.msrb.mxu1 %v1223_v55  ;;  %v957_v54 = vor.u32 %v1195_v48, %v954_v49  ;;  %v961_v55 = vor.u32 %v1198_v51, %v960_v50 }
  0x3c   :  { %733 = vmatpush.bf16.msrb.mxu3 %v1239_v56  ;;  %v1199_v56 = vld [vmem:[%s1774_s0 + $0xcc] sm:$0xf] }
  0x3e   :  { %685 = vmatpush.bf16.msrb.mxu2 %v1230_v57  ;;  %636 = vmatpush.bf16.msrb.mxu1 %v1222_v58  ;;  %v966_v57 = vld [vmem:[%s1774_s0 + $0xdc] sm:$0xf0]  ;;  %v972_v58 = vld [vmem:[%s1774_s0 + $0xd0] sm:$0xf] }
  0x3f   :  { %v969_v0 = vor.u32 %v1199_v56, %v966_v57 }
  0x40   :  { %734 = vmatpush.bf16.msrb.mxu3 %v1238_v59  ;;  %v1202_v59 = vld [vmem:[%s1774_s0 + $0xe0] sm:$0xf0] }
  0x41   :  { %637 = vmatmul.bf16.vlgmr.msrb.gmra.mxu1 %v869_v4  ;;  %686 = vmatmul.bf16.vlgmr.msrb.gmra.mxu2 %v873_v5  ;;  %v973_v1 = vor.u32 %v1202_v59, %v972_v58  ;;  %v1204_v4 = vld [vmem:[%s1774_s0 + $0xf4] sm:$0xf]  ;;  %v986_v5 = vld [vmem:[%s1774_s0 + $0x104] sm:$0xf0] }
  0x42   :  { %v989_v12 = vor.u32 %v1204_v4, %v986_v5 }
  0x43   :  { %735 = vmatmul.bf16.vlgmr.msrb.gmra.mxu3 %v877_v6  ;;  %1166 = vmatmul.msk.bf16.vlgmr.msrb.gmra.mxu0 %vm555_vm0, %v881_v7  ;;  %v992_v6 = vld [vmem:[%s1774_s0 + $0xf8] sm:$0xf]  ;;  %v1207_v7 = vld [vmem:[%s1774_s0 + $0x108] sm:$0xf0] }
  0x44   :  { %v993_v13 = vor.u32 %v1207_v7, %v992_v6 }
  0x51   :  { %642 = vmatmul.bf16.gmra.mxu1 %v889_v16  ;;  %691 = vmatmul.bf16.gmra.mxu2 %v893_v17  ;;  %v1001_v16 = vor.u32 %v1208_v11, %v1000_v10 }
  0x53   :  { %740 = vmatmul.bf16.gmra.mxu3 %v897_v18  ;;  %1167 = vmatmul.msk.bf16.gmra.mxu0 %vm555_vm0, %v901_v19  ;;  %v1631_v18 = vld [vmem:[%s1773_s2] ss:$0 sm:$0xff] }
  0x61   :  { %647 = vmatmul.bf16.gmra.mxu1 %v909_v28  ;;  %696 = vmatmul.bf16.gmra.mxu2 %v913_v29  ;;  %v1212_v28 = vld [vmem:[%s1774_s0 + $0x130] sm:$0xf0]  ;;  %v1210_v29 = vld [vmem:[%s1774_s0 + $0x124] sm:$0xf] }
  0x62   :  { %v1013_v37 = vor.u32 %v1212_v28, %v1012_v27 }
  0x63   :  { %745 = vmatmul.bf16.gmra.mxu3 %v917_v30  ;;  %1168 = vmatmul.msk.bf16.gmra.mxu0 %vm555_vm0, %v921_v31  ;;  %v1014_v30 = vld [vmem:[%s1774_s0 + $0x134] sm:$0xf0]  ;;  %v1020_v31 = vld [vmem:[%s1774_s0 + $0x128] sm:$0xf] }
  0x71   :  { %652 = vmatmul.bf16.gmra.mxu1 %v929_v40  ;;  %701 = vmatmul.bf16.gmra.mxu2 %v933_v41  ;;  %v1017_v40 = vor.u32 %v1210_v29, %v1014_v30  ;;  %v1021_v41 = vor.u32 %v1213_v32, %v1020_v31 }
  0x73   :  { %750 = vmatmul.bf16.gmra.mxu3 %v937_v42  ;;  %1169 = vmatmul.msk.bf16.gmra.mxu0 %vm555_vm0, %v941_v43 }
  0x81   :  { %657 = vmatmul.bf16.gmra.mxu1 %v949_v52  ;;  %706 = vmatmul.bf16.gmra.mxu2 %v953_v53 }
  0x83   :  { %755 = vmatmul.bf16.gmra.mxu3 %v957_v54  ;;  %1170 = vmatmul.msk.bf16.gmra.mxu0 %vm555_vm0, %v961_v55 }
  0x91   :  { %662 = vmatmul.bf16.gmra.mxu1 %v969_v0  ;;  %711 = vmatmul.bf16.gmra.mxu2 %v973_v1 }
  0x93   :  { %760 = vmatmul.bf16.gmra.mxu3 %v977_v2  ;;  %1171 = vmatmul.msk.bf16.gmra.mxu0 %vm555_vm0, %v981_v3 }
  0x9e   :  { %v1625_v14 = vpop.f32.mrf.mxu1 }
  0xa0   :  { %v589_v17 = vpop.f32.mrf.mxu0 }
  0xa1   :  { %667 = vmatmul.bf16.gmra.mxu1 %v989_v12  ;;  %716 = vmatmul.bf16.gmra.mxu2 %v993_v13  ;;  %v590_v55 = vadd.f32 %v1631_v18, %v589_v17 }
  0xa3   :  { %765 = vmatmul.bf16.gmra.mxu3 %v997_v15  ;;  %1172 = vmatmul.msk.bf16.gmra.mxu0 %vm555_vm0, %v1001_v16 }
  0xa4   :  { %v609_v19 = vpop.f32.mrf.mxu2 }
  0xa5   :  { %v1634_v20 = vadd.f32 %v1631_v18, %v609_v19 }
  0xa6   :  { %v619_v21 = vpop.f32.mrf.mxu3  ;;  %v1639_v23 = vpop.f32.mrf.mxu1 }
  0xa7   :  { %v1637_v22 = vadd.f32 %v1631_v18, %v619_v21 }
  0xa8   :  { %v591_v24 = vpop.f32.mrf.mxu0 }
  0xa9   :  { %v592_v63 = vadd.f32 %v1631_v18, %v591_v24 }
  0xac   :  { %v611_v33 = vpop.f32.mrf.mxu2 }
  0xad   :  { %v1666_v34 = vadd.f32 %v1631_v18, %v611_v33 }
  0xae   :  { %v621_v35 = vpop.f32.mrf.mxu3  ;;  %v1671_v39 = vpop.f32.mrf.mxu1 }
  0xaf   :  { %v1669_v38 = vadd.f32 %v1631_v18, %v621_v35  ;;  %v600_v35 = vadd.f32 %v1631_v18, %v1625_v14 }
  0xb0   :  { %v594_v42 = vpop.f32.mrf.mxu0 }
  0xb1   :  { %672 = vmatmul.bf16.gmra.mxu1 %v1009_v36  ;;  %721 = vmatmul.bf16.gmra.mxu2 %v1013_v37  ;;  %v595_v9 = vadd.f32 %v1631_v18, %v594_v42 }
  0xb3   :  { %770 = vmatmul.bf16.gmra.mxu3 %v1017_v40  ;;  %1173 = vmatmul.msk.bf16.gmra.mxu0 %vm555_vm0, %v1021_v41 }
  0xb4   :  { %v614_v43 = vpop.f32.mrf.mxu2 }
  0xb5   :  { %v1675_v44 = vadd.f32 %v1631_v18, %v614_v43 }
  0xb6   :  { %v624_v45 = vpop.f32.mrf.mxu3  ;;  %v1680_v47 = vpop.f32.mrf.mxu1 }
  0xb7   :  { %v1678_v46 = vadd.f32 %v1631_v18, %v624_v45 }
  0xb8   :  { %v596_v48 = vpop.f32.mrf.mxu0 }
  0xb9   :  { %v597_v24 = vadd.f32 %v1631_v18, %v596_v48 }
  0xbc   :  { %v616_v49 = vpop.f32.mrf.mxu2 }
  0xbd   :  { %v1683_v50 = vadd.f32 %v1631_v18, %v616_v49 }
  0xbe   :  { %v626_v51 = vpop.f32.mrf.mxu3  ;;  %v638_v53 = vpop.f32.mrf.mxu1 }
  0xbf   :  { %v1686_v52 = vadd.f32 %v1631_v18, %v626_v51  ;;  %v639_v56 = vadd.f32 %v638_v53, %v590_v55  ;;  %v602_v51 = vadd.f32 %v1631_v18, %v1639_v23 }
  0xc0   :  { %v785_v54 = vpop.f32.mrf.mxu0 }
  0xc4   :  { %v687_v57 = vpop.f32.mrf.mxu2 }
  0xc5   :  { %v688_v58 = vadd.f32 %v687_v57, %v639_v56 }
  0xc6   :  { %v736_v59 = vpop.f32.mrf.mxu3  ;;  %v640_v60 = vpop.f32.mrf.mxu1 }
  0xc7   :  { %v737_v61 = vadd.f32 %v736_v59, %v688_v58  ;;  %v641_v2 = vadd.f32 %v640_v60, %v592_v63 }
  0xc8   :  { %v787_v62 = vpop.f32.mrf.mxu0 }
  0xc9   :  { %v786_v0 = vadd.f32 %v785_v54, %v737_v61  ;;  %v605_v61 = vadd.f32 %v1631_v18, %v1671_v39 }
  0xcb   :  { %v825_v1 = vmax.f32 %v786_v0, 0.0 }
  0xcc   :  { %v689_v3 = vpop.f32.mrf.mxu2 }
  0xcd   :  { %842 = vst.msk [vmem:[%s1775_s3] sm:$0xff] %vm841_vm1, %v825_v1  ;;  %v690_v4 = vadd.f32 %v689_v3, %v641_v2 }
  0xce   :  { %v738_v5 = vpop.f32.mrf.mxu3  ;;  %v643_v6 = vpop.f32.mrf.mxu1 }
  0xcf   :  { %v739_v7 = vadd.f32 %v738_v5, %v690_v4  ;;  %v644_v12 = vadd.f32 %v643_v6, %v595_v9  ;;  %v607_v6 = vadd.f32 %v1631_v18, %v1680_v47 }
  0xd0   :  { %v790_v8 = vpop.f32.mrf.mxu0 }
  0xd1   :  { %v788_v10 = vadd.f32 %v787_v62, %v739_v7 }
  0xd3   :  { %v826_v11 = vmax.f32 %v788_v10, 0.0 }
  0xd4   :  { %v692_v13 = vpop.f32.mrf.mxu2 }
  0xd5   :  { %843 = vst.msk [vmem:[%s1775_s3 + $0x8] sm:$0xff] %vm841_vm1, %v826_v11  ;;  %v693_v15 = vadd.f32 %v692_v13, %v644_v12 }
  0xd6   :  { %v741_v16 = vpop.f32.mrf.mxu3  ;;  %v645_v17 = vpop.f32.mrf.mxu1 }
  0xd7   :  { %v742_v19 = vadd.f32 %v741_v16, %v693_v15  ;;  %v646_v27 = vadd.f32 %v645_v17, %v597_v24 }
  0xd8   :  { %v792_v21 = vpop.f32.mrf.mxu0 }
  0xd9   :  { %v791_v25 = vadd.f32 %v790_v8, %v742_v19 }
  0xdb   :  { %v827_v26 = vmax.f32 %v791_v25, 0.0 }
  0xdc   :  { %v694_v28 = vpop.f32.mrf.mxu2 }
  0xdd   :  { %844 = vst.msk [vmem:[%s1775_s3 + $0x10] sm:$0xff] %vm841_vm1, %v827_v26  ;;  %v695_v29 = vadd.f32 %v694_v28, %v646_v27 }
  0xde   :  { %v743_v30 = vpop.f32.mrf.mxu3  ;;  %v648_v31 = vpop.f32.mrf.mxu1 }
  0xdf   :  { %v744_v32 = vadd.f32 %v743_v30, %v695_v29  ;;  %v649_v40 = vadd.f32 %v648_v31, %v600_v35 }
  0xe0   :  { %v795_v33 = vpop.f32.mrf.mxu0 }
  0xe1   :  { %v793_v36 = vadd.f32 %v792_v21, %v744_v32 }
  0xe3   :  { %v828_v37 = vmax.f32 %v793_v36, 0.0 }
  0xe4   :  { %v697_v41 = vpop.f32.mrf.mxu2 }
  0xe5   :  { %845 = vst.msk [vmem:[%s1775_s3 + $0x18] sm:$0xff] %vm841_vm1, %v828_v37  ;;  %v698_v42 = vadd.f32 %v697_v41, %v649_v40 }
  0xe6   :  { %v746_v43 = vpop.f32.mrf.mxu3  ;;  %v650_v45 = vpop.f32.mrf.mxu1 }
  0xe7   :  { %v747_v48 = vadd.f32 %v746_v43, %v698_v42  ;;  %v651_v14 = vadd.f32 %v650_v45, %v602_v51 }
  0xe8   :  { %v797_v49 = vpop.f32.mrf.mxu0 }
  0xe9   :  { %v796_v53 = vadd.f32 %v795_v33, %v747_v48 }
  0xeb   :  { %v829_v54 = vmax.f32 %v796_v53, 0.0 }
  0xec   :  { %v699_v55 = vpop.f32.mrf.mxu2 }
  0xed   :  { %846 = vst.msk [vmem:[%s1775_s3 + $0x20] sm:$0xff] %vm841_vm1, %v829_v54  ;;  %v700_v56 = vadd.f32 %v699_v55, %v651_v14 }
  0xee   :  { %v748_v57 = vpop.f32.mrf.mxu3  ;;  %v653_v58 = vpop.f32.mrf.mxu1 }
  0xef   :  { %v749_v59 = vadd.f32 %v748_v57, %v700_v56  ;;  %v654_v23 = vadd.f32 %v653_v58, %v605_v61 }
  0xf0   :  { %v800_v60 = vpop.f32.mrf.mxu0 }
  0xf1   :  { %v798_v62 = vadd.f32 %v797_v49, %v749_v59 }
  0xf3   :  { %v830_v63 = vmax.f32 %v798_v62, 0.0 }
  0xf4   :  { %v702_v0 = vpop.f32.mrf.mxu2 }
  0xf5   :  { %847 = vst.msk [vmem:[%s1775_s3 + $0x28] sm:$0xff] %vm841_vm1, %v830_v63  ;;  %v703_v1 = vadd.f32 %v702_v0, %v654_v23 }
  0xf6   :  { %v751_v2 = vpop.f32.mrf.mxu3  ;;  %v655_v3 = vpop.f32.mrf.mxu1 }
  0xf7   :  { %v752_v4 = vadd.f32 %v751_v2, %v703_v1  ;;  %v656_v39 = vadd.f32 %v655_v3, %v607_v6 }
  0xf8   :  { %v802_v5 = vpop.f32.mrf.mxu0 }
  0xf9   :  { %v801_v7 = vadd.f32 %v800_v60, %v752_v4 }
  0xfb   :  { %v831_v8 = vmax.f32 %v801_v7, 0.0 }
  0xfc   :  { %v704_v9 = vpop.f32.mrf.mxu2 }
  0xfd   :  { %848 = vst.msk [vmem:[%s1775_s3 + $0x30] sm:$0xff] %vm841_vm1, %v831_v8  ;;  %v705_v10 = vadd.f32 %v704_v9, %v656_v39 }
  0xfe   :  { %v753_v11 = vpop.f32.mrf.mxu3  ;;  %v658_v12 = vpop.f32.mrf.mxu1 }
  0xff   :  { %v754_v13 = vadd.f32 %v753_v11, %v705_v10  ;;  %v659_v19 = vadd.f32 %v658_v12, %v1634_v20 }
 0x100   :  { %v805_v15 = vpop.f32.mrf.mxu0 }
 0x101   :  { %v803_v16 = vadd.f32 %v802_v5, %v754_v13 }
 0x103   :  { %v832_v17 = vmax.f32 %v803_v16, 0.0 }
 0x104   :  { %v707_v21 = vpop.f32.mrf.mxu2 }
 0x105   :  { %849 = vst.msk [vmem:[%s1775_s3 + $0x38] sm:$0xff] %vm841_vm1, %v832_v17  ;;  %v708_v18 = vadd.f32 %v707_v21, %v659_v19 }
 0x106   :  { %v756_v47 = vpop.f32.mrf.mxu3  ;;  %v660_v24 = vpop.f32.mrf.mxu1 }
 0x107   :  { %v757_v25 = vadd.f32 %v756_v47, %v708_v18  ;;  %v661_v29 = vadd.f32 %v660_v24, %v1666_v34 }
 0x108   :  { %v807_v26 = vpop.f32.mrf.mxu0 }
 0x109   :  { %v806_v27 = vadd.f32 %v805_v15, %v757_v25 }
 0x10b   :  { %v833_v28 = vmax.f32 %v806_v27, 0.0 }
 0x10c   :  { %v709_v30 = vpop.f32.mrf.mxu2 }
 0x10d   :  { %850 = vst.msk [vmem:[%s1775_s3 + $0x40] sm:$0xff] %vm841_vm1, %v833_v28  ;;  %v710_v20 = vadd.f32 %v709_v30, %v661_v29 }
 0x10e   :  { %v758_v31 = vpop.f32.mrf.mxu3  ;;  %v663_v32 = vpop.f32.mrf.mxu1 }
 0x10f   :  { %v759_v33 = vadd.f32 %v758_v31, %v710_v20  ;;  %v664_v40 = vadd.f32 %v663_v32, %v1675_v44 }
 0x110   :  { %v810_v35 = vpop.f32.mrf.mxu0 }
 0x111   :  { %v808_v36 = vadd.f32 %v807_v26, %v759_v33 }
 0x113   :  { %v834_v37 = vmax.f32 %v808_v36, 0.0 }
 0x114   :  { %v712_v41 = vpop.f32.mrf.mxu2 }
 0x115   :  { %851 = vst.msk [vmem:[%s1775_s3 + $0x48] sm:$0xff] %vm841_vm1, %v834_v37  ;;  %v713_v34 = vadd.f32 %v712_v41, %v664_v40 }
 0x116   :  { %v761_v42 = vpop.f32.mrf.mxu3  ;;  %v665_v43 = vpop.f32.mrf.mxu1 }
 0x117   :  { %v762_v45 = vadd.f32 %v761_v42, %v713_v34  ;;  %v666_v53 = vadd.f32 %v665_v43, %v1683_v50 }
 0x118   :  { %v812_v48 = vpop.f32.mrf.mxu0 }
 0x119   :  { %v811_v49 = vadd.f32 %v810_v35, %v762_v45 }
 0x11b   :  { %v835_v51 = vmax.f32 %v811_v49, 0.0 }
 0x11c   :  { %v714_v54 = vpop.f32.mrf.mxu2 }
 0x11d   :  { %852 = vst.msk [vmem:[%s1775_s3 + $0x50] sm:$0xff] %vm841_vm1, %v835_v51  ;;  %v715_v44 = vadd.f32 %v714_v54, %v666_v53 }
 0x11e   :  { %v763_v14 = vpop.f32.mrf.mxu3  ;;  %v668_v55 = vpop.f32.mrf.mxu1 }
 0x11f   :  { %v764_v56 = vadd.f32 %v763_v14, %v715_v44  ;;  %v669_v60 = vadd.f32 %v668_v55, %v1637_v22 }
 0x120   :  { %v815_v58 = vpop.f32.mrf.mxu0 }
 0x121   :  { %v813_v57 = vadd.f32 %v812_v48, %v764_v56 }
 0x123   :  { %v836_v59 = vmax.f32 %v813_v57, 0.0 }
 0x124   :  { %v717_v61 = vpop.f32.mrf.mxu2 }
 0x125   :  { %853 = vst.msk [vmem:[%s1775_s3 + $0x58] sm:$0xff] %vm841_vm1, %v836_v59  ;;  %v718_v50 = vadd.f32 %v717_v61, %v669_v60 }
 0x126   :  { %v766_v62 = vpop.f32.mrf.mxu3  ;;  %v670_v63 = vpop.f32.mrf.mxu1 }
 0x127   :  { %v767_v23 = vadd.f32 %v766_v62, %v718_v50  ;;  %v671_v2 = vadd.f32 %v670_v63, %v1669_v38 }
 0x128   :  { %v817_v3 = vpop.f32.mrf.mxu0 }
 0x129   :  { %v816_v0 = vadd.f32 %v815_v58, %v767_v23 }
 0x12b   :  { %v837_v1 = vmax.f32 %v816_v0, 0.0 }
 0x12c   :  { %v719_v4 = vpop.f32.mrf.mxu2 }
 0x12d   :  { %854 = vst.msk [vmem:[%s1775_s3 + $0x60] sm:$0xff] %vm841_vm1, %v837_v1  ;;  %v720_v22 = vadd.f32 %v719_v4, %v671_v2 }
 0x12e   :  { %v768_v5 = vpop.f32.mrf.mxu3  ;;  %v673_v6 = vpop.f32.mrf.mxu1 }
 0x12f   :  { %v769_v7 = vadd.f32 %v768_v5, %v720_v22  ;;  %v674_v9 = vadd.f32 %v673_v6, %v1678_v46 }
 0x130   :  { %v820_v12 = vpop.f32.mrf.mxu0 }
 0x131   :  { %v818_v8 = vadd.f32 %v817_v3, %v769_v7 }
 0x133   :  { %v838_v39 = vmax.f32 %v818_v8, 0.0 }
 0x134   :  { %v722_v10 = vpop.f32.mrf.mxu2 }
 0x135   :  { %855 = vst.msk [vmem:[%s1775_s3 + $0x68] sm:$0xff] %vm841_vm1, %v838_v39  ;;  %v723_v38 = vadd.f32 %v722_v10, %v674_v9 }
 0x136   :  { %v771_v11 = vpop.f32.mrf.mxu3  ;;  %v675_v15 = vpop.f32.mrf.mxu1 }
 0x137   :  { %v772_v13 = vadd.f32 %v771_v11, %v723_v38  ;;  %v676_v19 = vadd.f32 %v675_v15, %v1686_v52 }
 0x138   :  { %v822_v24 = vpop.f32.mrf.mxu0 }
 0x139   :  { %v821_v16 = vadd.f32 %v820_v12, %v772_v13 }
 0x13b   :  { %v839_v17 = vmax.f32 %v821_v16, 0.0 }
 0x13c   :  { %v724_v21 = vpop.f32.mrf.mxu2 }
 0x13d   :  { %856 = vst.msk [vmem:[%s1775_s3 + $0x70] sm:$0xff] %vm841_vm1, %v839_v17  ;;  %v725_v46 = vadd.f32 %v724_v21, %v676_v19 }
 0x13e   :  { %v773_v18 = vpop.f32.mrf.mxu3 }
 0x13f   :  { %v774_v47 = vadd.f32 %v773_v18, %v725_v46 }
 0x141   :  { %v823_v25 = vadd.f32 %v822_v24, %v774_v47 }
 0x143   :  { %v840_v26 = vmax.f32 %v823_v25, 0.0 }
 0x145   :  { %857 = vst.msk [vmem:[%s1775_s3 + $0x78] sm:$0xff] %vm841_vm1, %v840_v26 }

// kernel: ae2_forward.8
= control target key start
LH: loop header
LB: loop body
LE: loop exit
PB: predicated region body
PF: predicated region fallthrough
CT: control target
= control target key end

     0   :  { %vm201_vm0 = vcmask 261120   ;;  %vm269_vm1 = vcmask 130048   ;;  %s540_s1 = inlined_call_operand.vmem [shape: bf16[288,16], index: 1, kind: input, shape index: {}]   ;;  %s541_s0 = inlined_call_operand.vmem [shape: bf16[32,288], index: 0, kind: input, shape index: {}]   ;;  %s542_s2 = inlined_call_operand.vmem [shape: f32[1,16], index: 2, kind: input, shape index: {}]   ;;  %s543_s3 = inlined_call_operand.vmem [shape: f32[32,16], index: 3, kind: output, shape index: {}]  }
   0x1   :  { %v389_v0 = vld [vmem:[%s540_s1 + $0x38] sm:$0xff]  ;;  %v388_v2 = vld [vmem:[%s540_s1 + $0x30] sm:$0xff]  ;;  %v399_v3 = vld [vmem:[%s540_s1 + $0x88] sm:$0xff] }
   0x2   :  { %v397_v1 = vld [vmem:[%s540_s1 + $0x78] sm:$0xff]  ;;  %208 = vmatpush.bf16.msra.mxu0 %v389_v0  ;;  %400 = vmatpush.bf16.msra.mxu3 %v389_v0  ;;  %v396_v4 = vld [vmem:[%s540_s1 + $0x70] sm:$0xff]  ;;  %v398_v5 = vld [vmem:[%s540_s1 + $0x80] sm:$0xff] }
   0x3   :  { %227 = vmatpush.bf16.msra.mxu1 %v397_v1  ;;  %252 = vmatpush.bf16.msra.mxu2 %v399_v3  ;;  %v288_v6 = vld [vmem:[%s541_s0 + $0x8] sm:$0xf]  ;;  %v378_v7 = vld [vmem:[%s541_s0 + $0x10] sm:$0xf0]  ;;  %v386_v11 = vld [vmem:[%s540_s1 + $0x20] sm:$0xff] }
   0x4   :  { %v387_v8 = vld [vmem:[%s540_s1 + $0x28] sm:$0xff]  ;;  %v289_v10 = vor.u32 %v378_v7, %v288_v6  ;;  %v394_v12 = vld [vmem:[%s540_s1 + $0x60] sm:$0xff]  ;;  %v385_v13 = vld [vmem:[%s540_s1 + $0x18] sm:$0xff] }
   0x5   :  { %v395_v9 = vld [vmem:[%s540_s1 + $0x68] sm:$0xff]  ;;  %v393_v14 = vld [vmem:[%s540_s1 + $0x58] sm:$0xff]  ;;  %v384_v15 = vld [vmem:[%s540_s1 + $0x10] sm:$0xff] }
   0x6   :  { %209 = vmatpush.bf16.msra.mxu0 %v388_v2  ;;  %401 = vmatpush.bf16.msra.mxu3 %v388_v2  ;;  %v392_v16 = vld [vmem:[%s540_s1 + $0x50] sm:$0xff]  ;;  %v300_v17 = vld [vmem:[%s541_s0 + $0x20] sm:$0xf]  ;;  %v381_v18 = vld [vmem:[%s541_s0 + $0x28] sm:$0xf0] }
   0x7   :  { %228 = vmatpush.bf16.msra.mxu1 %v396_v4  ;;  %253 = vmatpush.bf16.msra.mxu2 %v398_v5  ;;  %v383_v19 = vld [vmem:[%s540_s1 + $0x8] sm:$0xff]  ;;  %v301_v21 = vor.u32 %v381_v18, %v300_v17  ;;  %v382_v22 = vld [vmem:[%s540_s1] sm:$0xff]  ;;  %v292_v25 = vld [vmem:[%s541_s0 + $0x18] sm:$0xf] }
   0x8   :  { %v391_v20 = vld [vmem:[%s540_s1 + $0x48] sm:$0xff]  ;;  %v280_v23 = vld [vmem:[%s541_s0] sm:$0xf]  ;;  %v380_v26 = vld [vmem:[%s541_s0 + $0x20] sm:$0xf0] }
   0x9   :  { %v377_v24 = vld [vmem:[%s541_s0 + $0x8] sm:$0xf0]  ;;  %v390_v27 = vld [vmem:[%s540_s1 + $0x40] sm:$0xff]  ;;  %v282_v29 = vld [vmem:[%s541_s0 + $0xc] sm:$0xf0]  ;;  %v293_v31 = vor.u32 %v380_v26, %v292_v25 }
   0xa   :  { %210 = vmatpush.bf16.msra.mxu0 %v387_v8  ;;  %402 = vmatpush.bf16.msra.mxu3 %v387_v8  ;;  %v376_v28 = vld [vmem:[%s541_s0 + $0x4] sm:$0xf]  ;;  %v281_v30 = vor.u32 %v377_v24, %v280_v23  ;;  %v379_v33 = vld [vmem:[%s541_s0 + $0x1c] sm:$0xf]  ;;  %v294_v34 = vld [vmem:[%s541_s0 + $0x24] sm:$0xf0] }
   0xb   :  { %229 = vmatpush.bf16.msra.mxu1 %v395_v9  ;;  %374 = vmatmul.msk.bf16.vlgmr.msra.gmra.mxu2 %vm201_vm0, %v289_v10  ;;  %v285_v32 = vor.u32 %v376_v28, %v282_v29  ;;  %v297_v35 = vor.u32 %v379_v33, %v294_v34  ;;  %v408_v37 = vld [vmem:[%s542_s2] ss:$0 sm:$0xff] }
   0xe   :  { %211 = vmatpush.bf16.msra.mxu0 %v386_v11  ;;  %403 = vmatpush.bf16.msra.mxu3 %v386_v11 }
   0xf   :  { %230 = vmatpush.bf16.msra.mxu1 %v394_v12 }
  0x12   :  { %212 = vmatpush.bf16.msra.mxu0 %v385_v13  ;;  %404 = vmatpush.bf16.msra.mxu3 %v385_v13 }
  0x13   :  { %231 = vmatpush.bf16.msra.mxu1 %v393_v14 }
  0x16   :  { %213 = vmatpush.bf16.msra.mxu0 %v384_v15  ;;  %405 = vmatpush.bf16.msra.mxu3 %v384_v15 }
  0x17   :  { %232 = vmatpush.bf16.msra.mxu1 %v392_v16 }
  0x1a   :  { %214 = vmatpush.bf16.msra.mxu0 %v383_v19  ;;  %406 = vmatpush.bf16.msra.mxu3 %v383_v19 }
  0x1b   :  { %233 = vmatpush.bf16.msra.mxu1 %v391_v20  ;;  %375 = vmatmul.msk.bf16.gmra.mxu2 %vm201_vm0, %v301_v21 }
  0x1e   :  { %215 = vmatpush.bf16.msra.mxu0 %v382_v22  ;;  %407 = vmatpush.bf16.msra.mxu3 %v382_v22 }
  0x1f   :  { %234 = vmatpush.bf16.msra.mxu1 %v390_v27 }
  0x21   :  { %216 = vmatmul.bf16.vlgmr.msra.gmra.mxu0 %v281_v30  ;;  %221 = vmatmul.bf16.vlgmr.msra.gmra.mxu3 %v293_v31 }
  0x22   :  { %235 = vmatmul.bf16.vlgmr.msra.gmra.mxu1 %v285_v32 }
  0x32   :  { %240 = vmatmul.bf16.gmra.mxu1 %v297_v35 }
  0x8e   :  { %v255_v36 = vpop.f32.mrf.mxu2 }
  0x96   :  { %v257_v44 = vpop.f32.mrf.mxu2 }
  0x9e   :  { %v217_v38 = vpop.f32.mrf.mxu0  ;;  %v260_v53 = vpop.f32.mrf.mxu2 }
  0x9f   :  { %v218_v39 = vadd.f32 %v408_v37, %v217_v38  ;;  %v236_v40 = vpop.f32.mrf.mxu1 }
  0xa1   :  { %v237_v41 = vadd.f32 %v236_v40, %v218_v39 }
  0xa3   :  { %v256_v42 = vadd.f32 %v255_v36, %v237_v41 }
  0xa4   :  { %v222_v48 = vpop.f32.mrf.mxu3 }
  0xa5   :  { %v265_v43 = vmax.f32 %v256_v42, 0.0  ;;  %v223_v51 = vadd.f32 %v408_v37, %v222_v48 }
  0xa6   :  { %v219_v45 = vpop.f32.mrf.mxu0  ;;  %v262_v62 = vpop.f32.mrf.mxu2 }
  0xa7   :  { %270 = vst.msk [vmem:[%s543_s3] sm:$0xff] %vm269_vm1, %v265_v43  ;;  %v220_v46 = vadd.f32 %v408_v37, %v219_v45  ;;  %v238_v47 = vpop.f32.mrf.mxu1 }
  0xa9   :  { %v239_v49 = vadd.f32 %v238_v47, %v220_v46 }
  0xab   :  { %v258_v50 = vadd.f32 %v257_v44, %v239_v49 }
  0xac   :  { %v224_v57 = vpop.f32.mrf.mxu3 }
  0xad   :  { %v266_v52 = vmax.f32 %v258_v50, 0.0  ;;  %v225_v59 = vadd.f32 %v408_v37, %v224_v57 }
  0xaf   :  { %271 = vst.msk [vmem:[%s543_s3 + $0x8] sm:$0xff] %vm269_vm1, %v266_v52  ;;  %v241_v54 = vpop.f32.mrf.mxu1 }
  0xb0   :  { %v242_v55 = vadd.f32 %v241_v54, %v223_v51 }
  0xb2   :  { %v261_v56 = vadd.f32 %v260_v53, %v242_v55 }
  0xb4   :  { %v267_v58 = vmax.f32 %v261_v56, 0.0 }
  0xb6   :  { %272 = vst.msk [vmem:[%s543_s3 + $0x10] sm:$0xff] %vm269_vm1, %v267_v58 }
  0xb7   :  { %v243_v60 = vpop.f32.mrf.mxu1 }
  0xb8   :  { %v244_v61 = vadd.f32 %v243_v60, %v225_v59 }
  0xba   :  { %v263_v63 = vadd.f32 %v262_v62, %v244_v61 }
  0xbc   :  { %v268_v0 = vmax.f32 %v263_v63, 0.0 }
  0xbe   :  { %273 = vst.msk [vmem:[%s543_s3 + $0x18] sm:$0xff] %vm269_vm1, %v268_v0 }

// kernel: ae2_forward.9
= control target key start
LH: loop header
LB: loop body
LE: loop exit
PB: predicated region body
PF: predicated region fallthrough
CT: control target
= control target key end

     0   :  { %vm98_vm0 = vcmask 130048   ;;  %vm129_vm1 = vcmask 64512   ;;  %s238_s1 = inlined_call_operand.vmem [shape: bf16[144,8], index: 1, kind: input, shape index: {}]   ;;  %s239_s0 = inlined_call_operand.vmem [shape: bf16[8,144], index: 0, kind: input, shape index: {}]   ;;  %s240_s2 = inlined_call_operand.vmem [shape: f32[1,8], index: 2, kind: input, shape index: {}]   ;;  %s241_s3 = inlined_call_operand.vmem [shape: f32[8,8], index: 3, kind: output, shape index: {}]  }
   0x1   :  { %v179_v0 = vld [vmem:[%s238_s1 + $0x38] sm:$0xff]  ;;  %v178_v1 = vld [vmem:[%s238_s1 + $0x30] sm:$0xff]  ;;  %v180_v2 = vld [vmem:[%s238_s1 + $0x40] sm:$0xff] }
   0x2   :  { %102 = vmatpush.bf16.msra.mxu0 %v179_v0  ;;  %v15_v3 = vld [vmem:[%s239_s0] sm:$0xff]  ;;  %122 = vmatpush.bf16.msra.mxu1 %v180_v2  ;;  %v177_v6 = vld [vmem:[%s238_s1 + $0x28] sm:$0xff]  ;;  %v175_v8 = vld [vmem:[%s238_s1 + $0x18] sm:$0xff] }
   0x3   :  { %v40_v4 = vunpack.c.h.b16 %v15_v3  ;;  %v176_v7 = vld [vmem:[%s238_s1 + $0x20] sm:$0xff]  ;;  %v174_v9 = vld [vmem:[%s238_s1 + $0x10] sm:$0xff]  ;;  %v173_v10 = vld [vmem:[%s238_s1 + $0x8] sm:$0xff]  ;;  %v39_v11 = vunpack.c.l.b16 %v15_v3 }
   0x4   :  { %v172_v12 = vld [vmem:[%s238_s1] sm:$0xff] }
   0x5   :  { %v42_v5 = vpack.c.b16 %v40_v4, %v40_v4  ;;  %v41_v13 = vpack.c.b16 %v39_v11, %v39_v11  ;;  %v181_v16 = vld [vmem:[%s240_s2] ss:$0 sm:$0xff] }
   0x6   :  { %103 = vmatpush.bf16.msra.mxu0 %v178_v1 }
   0x7   :  { %171 = vmatmul.msk.bf16.vlgmr.msra.gmra.mxu1 %vm98_vm0, %v42_v5 }
   0xa   :  { %104 = vmatpush.bf16.msra.mxu0 %v177_v6 }
   0xe   :  { %105 = vmatpush.bf16.msra.mxu0 %v176_v7 }
  0x12   :  { %106 = vmatpush.bf16.msra.mxu0 %v175_v8 }
  0x16   :  { %107 = vmatpush.bf16.msra.mxu0 %v174_v9 }
  0x1a   :  { %108 = vmatpush.bf16.msra.mxu0 %v173_v10 }
  0x1e   :  { %109 = vmatpush.bf16.msra.mxu0 %v172_v12 }
  0x21   :  { %110 = vmatmul.bf16.vlgmr.msra.gmra.mxu0 %v41_v13 }
  0x84   :  { %v124_v14 = vpop.f32.mrf.mxu1 }
  0x8c   :  { %v126_v15 = vpop.f32.mrf.mxu1 }
  0x9e   :  { %v111_v17 = vpop.f32.mrf.mxu0 }
  0x9f   :  { %v112_v18 = vadd.f32 %v181_v16, %v111_v17 }
  0xa1   :  { %v125_v19 = vadd.f32 %v124_v14, %v112_v18 }
  0xa3   :  { %v128_v20 = vmax.f32 %v125_v19, 0.0 }
  0xa5   :  { %130 = vst.msk [vmem:[%s241_s3] sm:$0xff] %vm129_vm1, %v128_v20 }
  0xa6   :  { %v113_v21 = vpop.f32.mrf.mxu0 }

// kernel: ae2_forward.10
= control target key start
LH: loop header
LB: loop body
LE: loop exit
PB: predicated region body
PF: predicated region fallthrough
CT: control target
= control target key end

     0   :  { %v1972_v1 = vmov 0   ;;  %vm94_vm0 = vcmask 1043456   ;;  %vm90_vm1 = vcmask 588800   ;;  %vm112_vm2 = vcmask 15360   ;;  %s1973_s18 = smov 2   ;;  %s1975_s19 = smov 6   ;;  %s2858_s0 = inlined_call_operand.vmem [shape: bf16[72,2], index: 0, kind: input, shape index: {}]   ;;  %s2859_s2 = inlined_call_operand.vmem [shape: f32[8,1], index: 2, kind: input, shape index: {}]   ;;  %s2860_s8 = inlined_call_operand.vmem [shape: f32[8,1], index: 8, kind: input, shape index: {}]   ;;  %s2861_s1 = inlined_call_operand.vmem [shape: bf16[8,72], index: 1, kind: input, shape index: {}]   ;;  %s2862_s13 = inlined_call_operand.vmem [shape: f32[8,2], index: 13, kind: output, shape index: {0}]   ;;  %s2863_s3 = inlined_call_operand.vmem [shape: bf16[4,8,8], index: 3, kind: input, shape index: {}]   ;;  %s2864_s9 = inlined_call_operand.vmem [shape: f32[8,1], index: 9, kind: input, shape index: {}]   ;;  %s2865_s4 = inlined_call_operand.vmem [shape: bf16[4,8,8], index: 4, kind: input, shape index: {}]   ;;  %s2866_s10 = inlined_call_operand.vmem [shape: f32[16,1], index: 10, kind: input, shape index: {}]   ;;  %s2867_s5 = inlined_call_operand.vmem [shape: bf16[4,16,8], index: 5, kind: input, shape index: {}]   ;;  %s2868_s11 = inlined_call_operand.vmem [shape: f32[32,1], index: 11, kind: input, shape index: {}]   ;;  %s2869_s12 = inlined_call_operand.vmem [shape: f32[64,1], index: 12, kind: input, shape index: {}]   ;;  %s2870_s6 = inlined_call_operand.vmem [shape: bf16[4,32,16], index: 6, kind: input, shape index: {}]   ;;  %s2871_s7 = inlined_call_operand.vmem [shape: bf16[4,64,32], index: 7, kind: input, shape index: {}]   ;;  %s2872_s14 = inlined_call_operand.vmem [shape: f32[64,2048], index: 14, kind: output, shape index: {1}]  }
   0x1   :  { %v56_v0 = vld [vmem:[%s2858_s0 + $0x20] sm:$0xf]  ;;  %1969 = vset.pattern.permute.xlu0 %v1972_v1  ;;  %1970 = vset.pattern.permute.xlu2 %v1972_v1  ;;  %v1930_v6 = vld [vmem:[%s2858_s0 + $0x18] sm:$0xff]  ;;  %v1929_v8 = vld [vmem:[%s2858_s0 + $0x10] sm:$0xff]  ;;  %vm122_vm3 = vcmask 64512   ;;  %vm167_vm4 = vcmask 31760  }
   0x2   :  { %v80_v2 = vunpack.c.l.b16 %v56_v0  ;;  %1971 = vset.pattern.permute.xlu1 %v1972_v1  ;;  %v57_v3 = vld [vmem:[%s2859_s2] sm:$0xff]  ;;  %v1928_v9 = vld [vmem:[%s2858_s0 + $0x8] sm:$0xff]  ;;  %vm192_vm5 = vcmask 48160   ;;  %vm217_vm6 = vcmask 64560   ;;  %s1978_s28 = smov 8   ;;  %vm272_vm7 = vcmask 130112  }
   0x3   :  { %60 = vperm.xlu0 %1969, %v57_v3   ;;  %v114_v7 = vld [vmem:[%s2860_s8] sm:$0xff]  ;;  %v1686_v21 = vld [vmem:[%s2863_s3 + $0x8] sm:$0xf]  ;;  %v1688_v22 = vld [vmem:[%s2863_s3 + $0xc] sm:$0xf]  ;;  %s1976_s8 = smov 24  }
   0x4   :  { %v85_v4 = vpack.c.b16 %v80_v2, %v80_v2  ;;  %v1927_v10 = vld [vmem:[%s2858_s0] sm:$0xff]  ;;  %v1693_v49 = vld [vmem:[%s2865_s4 + $0x8] sm:$0xf]  ;;  %v1695_v50 = vld [vmem:[%s2865_s4 + $0xc] sm:$0xf]  ;;  %vm297_vm8 = vcmask 195712  }
   0x5   :  { %v47_v11 = vld [vmem:[%s2861_s1] sm:$0xf]  ;;  %v1684_v20 = vld [vmem:[%s2863_s3 + $0x4] sm:$0xf]  ;;  %vm322_vm9 = vcmask 261312   ;;  %s1979_s20 = smov 64  }
   0x6   :  { %v96_v5 = vsel %vm94_vm0, %v85_v4, 0  ;;  %v116_v19 = vld [vmem:[%s2863_s3] sm:$0xf]  ;;  %s1974_s3 = smov 4   ;;  %v1691_v48 = vld [vmem:[%s2865_s4 + $0x4] sm:$0xf] }
   0x7   :  { %101 = vmatpush.bf16.msra.mxu0 %v96_v5  ;;  %v220_v40 = vld [vmem:[%s2864_s9] sm:$0xff]  ;;  %v326_v5 = vld [vmem:[%s2866_s10 + $0x8] sm:$0xff]  ;;  %vm367_vm10 = vcmask 261120   ;;  %s1981_s21 = smov 96   ;;  %vm405_vm11 = vcmask 523520   ;;  %vm443_vm12 = vcmask 785920  }
   0x8   :  { %v222_v47 = vld [vmem:[%s2865_s4] sm:$0xf]  ;;  %s1977_s4 = smov 16   ;;  %vm481_vm13 = vcmask 1048320   ;;  %vm525_vm14 = vcmask 130048  }
   0x9   :  { %v325_v4 = vld [vmem:[%s2866_s10] sm:$0xff] }
   0xb   :  { %102 = vmatpush.bf16.msra.mxu0 %v1930_v6  ;;  %119 = vperm.xlu0 %1969, %v114_v7  }
   0xf   :  { %103 = vmatpush.bf16.msra.mxu0 %v1929_v8 }
  0x13   :  { %104 = vmatpush.bf16.msra.mxu0 %v1928_v9 }
  0x17   :  { %105 = vmatpush.bf16.msra.mxu0 %v1927_v10 }
  0x1a   :  { %1682 = vmatmul.msk.bf16.vlgmr.msra.gmra.mxu0 %vm90_vm1, %v47_v11 }
  0x75   :  { %v61_v12 = vpop.permute.xlu0 %60 }
  0x7d   :  { %v120_v23 = vpop.permute.xlu0 %119 }
  0x97   :  { %v107_v13 = vpop.f32.mrf.mxu0 }
  0x98   :  { %v108_v14 = vadd.f32 %v107_v13, %v61_v12  ;;  %v1931_v12 = vld [vmem:[%s2867_s5] sm:$0xff]  ;;  %v1932_v13 = vld [vmem:[%s2867_s5 + $0x8] sm:$0xff] }
  0x9a   :  { %v111_v15 = vmax.f32 %v108_v14, 0.0  ;;  %v1933_v14 = vld [vmem:[%s2867_s5 + $0x10] sm:$0xff] }
  0x9c   :  { %v115_v16 = vpack.c.bf16 %v111_v15, %v111_v15  ;;  %113 = vst.msk [vmem:[%s2862_s13] sm:$0xff] %vm112_vm2, %v111_v15  ;;  %v1934_v15 = vld [vmem:[%s2867_s5 + $0x18] sm:$0xff]  ;;  %s1980_s5 = smov 32  }
  0x9e   :  { %v127_v17 = vsel %vm94_vm0, %v115_v16, 0 }
  0x9f   :  { %v109_v18 = vpop.f32.mrf.mxu0  ;;  %136 = vmatpush.bf16.msra.mxu1 %v127_v17  ;;  %156 = vmatpush.bf16.msra.mxu2 %v127_v17 }
  0xa0   :  { %181 = vmatpush.bf16.msra.mxu3 %v127_v17 }
  0xa2   :  { %1683 = vmatmul.msk.bf16.vlgmr.msra.gmra.mxu1 %vm122_vm3, %v116_v19  ;;  %1685 = vmatmul.msk.bf16.vlgmr.msra.gmra.mxu2 %vm122_vm3, %v1684_v20 }
  0xa3   :  { %206 = vmatpush.bf16.msrb.mxu1 %v127_v17  ;;  %1687 = vmatmul.msk.bf16.vlgmr.msra.gmra.mxu3 %vm122_vm3, %v1686_v21 }
  0xb2   :  { %1689 = vmatmul.msk.bf16.vlgmr.msrb.gmra.mxu1 %vm122_vm3, %v1688_v22 }
 0x11f   :  { %v138_v24 = vpop.f32.mrf.mxu1 }
 0x120   :  { %v139_v25 = vadd.f32 %v138_v24, %v120_v23 }
 0x122   :  { %v142_v26 = vmax.f32 %v139_v25, 0.0 }
 0x124   :  { %143 = vst.msk [vmem:[#allocation2] sm:$0xff] %vm112_vm2, %v142_v26 }
 0x125   :  { %v158_v27 = vpop.f32.mrf.mxu2 }
 0x126   :  { %v159_v28 = vadd.f32 %v158_v27, %v120_v23  ;;  %v183_v29 = vpop.f32.mrf.mxu3 }
 0x127   :  { %v140_v30 = vpop.f32.mrf.mxu1  ;;  %v184_v32 = vadd.f32 %v183_v29, %v120_v23 }
 0x128   :  { %v162_v31 = vmax.f32 %v159_v28, 0.0 }
 0x129   :  { %v187_v36 = vmax.f32 %v184_v32, 0.0 }
 0x12a   :  { %164 = vrot.lane.b32.xlu1 %v162_v31, %s1973_s18 }
 0x12d   :  { %v160_v33 = vpop.f32.mrf.mxu2 }
 0x12e   :  { %v185_v34 = vpop.f32.mrf.mxu3 }
 0x12f   :  { %v208_v35 = vpop.f32.mrf.mxu1 }
 0x130   :  { %v209_v37 = vadd.f32 %v208_v35, %v120_v23 }
 0x132   :  { %v212_v38 = vmax.f32 %v209_v37, 0.0  ;;  %189 = vrot.lane.b32.xlu1 %v187_v36, %s1974_s3 }
 0x134   :  { %214 = vrot.lane.b32.xlu2 %v212_v38, %s1975_s19 }
 0x137   :  { %v210_v39 = vpop.f32.mrf.mxu1 }
 0x13c   :  { %225 = vperm.xlu2 %1970, %v220_v40   ;;  %v486_v40 = vld [vmem:[%s2868_s11] sm:$0xff] }
 0x18e   :  { %v215_v43 = vpop.permute.xlu2 %214 }
 0x196   :  { %v226_v51 = vpop.permute.xlu2 %225 }
 0x19c   :  { %v165_v41 = vpop.permute.xlu1 %164 }
 0x19d   :  { %168 = vst.msk [vmem:[#allocation2] sm:$0xff] %vm167_vm4, %v165_v41 }
 0x1a4   :  { %v190_v42 = vpop.permute.xlu1 %189 }
 0x1a5   :  { %193 = vst.msk [vmem:[#allocation2] sm:$0xff] %vm192_vm5, %v190_v42  ;;  %v488_v42 = vld [vmem:[%s2868_s11 + $0x10] sm:$0xff] }
 0x1a6   :  { %218 = vst.msk [vmem:[#allocation2] sm:$0xff] %vm217_vm6, %v215_v43 }
 0x1ad   :  { %v219_v44 = vld [vmem:[#allocation2] sm:$0xff] }
 0x1ae   :  { %v221_v45 = vpack.c.bf16 %v219_v44, %v219_v44  ;;  %v720_v44 = vld [vmem:[%s2869_s12 + $0x8] sm:$0xff] }
 0x1b0   :  { %v232_v46 = vsel %vm94_vm0, %v221_v45, 0  ;;  %v489_v45 = vld [vmem:[%s2868_s11 + $0x18] sm:$0xff] }
 0x1b1   :  { %241 = vmatpush.bf16.msrb.mxu2 %v232_v46  ;;  %261 = vmatpush.bf16.msrb.mxu3 %v232_v46 }
 0x1b2   :  { %286 = vmatpush.bf16.msrb.mxu0 %v232_v46  ;;  %311 = vmatpush.bf16.msra.mxu1 %v232_v46  ;;  %v487_v46 = vld [vmem:[%s2868_s11 + $0x8] sm:$0xff] }
 0x1b4   :  { %1690 = vmatmul.msk.bf16.vlgmr.msrb.gmra.mxu2 %vm122_vm3, %v222_v47  ;;  %1692 = vmatmul.msk.bf16.vlgmr.msrb.gmra.mxu3 %vm122_vm3, %v1691_v48  ;;  %v723_v47 = vld [vmem:[%s2869_s12 + $0x20] sm:$0xff] }
 0x1b5   :  { %1694 = vmatmul.msk.bf16.vlgmr.msrb.gmra.mxu0 %vm122_vm3, %v1693_v49  ;;  %1696 = vmatmul.msk.bf16.vlgmr.msra.gmra.mxu1 %vm122_vm3, %v1695_v50  ;;  %v719_v48 = vld [vmem:[%s2869_s12] sm:$0xff]  ;;  %v721_v49 = vld [vmem:[%s2869_s12 + $0x10] sm:$0xff]  ;;  %v726_v50 = vld [vmem:[%s2869_s12 + $0x38] sm:$0xff] }
 0x232   :  { %v288_v52 = vpop.f32.mrf.mxu0  ;;  %v313_v53 = vpop.f32.mrf.mxu1 }
 0x233   :  { %v314_v54 = vadd.f32 %v313_v53, %v226_v51  ;;  %v289_v55 = vadd.f32 %v288_v52, %v226_v51  ;;  %v724_v52 = vld [vmem:[%s2869_s12 + $0x28] sm:$0xff]  ;;  %v725_v53 = vld [vmem:[%s2869_s12 + $0x30] sm:$0xff] }
 0x235   :  { %v317_v56 = vmax.f32 %v314_v54, 0.0  ;;  %v292_v57 = vmax.f32 %v289_v55, 0.0 }
 0x237   :  { %v243_v58 = vpop.f32.mrf.mxu2  ;;  %v263_v59 = vpop.f32.mrf.mxu3  ;;  %319 = vrot.lane.b32.xlu2 %v317_v56, %s1976_s8  ;;  %294 = vrot.lane.b32.xlu1 %v292_v57, %s1977_s4 }
 0x238   :  { %v244_v60 = vadd.f32 %v243_v58, %v226_v51  ;;  %v264_v61 = vadd.f32 %v263_v59, %v226_v51  ;;  %v722_v51 = vld [vmem:[%s2869_s12 + $0x18] sm:$0xff] }
 0x23a   :  { %v247_v62 = vmax.f32 %v244_v60, 0.0  ;;  %v267_v63 = vmax.f32 %v264_v61, 0.0  ;;  %v290_v0 = vpop.f32.mrf.mxu0  ;;  %v315_v1 = vpop.f32.mrf.mxu1 }
 0x23b   :  { %v1937_v0 = vld [vmem:[%s2870_s6 + $0x10] sm:$0xff]  ;;  %v1939_v1 = vld [vmem:[%s2870_s6 + $0x20] sm:$0xff] }
 0x23c   :  { %248 = vst.msk [vmem:[#allocation3] sm:$0xff] %vm122_vm3, %v247_v62  ;;  %269 = vrot.lane.b32.xlu0 %v267_v63, %s1978_s28  ;;  %v1935_v63 = vld [vmem:[%s2870_s6] sm:$0xff] }
 0x23f   :  { %v265_v2 = vpop.f32.mrf.mxu3  ;;  %v245_v3 = vpop.f32.mrf.mxu2  ;;  %337 = vperm.xlu1 %1971, %v326_v5   ;;  %v1940_v5 = vld [vmem:[%s2870_s6 + $0x28] sm:$0xff] }
 0x240   :  { %v1941_v2 = vld [vmem:[%s2870_s6 + $0x30] sm:$0xff]  ;;  %v1936_v3 = vld [vmem:[%s2870_s6 + $0x8] sm:$0xff] }
 0x244   :  { %332 = vperm.xlu0 %1969, %v325_v4   ;;  %v1938_v4 = vld [vmem:[%s2870_s6 + $0x18] sm:$0xff] }
 0x291   :  { %v320_v8 = vpop.permute.xlu2 %319 }
 0x2a9   :  { %v295_v6 = vpop.permute.xlu1 %294 }
 0x2ae   :  { %v270_v7 = vpop.permute.xlu0 %269 }
 0x2af   :  { %273 = vst.msk [vmem:[#allocation3] sm:$0xff] %vm272_vm7, %v270_v7 }
 0x2b0   :  { %298 = vst.msk [vmem:[#allocation3] sm:$0xff] %vm297_vm8, %v295_v6  ;;  %v1942_v6 = vld [vmem:[%s2870_s6 + $0x38] sm:$0xff] }
 0x2b1   :  { %323 = vst.msk [vmem:[#allocation3] sm:$0xff] %vm322_vm9, %v320_v8  ;;  %v338_v25 = vpop.permute.xlu1 %337 }
 0x2b6   :  { %v333_v16 = vpop.permute.xlu0 %332 }
 0x2b8   :  { %v324_v9 = vld [vmem:[#allocation3] sm:$0xff] }
 0x2b9   :  { %v327_v10 = vpack.c.bf16 %v324_v9, %v324_v9 }
 0x2bb   :  { %v349_v11 = vsel %vm94_vm0, %v327_v10, 0 }
 0x2bc   :  { %358 = vmatpush.bf16.msra.mxu2 %v349_v11  ;;  %388 = vmatpush.bf16.msra.mxu3 %v349_v11 }
 0x2bd   :  { %426 = vmatpush.bf16.msra.mxu0 %v349_v11  ;;  %464 = vmatpush.bf16.msrb.mxu1 %v349_v11 }
 0x2bf   :  { %1701 = vmatmul.msk.bf16.vlgmr.msra.gmra.mxu2 %vm122_vm3, %v1931_v12  ;;  %1708 = vmatmul.msk.bf16.vlgmr.msra.gmra.mxu3 %vm122_vm3, %v1932_v13 }
 0x2c0   :  { %1715 = vmatmul.msk.bf16.vlgmr.msra.gmra.mxu0 %vm122_vm3, %v1933_v14  ;;  %1722 = vmatmul.msk.bf16.vlgmr.msrb.gmra.mxu1 %vm122_vm3, %v1934_v15 }
 0x33d   :  { %v428_v17 = vpop.f32.mrf.mxu0  ;;  %v466_v18 = vpop.f32.mrf.mxu1 }
 0x33e   :  { %v429_v19 = vadd.f32 %v428_v17, %v333_v16  ;;  %v467_v41 = vadd.f32 %v466_v18, %v333_v16 }
 0x340   :  { %v433_v20 = vmax.f32 %v429_v19, 0.0  ;;  %v471_v43 = vmax.f32 %v467_v41, 0.0 }
 0x342   :  { %437 = vrot.lane.b32.xlu1 %v433_v20, %s1979_s20  ;;  %v360_v21 = vpop.f32.mrf.mxu2  ;;  %v390_v22 = vpop.f32.mrf.mxu3 }
 0x343   :  { %v361_v23 = vadd.f32 %v360_v21, %v333_v16  ;;  %v391_v24 = vadd.f32 %v390_v22, %v333_v16 }
 0x345   :  { %v365_v26 = vmax.f32 %v361_v23, 0.0  ;;  %v395_v27 = vmax.f32 %v391_v24, 0.0  ;;  %v468_v28 = vpop.f32.mrf.mxu1  ;;  %v430_v29 = vpop.f32.mrf.mxu0 }
 0x346   :  { %v469_v30 = vadd.f32 %v468_v28, %v338_v25  ;;  %v431_v31 = vadd.f32 %v430_v29, %v338_v25 }
 0x347   :  { %399 = vrot.lane.b32.xlu2 %v395_v27, %s1980_s5  ;;  %368 = vst.msk [vmem:[#allocation2] sm:$0xff] %vm367_vm10, %v365_v26 }
 0x348   :  { %v472_v32 = vmax.f32 %v469_v30, 0.0  ;;  %v434_v37 = vmax.f32 %v431_v31, 0.0 }
 0x34a   :  { %477 = vrot.lane.b32.xlu1 %v472_v32, %s1981_s21  ;;  %v362_v33 = vpop.f32.mrf.mxu2  ;;  %v392_v34 = vpop.f32.mrf.mxu3 }
 0x34b   :  { %v363_v35 = vadd.f32 %v362_v33, %v338_v25  ;;  %v393_v36 = vadd.f32 %v392_v34, %v338_v25 }
 0x34d   :  { %v366_v38 = vmax.f32 %v363_v35, 0.0  ;;  %v396_v39 = vmax.f32 %v393_v36, 0.0 }
 0x34f   :  { %401 = vrot.lane.b32.xlu0 %v396_v39, %s1980_s5  ;;  %439 = vrot.lane.b32.xlu2 %v434_v37, %s1979_s20  ;;  %369 = vst.msk [vmem:[#allocation2 + $0x8] sm:$0xff] %vm367_vm10, %v366_v38 }
 0x352   :  { %497 = vperm.xlu1 %1971, %v486_v40  }
 0x357   :  { %475 = vrot.lane.b32.xlu0 %v471_v43, %s1981_s21  ;;  %507 = vperm.xlu2 %1970, %v488_v42  }
 0x35a   :  { %750 = vperm.xlu1 %1971, %v720_v44  }
 0x35f   :  { %512 = vperm.xlu0 %1969, %v489_v45   ;;  %502 = vperm.xlu2 %1970, %v487_v46  }
 0x362   :  { %765 = vperm.xlu1 %1971, %v723_v47  }
 0x367   :  { %745 = vperm.xlu0 %1969, %v719_v48   ;;  %755 = vperm.xlu2 %1970, %v721_v49  }
 0x36a   :  { %780 = vperm.xlu1 %1971, %v726_v50  }
 0x36f   :  { %760 = vperm.xlu0 %1969, %v722_v51   ;;  %770 = vperm.xlu2 %1970, %v724_v52  }
 0x377   :  { %775 = vperm.xlu0 %1969, %v725_v53  }
 0x3a1   :  { %v400_v54 = vpop.permute.xlu2 %399 }
 0x3a2   :  { %406 = vst.msk [vmem:[#allocation2] sm:$0xff] %vm405_vm11, %v400_v54 }
 0x3a9   :  { %v440_v57 = vpop.permute.xlu2 %439 }
 0x3b1   :  { %v508_v7 = vpop.permute.xlu2 %507 }
 0x3b4   :  { %v438_v55 = vpop.permute.xlu1 %437 }
 0x3b5   :  { %444 = vst.msk [vmem:[#allocation2] sm:$0xff] %vm443_vm12, %v438_v55 }
 0x3b9   :  { %v503_v19 = vpop.permute.xlu2 %502 }
 0x3bc   :  { %v478_v58 = vpop.permute.xlu1 %477 }
 0x3c1   :  { %v402_v56 = vpop.permute.xlu0 %401 }
 0x3c2   :  { %407 = vst.msk [vmem:[#allocation2 + $0x8] sm:$0xff] %vm405_vm11, %v402_v56 }
 0x3c3   :  { %445 = vst.msk [vmem:[#allocation2 + $0x8] sm:$0xff] %vm443_vm12, %v440_v57 }
 0x3c4   :  { %483 = vst.msk [vmem:[#allocation2 + $0x8] sm:$0xff] %vm481_vm13, %v478_v58  ;;  %v498_v8 = vpop.permute.xlu1 %497 }
 0x3c9   :  { %v476_v59 = vpop.permute.xlu0 %475 }
 0x3ca   :  { %482 = vst.msk [vmem:[#allocation2] sm:$0xff] %vm481_vm13, %v476_v59 }
 0x3cb   :  { %v485_v61 = vld [vmem:[#allocation2 + $0x8] sm:$0xff] }
 0x3d1   :  { %v484_v60 = vld [vmem:[#allocation2] sm:$0xff]  ;;  %v513_v44 = vpop.permute.xlu0 %512 }
 0x3d2   :  { %v490_v62 = vpack.c.bf16 %v485_v61, %v484_v60 }
 0x3d4   :  { %539 = vmatpush.bf16.msrb.mxu2 %v490_v62  ;;  %587 = vmatpush.bf16.msrb.mxu3 %v490_v62 }
 0x3d5   :  { %635 = vmatpush.bf16.msrb.mxu0 %v490_v62  ;;  %683 = vmatpush.bf16.msra.mxu1 %v490_v62 }
 0x3d7   :  { %1731 = vmatmul.msk.bf16.vlgmr.msrb.gmra.mxu2 %vm525_vm14, %v1935_v63  ;;  %1745 = vmatmul.msk.bf16.vlgmr.msrb.gmra.mxu3 %vm525_vm14, %v1937_v0 }
 0x3d8   :  { %1759 = vmatmul.msk.bf16.vlgmr.msrb.gmra.mxu0 %vm525_vm14, %v1939_v1  ;;  %1773 = vmatmul.msk.bf16.vlgmr.msra.gmra.mxu1 %vm525_vm14, %v1941_v2  ;;  %v1943_v1 = vld [vmem:[%s2871_s7] sm:$0xff] }
 0x3e7   :  { %1732 = vmatmul.msk.bf16.gmra.mxu2 %vm525_vm14, %v1936_v3  ;;  %1746 = vmatmul.msk.bf16.gmra.mxu3 %vm525_vm14, %v1938_v4  ;;  %v1944_v4 = vld [vmem:[%s2871_s7 + $0x8] sm:$0xff] }
 0x3e8   :  { %1760 = vmatmul.msk.bf16.gmra.mxu0 %vm525_vm14, %v1940_v5  ;;  %1774 = vmatmul.msk.bf16.gmra.mxu1 %vm525_vm14, %v1942_v6  ;;  %v1945_v5 = vld [vmem:[%s2871_s7 + $0x10] sm:$0xff]  ;;  %v1946_v6 = vld [vmem:[%s2871_s7 + $0x18] sm:$0xff] }
 0x455   :  { %v637_v9 = vpop.f32.mrf.mxu0  ;;  %v685_v10 = vpop.f32.mrf.mxu1 }
 0x456   :  { %v638_v11 = vadd.f32 %v637_v9, %v498_v8  ;;  %v686_v12 = vadd.f32 %v685_v10, %v498_v8  ;;  %v1949_v9 = vld [vmem:[%s2871_s7 + $0x30] sm:$0xff]  ;;  %v1950_v10 = vld [vmem:[%s2871_s7 + $0x38] sm:$0xff] }
 0x458   :  { %v647_v13 = vmax.f32 %v638_v11, 0.0  ;;  %v695_v14 = vmax.f32 %v686_v12, 0.0  ;;  %v2274_v11 = vpop.permute.xlu0 %745  ;;  %v1951_v12 = vld [vmem:[%s2871_s7 + $0x40] sm:$0xff] }
 0x45a   :  { %v541_v15 = vpop.f32.mrf.mxu2  ;;  %v589_v16 = vpop.f32.mrf.mxu3 }
 0x45b   :  { %v542_v17 = vadd.f32 %v541_v15, %v498_v8  ;;  %v590_v18 = vadd.f32 %v589_v16, %v498_v8  ;;  %v1948_v8 = vld [vmem:[%s2871_s7 + $0x28] sm:$0xff] }
 0x45d   :  { %v551_v20 = vmax.f32 %v542_v17, 0.0  ;;  %v599_v21 = vmax.f32 %v590_v18, 0.0  ;;  %v639_v22 = vpop.f32.mrf.mxu0  ;;  %v687_v23 = vpop.f32.mrf.mxu1 }
 0x45e   :  { %v640_v24 = vadd.f32 %v639_v22, %v503_v19  ;;  %v688_v25 = vadd.f32 %v687_v23, %v503_v19 }
 0x45f   :  { %555 = vst [vmem:[#allocation3] sm:$0xff] %v551_v20 }
 0x460   :  { %v648_v26 = vmax.f32 %v640_v24, 0.0  ;;  %v696_v27 = vmax.f32 %v688_v25, 0.0 }
 0x462   :  { %v543_v28 = vpop.f32.mrf.mxu2  ;;  %v591_v29 = vpop.f32.mrf.mxu3  ;;  %v729_v61 = vpack.c.bf16 %v648_v26, %v647_v13  ;;  %v730_v62 = vpack.c.bf16 %v696_v27, %v695_v14 }
 0x463   :  { %v544_v30 = vadd.f32 %v543_v28, %v503_v19  ;;  %v592_v31 = vadd.f32 %v591_v29, %v503_v19  ;;  %v2289_v19 = vpop.permute.xlu1 %750 }
 0x465   :  { %v552_v32 = vmax.f32 %v544_v30, 0.0  ;;  %v600_v33 = vmax.f32 %v592_v31, 0.0  ;;  %v642_v34 = vpop.f32.mrf.mxu0  ;;  %v690_v35 = vpop.f32.mrf.mxu1 }
 0x466   :  { %v643_v36 = vadd.f32 %v642_v34, %v508_v7  ;;  %v691_v37 = vadd.f32 %v690_v35, %v508_v7  ;;  %v2303_v30 = vpop.permute.xlu2 %755 }
 0x467   :  { %v727_v2 = vpack.c.bf16 %v552_v32, %v551_v20  ;;  %v728_v3 = vpack.c.bf16 %v600_v33, %v599_v21  ;;  %v1952_v33 = vld [vmem:[%s2871_s7 + $0x48] sm:$0xff] }
 0x468   :  { %v649_v38 = vmax.f32 %v643_v36, 0.0  ;;  %v697_v39 = vmax.f32 %v691_v37, 0.0 }
 0x46a   :  { %v546_v40 = vpop.f32.mrf.mxu2  ;;  %v594_v41 = vpop.f32.mrf.mxu3 }
 0x46b   :  { %v547_v42 = vadd.f32 %v546_v40, %v508_v7  ;;  %v595_v43 = vadd.f32 %v594_v41, %v508_v7  ;;  %v1947_v7 = vld [vmem:[%s2871_s7 + $0x20] sm:$0xff] }
 0x46d   :  { %v553_v45 = vmax.f32 %v547_v42, 0.0  ;;  %v601_v46 = vmax.f32 %v595_v43, 0.0  ;;  %v644_v47 = vpop.f32.mrf.mxu0  ;;  %v692_v48 = vpop.f32.mrf.mxu1 }
 0x46e   :  { %v645_v49 = vadd.f32 %v644_v47, %v513_v44  ;;  %v693_v50 = vadd.f32 %v692_v48, %v513_v44 }
 0x470   :  { %v650_v51 = vmax.f32 %v645_v49, 0.0  ;;  %v698_v52 = vmax.f32 %v693_v50, 0.0 }
 0x472   :  { %v548_v53 = vpop.f32.mrf.mxu2  ;;  %v596_v54 = vpop.f32.mrf.mxu3  ;;  %v733_v55 = vpack.c.bf16 %v650_v51, %v649_v38  ;;  %v734_v56 = vpack.c.bf16 %v698_v52, %v697_v39 }
 0x473   :  { %v549_v57 = vadd.f32 %v548_v53, %v513_v44  ;;  %v597_v58 = vadd.f32 %v596_v54, %v513_v44  ;;  %v2326_v44 = vpop.permute.xlu0 %760 }
 0x474   :  { %879 = vmatpush.bf16.msra.mxu0 %v733_v55  ;;  %908 = vmatpush.bf16.msrb.mxu1 %v734_v56 }
 0x475   :  { %v554_v59 = vmax.f32 %v549_v57, 0.0  ;;  %v602_v60 = vmax.f32 %v597_v58, 0.0  ;;  %v2346_v57 = vpop.permute.xlu1 %765 }
 0x477   :  { %v731_v63 = vpack.c.bf16 %v554_v59, %v553_v45  ;;  %v732_v0 = vpack.c.bf16 %v602_v60, %v601_v46  ;;  %v1953_v60 = vld [vmem:[%s2871_s7 + $0x50] sm:$0xff] }
 0x478   :  { %880 = vmatpush.bf16.msra.mxu0 %v729_v61  ;;  %909 = vmatpush.bf16.msrb.mxu1 %v730_v62 }
 0x479   :  { %821 = vmatpush.bf16.msra.mxu2 %v731_v63  ;;  %850 = vmatpush.bf16.msra.mxu3 %v732_v0 }
 0x47b   :  { %1799 = vmatmul.msk.bf16.vlgmr.msra.gmra.mxu0 %vm367_vm10, %v1943_v1  ;;  %1803 = vmatmul.msk.bf16.vlgmr.msrb.gmra.mxu1 %vm367_vm10, %v1943_v1 }
 0x47c   :  { %1100 = vmatpush.bf16.msrb.mxu0 %v733_v55  ;;  %1129 = vmatpush.bf16.msra.mxu1 %v734_v56 }
 0x47d   :  { %822 = vmatpush.bf16.msra.mxu2 %v727_v2  ;;  %851 = vmatpush.bf16.msra.mxu3 %v728_v3 }
 0x480   :  { %1101 = vmatpush.bf16.msrb.mxu0 %v729_v61  ;;  %1130 = vmatpush.bf16.msra.mxu1 %v730_v62 }
 0x481   :  { %1042 = vmatpush.bf16.msrb.mxu2 %v731_v63  ;;  %1071 = vmatpush.bf16.msrb.mxu3 %v732_v0 }
 0x482   :  { %1791 = vmatmul.msk.bf16.vlgmr.msra.gmra.mxu2 %vm367_vm10, %v1943_v1  ;;  %1795 = vmatmul.msk.bf16.vlgmr.msra.gmra.mxu3 %vm367_vm10, %v1943_v1 }
 0x484   :  { %1321 = vmatpush.bf16.msra.mxu0 %v733_v55  ;;  %1350 = vmatpush.bf16.msrb.mxu1 %v734_v56 }
 0x485   :  { %1043 = vmatpush.bf16.msrb.mxu2 %v727_v2  ;;  %1072 = vmatpush.bf16.msrb.mxu3 %v728_v3 }
 0x488   :  { %1322 = vmatpush.bf16.msra.mxu0 %v729_v61  ;;  %1351 = vmatpush.bf16.msrb.mxu1 %v730_v62 }
 0x489   :  { %1263 = vmatpush.bf16.msra.mxu2 %v731_v63  ;;  %1292 = vmatpush.bf16.msra.mxu3 %v732_v0 }
 0x48b   :  { %1800 = vmatmul.msk.bf16.gmra.mxu0 %vm367_vm10, %v1944_v4  ;;  %1804 = vmatmul.msk.bf16.gmra.mxu1 %vm367_vm10, %v1944_v4 }
 0x48d   :  { %1264 = vmatpush.bf16.msra.mxu2 %v727_v2  ;;  %1293 = vmatpush.bf16.msra.mxu3 %v728_v3 }
 0x492   :  { %1792 = vmatmul.msk.bf16.gmra.mxu2 %vm367_vm10, %v1944_v4  ;;  %1796 = vmatmul.msk.bf16.gmra.mxu3 %vm367_vm10, %v1944_v4 }
 0x49b   :  { %1801 = vmatmul.msk.bf16.gmra.mxu0 %vm367_vm10, %v1945_v5  ;;  %1805 = vmatmul.msk.bf16.gmra.mxu1 %vm367_vm10, %v1945_v5 }
 0x4a2   :  { %1793 = vmatmul.msk.bf16.gmra.mxu2 %vm367_vm10, %v1945_v5  ;;  %1797 = vmatmul.msk.bf16.gmra.mxu3 %vm367_vm10, %v1945_v5 }
 0x4ab   :  { %1802 = vmatmul.msk.bf16.gmra.mxu0 %vm367_vm10, %v1946_v6  ;;  %1806 = vmatmul.msk.bf16.gmra.mxu1 %vm367_vm10, %v1946_v6 }
 0x4b2   :  { %1794 = vmatmul.msk.bf16.gmra.mxu2 %vm367_vm10, %v1946_v6  ;;  %1798 = vmatmul.msk.bf16.gmra.mxu3 %vm367_vm10, %v1946_v6 }
 0x4bb   :  { %1839 = vmatmul.msk.bf16.vlgmr.msrb.gmra.mxu0 %vm367_vm10, %v1947_v7  ;;  %1843 = vmatmul.msk.bf16.vlgmr.msra.gmra.mxu1 %vm367_vm10, %v1947_v7 }
 0x4bc   :  { %1542 = vmatpush.bf16.msrb.mxu0 %v733_v55  ;;  %1571 = vmatpush.bf16.msra.mxu1 %v734_v56 }
 0x4c0   :  { %1543 = vmatpush.bf16.msrb.mxu0 %v729_v61  ;;  %1572 = vmatpush.bf16.msra.mxu1 %v730_v62 }
 0x4c2   :  { %1831 = vmatmul.msk.bf16.vlgmr.msrb.gmra.mxu2 %vm367_vm10, %v1947_v7  ;;  %1835 = vmatmul.msk.bf16.vlgmr.msrb.gmra.mxu3 %vm367_vm10, %v1947_v7  ;;  %v2369_v7 = vpop.permute.xlu2 %770 }
 0x4c3   :  { %1484 = vmatpush.bf16.msrb.mxu2 %v731_v63  ;;  %1513 = vmatpush.bf16.msrb.mxu3 %v732_v0 }
 0x4c7   :  { %1485 = vmatpush.bf16.msrb.mxu2 %v727_v2  ;;  %1514 = vmatpush.bf16.msrb.mxu3 %v728_v3 }
 0x4cb   :  { %1840 = vmatmul.msk.bf16.gmra.mxu0 %vm367_vm10, %v1948_v8  ;;  %1844 = vmatmul.msk.bf16.gmra.mxu1 %vm367_vm10, %v1948_v8 }
 0x4d2   :  { %1832 = vmatmul.msk.bf16.gmra.mxu2 %vm367_vm10, %v1948_v8  ;;  %1836 = vmatmul.msk.bf16.gmra.mxu3 %vm367_vm10, %v1948_v8 }
 0x4db   :  { %1841 = vmatmul.msk.bf16.gmra.mxu0 %vm367_vm10, %v1949_v9  ;;  %1845 = vmatmul.msk.bf16.gmra.mxu1 %vm367_vm10, %v1949_v9 }
 0x4e2   :  { %1833 = vmatmul.msk.bf16.gmra.mxu2 %vm367_vm10, %v1949_v9  ;;  %1837 = vmatmul.msk.bf16.gmra.mxu3 %vm367_vm10, %v1949_v9 }
 0x4eb   :  { %1842 = vmatmul.msk.bf16.gmra.mxu0 %vm367_vm10, %v1950_v10  ;;  %1846 = vmatmul.msk.bf16.gmra.mxu1 %vm367_vm10, %v1950_v10 }
 0x4f2   :  { %1834 = vmatmul.msk.bf16.gmra.mxu2 %vm367_vm10, %v1950_v10  ;;  %1838 = vmatmul.msk.bf16.gmra.mxu3 %vm367_vm10, %v1950_v10 }
 0x4f8   :  { %v882_v13 = vpop.f32.mrf.mxu0  ;;  %v911_v14 = vpop.f32.mrf.mxu1 }
 0x4f9   :  { %v883_v15 = vadd.f32 %v882_v13, %v2274_v11  ;;  %v912_v16 = vadd.f32 %v911_v14, %v2274_v11 }
 0x4fb   :  { %v933_v17 = vmax.f32 %v883_v15, 0.0  ;;  %v934_v18 = vmax.f32 %v912_v16, 0.0  ;;  %1879 = vmatmul.msk.bf16.vlgmr.msra.gmra.mxu0 %vm367_vm10, %v1951_v12  ;;  %1883 = vmatmul.msk.bf16.vlgmr.msrb.gmra.mxu1 %vm367_vm10, %v1951_v12 }
 0x4fd   :  { %965 = vst [vmem:[%s2872_s14 + $0x10] sm:$0xff] %v933_v17 }
 0x4fe   :  { %966 = vst [vmem:[%s2872_s14 + $0x18] sm:$0xff] %v934_v18 }
 0x500   :  { %v884_v20 = vpop.f32.mrf.mxu0  ;;  %v913_v21 = vpop.f32.mrf.mxu1 }
 0x501   :  { %v885_v22 = vadd.f32 %v884_v20, %v2289_v19  ;;  %v914_v23 = vadd.f32 %v913_v21, %v2289_v19 }
 0x502   :  { %1871 = vmatmul.msk.bf16.vlgmr.msra.gmra.mxu2 %vm367_vm10, %v1951_v12  ;;  %1875 = vmatmul.msk.bf16.vlgmr.msra.gmra.mxu3 %vm367_vm10, %v1951_v12 }
 0x503   :  { %v937_v24 = vmax.f32 %v885_v22, 0.0  ;;  %v938_v25 = vmax.f32 %v914_v23, 0.0  ;;  %v2389_v22 = vpop.permute.xlu0 %775 }
 0x505   :  { %v824_v26 = vpop.f32.mrf.mxu2  ;;  %v853_v27 = vpop.f32.mrf.mxu3  ;;  %969 = vst [vmem:[%s2872_s14 + $0x90] sm:$0xff] %v937_v24 }
 0x506   :  { %v825_v28 = vadd.f32 %v824_v26, %v2274_v11  ;;  %v854_v29 = vadd.f32 %v853_v27, %v2274_v11  ;;  %970 = vst [vmem:[%s2872_s14 + $0x98] sm:$0xff] %v938_v25  ;;  %v1954_v25 = vld [vmem:[%s2871_s7 + $0x58] sm:$0xff] }
 0x508   :  { %v931_v31 = vmax.f32 %v825_v28, 0.0  ;;  %v932_v32 = vmax.f32 %v854_v29, 0.0  ;;  %v887_v34 = vpop.f32.mrf.mxu0  ;;  %v916_v35 = vpop.f32.mrf.mxu1 }
 0x509   :  { %v888_v36 = vadd.f32 %v887_v34, %v2303_v30  ;;  %v917_v37 = vadd.f32 %v916_v35, %v2303_v30 }
 0x50a   :  { %963 = vst [vmem:[%s2872_s14] sm:$0xff] %v931_v31 }
 0x50b   :  { %964 = vst [vmem:[%s2872_s14 + $0x8] sm:$0xff] %v932_v32  ;;  %v941_v38 = vmax.f32 %v888_v36, 0.0  ;;  %v942_v39 = vmax.f32 %v917_v37, 0.0  ;;  %1880 = vmatmul.msk.bf16.gmra.mxu0 %vm367_vm10, %v1952_v33  ;;  %1884 = vmatmul.msk.bf16.gmra.mxu1 %vm367_vm10, %v1952_v33  ;;  %v2412_v37 = vpop.permute.xlu1 %780 }
 0x50d   :  { %v826_v40 = vpop.f32.mrf.mxu2  ;;  %v855_v41 = vpop.f32.mrf.mxu3  ;;  %973 = vst [vmem:[%s2872_s14 + $0x110] sm:$0xff] %v941_v38 }
 0x50e   :  { %v827_v42 = vadd.f32 %v826_v40, %v2289_v19  ;;  %v856_v43 = vadd.f32 %v855_v41, %v2289_v19  ;;  %974 = vst [vmem:[%s2872_s14 + $0x118] sm:$0xff] %v942_v39 }
 0x510   :  { %v935_v45 = vmax.f32 %v827_v42, 0.0  ;;  %v936_v46 = vmax.f32 %v856_v43, 0.0  ;;  %v889_v47 = vpop.f32.mrf.mxu0  ;;  %v918_v48 = vpop.f32.mrf.mxu1 }
 0x511   :  { %v890_v49 = vadd.f32 %v889_v47, %v2326_v44  ;;  %v919_v50 = vadd.f32 %v918_v48, %v2326_v44 }
 0x512   :  { %967 = vst [vmem:[%s2872_s14 + $0x80] sm:$0xff] %v935_v45  ;;  %1872 = vmatmul.msk.bf16.gmra.mxu2 %vm367_vm10, %v1952_v33  ;;  %1876 = vmatmul.msk.bf16.gmra.mxu3 %vm367_vm10, %v1952_v33 }
 0x513   :  { %968 = vst [vmem:[%s2872_s14 + $0x88] sm:$0xff] %v936_v46  ;;  %v945_v51 = vmax.f32 %v890_v49, 0.0  ;;  %v946_v52 = vmax.f32 %v919_v50, 0.0 }
 0x515   :  { %v829_v53 = vpop.f32.mrf.mxu2  ;;  %v858_v54 = vpop.f32.mrf.mxu3  ;;  %977 = vst [vmem:[%s2872_s14 + $0x190] sm:$0xff] %v945_v51 }
 0x516   :  { %v830_v55 = vadd.f32 %v829_v53, %v2303_v30  ;;  %v859_v56 = vadd.f32 %v858_v54, %v2303_v30  ;;  %978 = vst [vmem:[%s2872_s14 + $0x198] sm:$0xff] %v946_v52  ;;  %v1955_v53 = vld [vmem:[%s2871_s7 + $0x60] sm:$0xff] }
 0x518   :  { %v939_v58 = vmax.f32 %v830_v55, 0.0  ;;  %v940_v59 = vmax.f32 %v859_v56, 0.0  ;;  %v892_v61 = vpop.f32.mrf.mxu0  ;;  %v921_v62 = vpop.f32.mrf.mxu1 }
 0x519   :  { %v893_v63 = vadd.f32 %v892_v61, %v2346_v57  ;;  %v922_v0 = vadd.f32 %v921_v62, %v2346_v57 }
 0x51a   :  { %971 = vst [vmem:[%s2872_s14 + $0x100] sm:$0xff] %v939_v58 }
 0x51b   :  { %972 = vst [vmem:[%s2872_s14 + $0x108] sm:$0xff] %v940_v59  ;;  %v949_v1 = vmax.f32 %v893_v63, 0.0  ;;  %v950_v2 = vmax.f32 %v922_v0, 0.0  ;;  %1881 = vmatmul.msk.bf16.gmra.mxu0 %vm367_vm10, %v1953_v60  ;;  %1885 = vmatmul.msk.bf16.gmra.mxu1 %vm367_vm10, %v1953_v60 }
 0x51d   :  { %v831_v3 = vpop.f32.mrf.mxu2  ;;  %v860_v4 = vpop.f32.mrf.mxu3  ;;  %981 = vst [vmem:[%s2872_s14 + $0x210] sm:$0xff] %v949_v1 }
 0x51e   :  { %v832_v5 = vadd.f32 %v831_v3, %v2326_v44  ;;  %v861_v6 = vadd.f32 %v860_v4, %v2326_v44  ;;  %982 = vst [vmem:[%s2872_s14 + $0x218] sm:$0xff] %v950_v2 }
 0x520   :  { %v943_v8 = vmax.f32 %v832_v5, 0.0  ;;  %v944_v9 = vmax.f32 %v861_v6, 0.0  ;;  %v894_v10 = vpop.f32.mrf.mxu0  ;;  %v923_v12 = vpop.f32.mrf.mxu1 }
 0x521   :  { %v895_v13 = vadd.f32 %v894_v10, %v2369_v7  ;;  %v924_v14 = vadd.f32 %v923_v12, %v2369_v7 }
 0x522   :  { %975 = vst [vmem:[%s2872_s14 + $0x180] sm:$0xff] %v943_v8  ;;  %1873 = vmatmul.msk.bf16.gmra.mxu2 %vm367_vm10, %v1953_v60  ;;  %1877 = vmatmul.msk.bf16.gmra.mxu3 %vm367_vm10, %v1953_v60 }
 0x523   :  { %976 = vst [vmem:[%s2872_s14 + $0x188] sm:$0xff] %v944_v9  ;;  %v953_v15 = vmax.f32 %v895_v13, 0.0  ;;  %v954_v16 = vmax.f32 %v924_v14, 0.0 }
 0x525   :  { %v834_v17 = vpop.f32.mrf.mxu2  ;;  %v863_v18 = vpop.f32.mrf.mxu3  ;;  %985 = vst [vmem:[%s2872_s14 + $0x290] sm:$0xff] %v953_v15 }
 0x526   :  { %v835_v20 = vadd.f32 %v834_v17, %v2346_v57  ;;  %v864_v21 = vadd.f32 %v863_v18, %v2346_v57  ;;  %986 = vst [vmem:[%s2872_s14 + $0x298] sm:$0xff] %v954_v16  ;;  %v1956_v17 = vld [vmem:[%s2871_s7 + $0x68] sm:$0xff] }
 0x528   :  { %v947_v23 = vmax.f32 %v835_v20, 0.0  ;;  %v948_v24 = vmax.f32 %v864_v21, 0.0  ;;  %v897_v26 = vpop.f32.mrf.mxu0  ;;  %v926_v27 = vpop.f32.mrf.mxu1 }
 0x529   :  { %v898_v28 = vadd.f32 %v897_v26, %v2389_v22  ;;  %v927_v29 = vadd.f32 %v926_v27, %v2389_v22 }
 0x52a   :  { %979 = vst [vmem:[%s2872_s14 + $0x200] sm:$0xff] %v947_v23 }
 0x52b   :  { %980 = vst [vmem:[%s2872_s14 + $0x208] sm:$0xff] %v948_v24  ;;  %v957_v31 = vmax.f32 %v898_v28, 0.0  ;;  %v958_v32 = vmax.f32 %v927_v29, 0.0  ;;  %1882 = vmatmul.msk.bf16.gmra.mxu0 %vm367_vm10, %v1954_v25  ;;  %1886 = vmatmul.msk.bf16.gmra.mxu1 %vm367_vm10, %v1954_v25 }
 0x52d   :  { %v836_v33 = vpop.f32.mrf.mxu2  ;;  %v865_v34 = vpop.f32.mrf.mxu3  ;;  %989 = vst [vmem:[%s2872_s14 + $0x310] sm:$0xff] %v957_v31 }
 0x52e   :  { %v837_v35 = vadd.f32 %v836_v33, %v2369_v7  ;;  %v866_v36 = vadd.f32 %v865_v34, %v2369_v7  ;;  %990 = vst [vmem:[%s2872_s14 + $0x318] sm:$0xff] %v958_v32 }
 0x530   :  { %v951_v38 = vmax.f32 %v837_v35, 0.0  ;;  %v952_v39 = vmax.f32 %v866_v36, 0.0  ;;  %v899_v40 = vpop.f32.mrf.mxu0  ;;  %v928_v41 = vpop.f32.mrf.mxu1 }
 0x531   :  { %v900_v42 = vadd.f32 %v899_v40, %v2412_v37  ;;  %v929_v43 = vadd.f32 %v928_v41, %v2412_v37 }
 0x532   :  { %983 = vst [vmem:[%s2872_s14 + $0x280] sm:$0xff] %v951_v38  ;;  %1874 = vmatmul.msk.bf16.gmra.mxu2 %vm367_vm10, %v1954_v25  ;;  %1878 = vmatmul.msk.bf16.gmra.mxu3 %vm367_vm10, %v1954_v25 }
 0x533   :  { %984 = vst [vmem:[%s2872_s14 + $0x288] sm:$0xff] %v952_v39  ;;  %v961_v45 = vmax.f32 %v900_v42, 0.0  ;;  %v962_v46 = vmax.f32 %v929_v43, 0.0 }
 0x535   :  { %v839_v47 = vpop.f32.mrf.mxu2  ;;  %v868_v48 = vpop.f32.mrf.mxu3  ;;  %993 = vst [vmem:[%s2872_s14 + $0x390] sm:$0xff] %v961_v45 }
 0x536   :  { %v840_v49 = vadd.f32 %v839_v47, %v2389_v22  ;;  %v869_v50 = vadd.f32 %v868_v48, %v2389_v22  ;;  %994 = vst [vmem:[%s2872_s14 + $0x398] sm:$0xff] %v962_v46  ;;  %v1957_v47 = vld [vmem:[%s2871_s7 + $0x70] sm:$0xff] }
 0x538   :  { %v955_v51 = vmax.f32 %v840_v49, 0.0  ;;  %v956_v52 = vmax.f32 %v869_v50, 0.0  ;;  %v1103_v54 = vpop.f32.mrf.mxu0  ;;  %v1132_v55 = vpop.f32.mrf.mxu1 }
 0x539   :  { %v1104_v56 = vadd.f32 %v1103_v54, %v2274_v11  ;;  %v1133_v58 = vadd.f32 %v1132_v55, %v2274_v11 }
 0x53a   :  { %987 = vst [vmem:[%s2872_s14 + $0x300] sm:$0xff] %v955_v51 }
 0x53b   :  { %988 = vst [vmem:[%s2872_s14 + $0x308] sm:$0xff] %v956_v52  ;;  %v1154_v59 = vmax.f32 %v1104_v56, 0.0  ;;  %v1155_v60 = vmax.f32 %v1133_v58, 0.0  ;;  %1919 = vmatmul.msk.bf16.vlgmr.msrb.gmra.mxu0 %vm367_vm10, %v1955_v53  ;;  %1923 = vmatmul.msk.bf16.vlgmr.msra.gmra.mxu1 %vm367_vm10, %v1955_v53 }
 0x53d   :  { %v841_v61 = vpop.f32.mrf.mxu2  ;;  %v870_v62 = vpop.f32.mrf.mxu3  ;;  %1186 = vst [vmem:[%s2872_s14 + $0x30] sm:$0xff] %v1154_v59 }
 0x53e   :  { %v842_v63 = vadd.f32 %v841_v61, %v2412_v37  ;;  %v871_v0 = vadd.f32 %v870_v62, %v2412_v37  ;;  %1187 = vst [vmem:[%s2872_s14 + $0x38] sm:$0xff] %v1155_v60 }
 0x540   :  { %v959_v1 = vmax.f32 %v842_v63, 0.0  ;;  %v960_v2 = vmax.f32 %v871_v0, 0.0  ;;  %v1105_v3 = vpop.f32.mrf.mxu0  ;;  %v1134_v4 = vpop.f32.mrf.mxu1 }
 0x541   :  { %v1106_v5 = vadd.f32 %v1105_v3, %v2289_v19  ;;  %v1135_v6 = vadd.f32 %v1134_v4, %v2289_v19 }
 0x542   :  { %991 = vst [vmem:[%s2872_s14 + $0x380] sm:$0xff] %v959_v1  ;;  %1911 = vmatmul.msk.bf16.vlgmr.msrb.gmra.mxu2 %vm367_vm10, %v1955_v53  ;;  %1915 = vmatmul.msk.bf16.vlgmr.msrb.gmra.mxu3 %vm367_vm10, %v1955_v53 }
 0x543   :  { %992 = vst [vmem:[%s2872_s14 + $0x388] sm:$0xff] %v960_v2  ;;  %v1158_v8 = vmax.f32 %v1106_v5, 0.0  ;;  %v1159_v9 = vmax.f32 %v1135_v6, 0.0 }
 0x545   :  { %v1045_v10 = vpop.f32.mrf.mxu2  ;;  %v1074_v12 = vpop.f32.mrf.mxu3  ;;  %1190 = vst [vmem:[%s2872_s14 + $0xb0] sm:$0xff] %v1158_v8 }
 0x546   :  { %v1046_v13 = vadd.f32 %v1045_v10, %v2274_v11  ;;  %v1075_v14 = vadd.f32 %v1074_v12, %v2274_v11  ;;  %1191 = vst [vmem:[%s2872_s14 + $0xb8] sm:$0xff] %v1159_v9  ;;  %v1958_v10 = vld [vmem:[%s2871_s7 + $0x78] sm:$0xff] }
 0x548   :  { %v1152_v15 = vmax.f32 %v1046_v13, 0.0  ;;  %v1153_v16 = vmax.f32 %v1075_v14, 0.0  ;;  %v1108_v18 = vpop.f32.mrf.mxu0  ;;  %v1137_v20 = vpop.f32.mrf.mxu1 }
 0x549   :  { %v1109_v21 = vadd.f32 %v1108_v18, %v2303_v30  ;;  %v1138_v23 = vadd.f32 %v1137_v20, %v2303_v30 }
 0x54a   :  { %1184 = vst [vmem:[%s2872_s14 + $0x20] sm:$0xff] %v1152_v15 }
 0x54b   :  { %1185 = vst [vmem:[%s2872_s14 + $0x28] sm:$0xff] %v1153_v16  ;;  %v1162_v24 = vmax.f32 %v1109_v21, 0.0  ;;  %v1163_v25 = vmax.f32 %v1138_v23, 0.0  ;;  %1920 = vmatmul.msk.bf16.gmra.mxu0 %vm367_vm10, %v1956_v17  ;;  %1924 = vmatmul.msk.bf16.gmra.mxu1 %vm367_vm10, %v1956_v17 }
 0x54d   :  { %v1047_v26 = vpop.f32.mrf.mxu2  ;;  %v1076_v27 = vpop.f32.mrf.mxu3  ;;  %1194 = vst [vmem:[%s2872_s14 + $0x130] sm:$0xff] %v1162_v24 }
 0x54e   :  { %v1048_v28 = vadd.f32 %v1047_v26, %v2289_v19  ;;  %v1077_v29 = vadd.f32 %v1076_v27, %v2289_v19  ;;  %1195 = vst [vmem:[%s2872_s14 + $0x138] sm:$0xff] %v1163_v25 }
 0x550   :  { %v1156_v31 = vmax.f32 %v1048_v28, 0.0  ;;  %v1157_v32 = vmax.f32 %v1077_v29, 0.0  ;;  %v1110_v33 = vpop.f32.mrf.mxu0  ;;  %v1139_v34 = vpop.f32.mrf.mxu1 }
 0x551   :  { %v1111_v35 = vadd.f32 %v1110_v33, %v2326_v44  ;;  %v1140_v36 = vadd.f32 %v1139_v34, %v2326_v44 }
 0x552   :  { %1188 = vst [vmem:[%s2872_s14 + $0xa0] sm:$0xff] %v1156_v31  ;;  %1912 = vmatmul.msk.bf16.gmra.mxu2 %vm367_vm10, %v1956_v17  ;;  %1916 = vmatmul.msk.bf16.gmra.mxu3 %vm367_vm10, %v1956_v17 }
 0x553   :  { %1189 = vst [vmem:[%s2872_s14 + $0xa8] sm:$0xff] %v1157_v32  ;;  %v1166_v38 = vmax.f32 %v1111_v35, 0.0  ;;  %v1167_v39 = vmax.f32 %v1140_v36, 0.0 }
 0x555   :  { %v1050_v40 = vpop.f32.mrf.mxu2  ;;  %v1079_v41 = vpop.f32.mrf.mxu3  ;;  %1198 = vst [vmem:[%s2872_s14 + $0x1b0] sm:$0xff] %v1166_v38 }
 0x556   :  { %v1051_v42 = vadd.f32 %v1050_v40, %v2303_v30  ;;  %v1080_v43 = vadd.f32 %v1079_v41, %v2303_v30  ;;  %1199 = vst [vmem:[%s2872_s14 + $0x1b8] sm:$0xff] %v1167_v39 }
 0x558   :  { %v1160_v45 = vmax.f32 %v1051_v42, 0.0  ;;  %v1161_v46 = vmax.f32 %v1080_v43, 0.0  ;;  %v1113_v48 = vpop.f32.mrf.mxu0  ;;  %v1142_v49 = vpop.f32.mrf.mxu1 }
 0x559   :  { %v1114_v50 = vadd.f32 %v1113_v48, %v2346_v57  ;;  %v1143_v51 = vadd.f32 %v1142_v49, %v2346_v57 }
 0x55a   :  { %1192 = vst [vmem:[%s2872_s14 + $0x120] sm:$0xff] %v1160_v45 }
 0x55b   :  { %1193 = vst [vmem:[%s2872_s14 + $0x128] sm:$0xff] %v1161_v46  ;;  %v1170_v52 = vmax.f32 %v1114_v50, 0.0  ;;  %v1171_v53 = vmax.f32 %v1143_v51, 0.0  ;;  %1921 = vmatmul.msk.bf16.gmra.mxu0 %vm367_vm10, %v1957_v47  ;;  %1925 = vmatmul.msk.bf16.gmra.mxu1 %vm367_vm10, %v1957_v47 }
 0x55d   :  { %v1052_v54 = vpop.f32.mrf.mxu2  ;;  %v1081_v55 = vpop.f32.mrf.mxu3  ;;  %1202 = vst [vmem:[%s2872_s14 + $0x230] sm:$0xff] %v1170_v52 }
 0x55e   :  { %v1053_v56 = vadd.f32 %v1052_v54, %v2326_v44  ;;  %v1082_v58 = vadd.f32 %v1081_v55, %v2326_v44  ;;  %1203 = vst [vmem:[%s2872_s14 + $0x238] sm:$0xff] %v1171_v53 }
 0x560   :  { %v1164_v59 = vmax.f32 %v1053_v56, 0.0  ;;  %v1165_v60 = vmax.f32 %v1082_v58, 0.0  ;;  %v1115_v61 = vpop.f32.mrf.mxu0  ;;  %v1144_v62 = vpop.f32.mrf.mxu1 }
 0x561   :  { %v1116_v63 = vadd.f32 %v1115_v61, %v2369_v7  ;;  %v1145_v0 = vadd.f32 %v1144_v62, %v2369_v7 }
 0x562   :  { %1196 = vst [vmem:[%s2872_s14 + $0x1a0] sm:$0xff] %v1164_v59  ;;  %1913 = vmatmul.msk.bf16.gmra.mxu2 %vm367_vm10, %v1957_v47  ;;  %1917 = vmatmul.msk.bf16.gmra.mxu3 %vm367_vm10, %v1957_v47 }
 0x563   :  { %1197 = vst [vmem:[%s2872_s14 + $0x1a8] sm:$0xff] %v1165_v60  ;;  %v1174_v1 = vmax.f32 %v1116_v63, 0.0  ;;  %v1175_v2 = vmax.f32 %v1145_v0, 0.0 }
 0x565   :  { %v1055_v3 = vpop.f32.mrf.mxu2  ;;  %v1084_v4 = vpop.f32.mrf.mxu3  ;;  %1206 = vst [vmem:[%s2872_s14 + $0x2b0] sm:$0xff] %v1174_v1 }
 0x566   :  { %v1056_v5 = vadd.f32 %v1055_v3, %v2346_v57  ;;  %v1085_v6 = vadd.f32 %v1084_v4, %v2346_v57  ;;  %1207 = vst [vmem:[%s2872_s14 + $0x2b8] sm:$0xff] %v1175_v2 }
 0x568   :  { %v1168_v8 = vmax.f32 %v1056_v5, 0.0  ;;  %v1169_v9 = vmax.f32 %v1085_v6, 0.0  ;;  %v1118_v12 = vpop.f32.mrf.mxu0  ;;  %v1147_v13 = vpop.f32.mrf.mxu1 }
 0x569   :  { %v1119_v14 = vadd.f32 %v1118_v12, %v2389_v22  ;;  %v1148_v15 = vadd.f32 %v1147_v13, %v2389_v22 }
 0x56a   :  { %1200 = vst [vmem:[%s2872_s14 + $0x220] sm:$0xff] %v1168_v8 }
 0x56b   :  { %1201 = vst [vmem:[%s2872_s14 + $0x228] sm:$0xff] %v1169_v9  ;;  %v1178_v16 = vmax.f32 %v1119_v14, 0.0  ;;  %v1179_v17 = vmax.f32 %v1148_v15, 0.0  ;;  %1922 = vmatmul.msk.bf16.gmra.mxu0 %vm367_vm10, %v1958_v10  ;;  %1926 = vmatmul.msk.bf16.gmra.mxu1 %vm367_vm10, %v1958_v10 }
 0x56d   :  { %v1057_v18 = vpop.f32.mrf.mxu2  ;;  %v1086_v20 = vpop.f32.mrf.mxu3  ;;  %1210 = vst [vmem:[%s2872_s14 + $0x330] sm:$0xff] %v1178_v16 }
 0x56e   :  { %v1058_v21 = vadd.f32 %v1057_v18, %v2369_v7  ;;  %v1087_v23 = vadd.f32 %v1086_v20, %v2369_v7  ;;  %1211 = vst [vmem:[%s2872_s14 + $0x338] sm:$0xff] %v1179_v17 }
 0x570   :  { %v1172_v24 = vmax.f32 %v1058_v21, 0.0  ;;  %v1173_v25 = vmax.f32 %v1087_v23, 0.0  ;;  %v1120_v26 = vpop.f32.mrf.mxu0  ;;  %v1149_v27 = vpop.f32.mrf.mxu1 }
 0x571   :  { %v1121_v28 = vadd.f32 %v1120_v26, %v2412_v37  ;;  %v1150_v29 = vadd.f32 %v1149_v27, %v2412_v37 }
 0x572   :  { %1204 = vst [vmem:[%s2872_s14 + $0x2a0] sm:$0xff] %v1172_v24  ;;  %1914 = vmatmul.msk.bf16.gmra.mxu2 %vm367_vm10, %v1958_v10  ;;  %1918 = vmatmul.msk.bf16.gmra.mxu3 %vm367_vm10, %v1958_v10 }
 0x573   :  { %1205 = vst [vmem:[%s2872_s14 + $0x2a8] sm:$0xff] %v1173_v25  ;;  %v1182_v31 = vmax.f32 %v1121_v28, 0.0  ;;  %v1183_v32 = vmax.f32 %v1150_v29, 0.0 }
 0x575   :  { %v1060_v33 = vpop.f32.mrf.mxu2  ;;  %v1089_v34 = vpop.f32.mrf.mxu3  ;;  %1214 = vst [vmem:[%s2872_s14 + $0x3b0] sm:$0xff] %v1182_v31 }
 0x576   :  { %v1061_v35 = vadd.f32 %v1060_v33, %v2389_v22  ;;  %v1090_v36 = vadd.f32 %v1089_v34, %v2389_v22  ;;  %1215 = vst [vmem:[%s2872_s14 + $0x3b8] sm:$0xff] %v1183_v32 }
 0x578   :  { %v1176_v38 = vmax.f32 %v1061_v35, 0.0  ;;  %v1177_v39 = vmax.f32 %v1090_v36, 0.0  ;;  %v1324_v40 = vpop.f32.mrf.mxu0  ;;  %v1353_v41 = vpop.f32.mrf.mxu1 }
 0x579   :  { %v1325_v42 = vadd.f32 %v1324_v40, %v2274_v11  ;;  %v1354_v43 = vadd.f32 %v1353_v41, %v2274_v11 }
 0x57a   :  { %1208 = vst [vmem:[%s2872_s14 + $0x320] sm:$0xff] %v1176_v38 }
 0x57b   :  { %1209 = vst [vmem:[%s2872_s14 + $0x328] sm:$0xff] %v1177_v39  ;;  %v1375_v45 = vmax.f32 %v1325_v42, 0.0  ;;  %v1376_v46 = vmax.f32 %v1354_v43, 0.0 }
 0x57d   :  { %v1062_v47 = vpop.f32.mrf.mxu2  ;;  %v1091_v48 = vpop.f32.mrf.mxu3  ;;  %1407 = vst [vmem:[%s2872_s14 + $0x50] sm:$0xff] %v1375_v45 }
 0x57e   :  { %v1063_v49 = vadd.f32 %v1062_v47, %v2412_v37  ;;  %v1092_v50 = vadd.f32 %v1091_v48, %v2412_v37  ;;  %1408 = vst [vmem:[%s2872_s14 + $0x58] sm:$0xff] %v1376_v46 }
 0x580   :  { %v1180_v51 = vmax.f32 %v1063_v49, 0.0  ;;  %v1181_v52 = vmax.f32 %v1092_v50, 0.0  ;;  %v1326_v53 = vpop.f32.mrf.mxu0  ;;  %v1355_v54 = vpop.f32.mrf.mxu1 }
 0x581   :  { %v1327_v55 = vadd.f32 %v1326_v53, %v2289_v19  ;;  %v1356_v56 = vadd.f32 %v1355_v54, %v2289_v19 }
 0x582   :  { %1212 = vst [vmem:[%s2872_s14 + $0x3a0] sm:$0xff] %v1180_v51 }
 0x583   :  { %1213 = vst [vmem:[%s2872_s14 + $0x3a8] sm:$0xff] %v1181_v52  ;;  %v1379_v58 = vmax.f32 %v1327_v55, 0.0  ;;  %v1380_v59 = vmax.f32 %v1356_v56, 0.0 }
 0x585   :  { %v1266_v60 = vpop.f32.mrf.mxu2  ;;  %v1295_v61 = vpop.f32.mrf.mxu3  ;;  %1411 = vst [vmem:[%s2872_s14 + $0xd0] sm:$0xff] %v1379_v58 }
 0x586   :  { %v1267_v62 = vadd.f32 %v1266_v60, %v2274_v11  ;;  %v1296_v63 = vadd.f32 %v1295_v61, %v2274_v11  ;;  %1412 = vst [vmem:[%s2872_s14 + $0xd8] sm:$0xff] %v1380_v59 }
 0x588   :  { %v1373_v0 = vmax.f32 %v1267_v62, 0.0  ;;  %v1374_v1 = vmax.f32 %v1296_v63, 0.0  ;;  %v1329_v2 = vpop.f32.mrf.mxu0  ;;  %v1358_v3 = vpop.f32.mrf.mxu1 }
 0x589   :  { %v1330_v4 = vadd.f32 %v1329_v2, %v2303_v30  ;;  %v1359_v5 = vadd.f32 %v1358_v3, %v2303_v30 }
 0x58a   :  { %1405 = vst [vmem:[%s2872_s14 + $0x40] sm:$0xff] %v1373_v0 }
 0x58b   :  { %1406 = vst [vmem:[%s2872_s14 + $0x48] sm:$0xff] %v1374_v1  ;;  %v1383_v6 = vmax.f32 %v1330_v4, 0.0  ;;  %v1384_v8 = vmax.f32 %v1359_v5, 0.0 }
 0x58d   :  { %v1268_v9 = vpop.f32.mrf.mxu2  ;;  %v1297_v10 = vpop.f32.mrf.mxu3  ;;  %1415 = vst [vmem:[%s2872_s14 + $0x150] sm:$0xff] %v1383_v6 }
 0x58e   :  { %v1269_v12 = vadd.f32 %v1268_v9, %v2289_v19  ;;  %v1298_v13 = vadd.f32 %v1297_v10, %v2289_v19  ;;  %1416 = vst [vmem:[%s2872_s14 + $0x158] sm:$0xff] %v1384_v8 }
 0x590   :  { %v1377_v14 = vmax.f32 %v1269_v12, 0.0  ;;  %v1378_v15 = vmax.f32 %v1298_v13, 0.0  ;;  %v1331_v16 = vpop.f32.mrf.mxu0  ;;  %v1360_v17 = vpop.f32.mrf.mxu1 }
 0x591   :  { %v1332_v18 = vadd.f32 %v1331_v16, %v2326_v44  ;;  %v1361_v20 = vadd.f32 %v1360_v17, %v2326_v44 }
 0x592   :  { %1409 = vst [vmem:[%s2872_s14 + $0xc0] sm:$0xff] %v1377_v14 }
 0x593   :  { %1410 = vst [vmem:[%s2872_s14 + $0xc8] sm:$0xff] %v1378_v15  ;;  %v1387_v21 = vmax.f32 %v1332_v18, 0.0  ;;  %v1388_v23 = vmax.f32 %v1361_v20, 0.0 }
 0x595   :  { %v1271_v24 = vpop.f32.mrf.mxu2  ;;  %v1300_v25 = vpop.f32.mrf.mxu3  ;;  %1419 = vst [vmem:[%s2872_s14 + $0x1d0] sm:$0xff] %v1387_v21 }
 0x596   :  { %v1272_v26 = vadd.f32 %v1271_v24, %v2303_v30  ;;  %v1301_v27 = vadd.f32 %v1300_v25, %v2303_v30  ;;  %1420 = vst [vmem:[%s2872_s14 + $0x1d8] sm:$0xff] %v1388_v23 }
 0x598   :  { %v1381_v28 = vmax.f32 %v1272_v26, 0.0  ;;  %v1382_v29 = vmax.f32 %v1301_v27, 0.0  ;;  %v1334_v31 = vpop.f32.mrf.mxu0  ;;  %v1363_v32 = vpop.f32.mrf.mxu1 }
 0x599   :  { %v1335_v33 = vadd.f32 %v1334_v31, %v2346_v57  ;;  %v1364_v34 = vadd.f32 %v1363_v32, %v2346_v57 }
 0x59a   :  { %1413 = vst [vmem:[%s2872_s14 + $0x140] sm:$0xff] %v1381_v28 }
 0x59b   :  { %1414 = vst [vmem:[%s2872_s14 + $0x148] sm:$0xff] %v1382_v29  ;;  %v1391_v35 = vmax.f32 %v1335_v33, 0.0  ;;  %v1392_v36 = vmax.f32 %v1364_v34, 0.0 }
 0x59d   :  { %v1273_v38 = vpop.f32.mrf.mxu2  ;;  %v1302_v39 = vpop.f32.mrf.mxu3  ;;  %1423 = vst [vmem:[%s2872_s14 + $0x250] sm:$0xff] %v1391_v35 }
 0x59e   :  { %v1274_v40 = vadd.f32 %v1273_v38, %v2326_v44  ;;  %v1303_v41 = vadd.f32 %v1302_v39, %v2326_v44  ;;  %1424 = vst [vmem:[%s2872_s14 + $0x258] sm:$0xff] %v1392_v36 }
 0x5a0   :  { %v1385_v42 = vmax.f32 %v1274_v40, 0.0  ;;  %v1386_v43 = vmax.f32 %v1303_v41, 0.0  ;;  %v1336_v45 = vpop.f32.mrf.mxu0  ;;  %v1365_v46 = vpop.f32.mrf.mxu1 }
 0x5a1   :  { %v1337_v47 = vadd.f32 %v1336_v45, %v2369_v7  ;;  %v1366_v48 = vadd.f32 %v1365_v46, %v2369_v7 }
 0x5a2   :  { %1417 = vst [vmem:[%s2872_s14 + $0x1c0] sm:$0xff] %v1385_v42 }
 0x5a3   :  { %1418 = vst [vmem:[%s2872_s14 + $0x1c8] sm:$0xff] %v1386_v43  ;;  %v1395_v49 = vmax.f32 %v1337_v47, 0.0  ;;  %v1396_v50 = vmax.f32 %v1366_v48, 0.0 }
 0x5a5   :  { %v1276_v51 = vpop.f32.mrf.mxu2  ;;  %v1305_v52 = vpop.f32.mrf.mxu3  ;;  %1427 = vst [vmem:[%s2872_s14 + $0x2d0] sm:$0xff] %v1395_v49 }
 0x5a6   :  { %v1277_v53 = vadd.f32 %v1276_v51, %v2346_v57  ;;  %v1306_v54 = vadd.f32 %v1305_v52, %v2346_v57  ;;  %1428 = vst [vmem:[%s2872_s14 + $0x2d8] sm:$0xff] %v1396_v50 }
 0x5a8   :  { %v1389_v55 = vmax.f32 %v1277_v53, 0.0  ;;  %v1390_v56 = vmax.f32 %v1306_v54, 0.0  ;;  %v1339_v58 = vpop.f32.mrf.mxu0  ;;  %v1368_v59 = vpop.f32.mrf.mxu1 }
 0x5a9   :  { %v1340_v60 = vadd.f32 %v1339_v58, %v2389_v22  ;;  %v1369_v61 = vadd.f32 %v1368_v59, %v2389_v22 }
 0x5aa   :  { %1421 = vst [vmem:[%s2872_s14 + $0x240] sm:$0xff] %v1389_v55 }
 0x5ab   :  { %1422 = vst [vmem:[%s2872_s14 + $0x248] sm:$0xff] %v1390_v56  ;;  %v1399_v62 = vmax.f32 %v1340_v60, 0.0  ;;  %v1400_v63 = vmax.f32 %v1369_v61, 0.0 }
 0x5ad   :  { %v1278_v0 = vpop.f32.mrf.mxu2  ;;  %v1307_v1 = vpop.f32.mrf.mxu3  ;;  %1431 = vst [vmem:[%s2872_s14 + $0x350] sm:$0xff] %v1399_v62 }
 0x5ae   :  { %v1279_v2 = vadd.f32 %v1278_v0, %v2369_v7  ;;  %v1308_v3 = vadd.f32 %v1307_v1, %v2369_v7  ;;  %1432 = vst [vmem:[%s2872_s14 + $0x358] sm:$0xff] %v1400_v63 }
 0x5b0   :  { %v1393_v4 = vmax.f32 %v1279_v2, 0.0  ;;  %v1394_v5 = vmax.f32 %v1308_v3, 0.0  ;;  %v1341_v6 = vpop.f32.mrf.mxu0  ;;  %v1370_v8 = vpop.f32.mrf.mxu1 }
 0x5b1   :  { %v1342_v9 = vadd.f32 %v1341_v6, %v2412_v37  ;;  %v1371_v10 = vadd.f32 %v1370_v8, %v2412_v37 }
 0x5b2   :  { %1425 = vst [vmem:[%s2872_s14 + $0x2c0] sm:$0xff] %v1393_v4 }
 0x5b3   :  { %1426 = vst [vmem:[%s2872_s14 + $0x2c8] sm:$0xff] %v1394_v5  ;;  %v1403_v12 = vmax.f32 %v1342_v9, 0.0  ;;  %v1404_v13 = vmax.f32 %v1371_v10, 0.0 }
 0x5b5   :  { %v1281_v14 = vpop.f32.mrf.mxu2  ;;  %v1310_v15 = vpop.f32.mrf.mxu3  ;;  %1435 = vst [vmem:[%s2872_s14 + $0x3d0] sm:$0xff] %v1403_v12 }
 0x5b6   :  { %v1282_v16 = vadd.f32 %v1281_v14, %v2389_v22  ;;  %v1311_v17 = vadd.f32 %v1310_v15, %v2389_v22  ;;  %1436 = vst [vmem:[%s2872_s14 + $0x3d8] sm:$0xff] %v1404_v13 }
 0x5b8   :  { %v1397_v18 = vmax.f32 %v1282_v16, 0.0  ;;  %v1398_v20 = vmax.f32 %v1311_v17, 0.0  ;;  %v1545_v21 = vpop.f32.mrf.mxu0  ;;  %v1574_v23 = vpop.f32.mrf.mxu1 }
 0x5b9   :  { %v1546_v24 = vadd.f32 %v1545_v21, %v2274_v11  ;;  %v1575_v25 = vadd.f32 %v1574_v23, %v2274_v11 }
 0x5ba   :  { %1429 = vst [vmem:[%s2872_s14 + $0x340] sm:$0xff] %v1397_v18 }
 0x5bb   :  { %1430 = vst [vmem:[%s2872_s14 + $0x348] sm:$0xff] %v1398_v20  ;;  %v1596_v26 = vmax.f32 %v1546_v24, 0.0  ;;  %v1597_v27 = vmax.f32 %v1575_v25, 0.0 }
 0x5bd   :  { %v1283_v28 = vpop.f32.mrf.mxu2  ;;  %v1312_v29 = vpop.f32.mrf.mxu3  ;;  %1628 = vst [vmem:[%s2872_s14 + $0x70] sm:$0xff] %v1596_v26 }
 0x5be   :  { %v1284_v31 = vadd.f32 %v1283_v28, %v2412_v37  ;;  %v1313_v32 = vadd.f32 %v1312_v29, %v2412_v37  ;;  %1629 = vst [vmem:[%s2872_s14 + $0x78] sm:$0xff] %v1597_v27 }
 0x5c0   :  { %v1401_v33 = vmax.f32 %v1284_v31, 0.0  ;;  %v1402_v34 = vmax.f32 %v1313_v32, 0.0  ;;  %v1547_v35 = vpop.f32.mrf.mxu0  ;;  %v1576_v36 = vpop.f32.mrf.mxu1 }
 0x5c1   :  { %v1548_v38 = vadd.f32 %v1547_v35, %v2289_v19  ;;  %v1577_v39 = vadd.f32 %v1576_v36, %v2289_v19 }
 0x5c2   :  { %1433 = vst [vmem:[%s2872_s14 + $0x3c0] sm:$0xff] %v1401_v33 }
 0x5c3   :  { %1434 = vst [vmem:[%s2872_s14 + $0x3c8] sm:$0xff] %v1402_v34  ;;  %v1600_v40 = vmax.f32 %v1548_v38, 0.0  ;;  %v1601_v41 = vmax.f32 %v1577_v39, 0.0 }
 0x5c5   :  { %v1487_v42 = vpop.f32.mrf.mxu2  ;;  %v1516_v43 = vpop.f32.mrf.mxu3  ;;  %1632 = vst [vmem:[%s2872_s14 + $0xf0] sm:$0xff] %v1600_v40 }
 0x5c6   :  { %v1488_v45 = vadd.f32 %v1487_v42, %v2274_v11  ;;  %v1517_v46 = vadd.f32 %v1516_v43, %v2274_v11  ;;  %1633 = vst [vmem:[%s2872_s14 + $0xf8] sm:$0xff] %v1601_v41 }
 0x5c8   :  { %v1594_v47 = vmax.f32 %v1488_v45, 0.0  ;;  %v1595_v48 = vmax.f32 %v1517_v46, 0.0  ;;  %v1550_v49 = vpop.f32.mrf.mxu0  ;;  %v1579_v50 = vpop.f32.mrf.mxu1 }
 0x5c9   :  { %v1551_v51 = vadd.f32 %v1550_v49, %v2303_v30  ;;  %v1580_v52 = vadd.f32 %v1579_v50, %v2303_v30 }
 0x5ca   :  { %1626 = vst [vmem:[%s2872_s14 + $0x60] sm:$0xff] %v1594_v47 }
 0x5cb   :  { %1627 = vst [vmem:[%s2872_s14 + $0x68] sm:$0xff] %v1595_v48  ;;  %v1604_v11 = vmax.f32 %v1551_v51, 0.0  ;;  %v1605_v53 = vmax.f32 %v1580_v52, 0.0 }
 0x5cd   :  { %v1489_v54 = vpop.f32.mrf.mxu2  ;;  %v1518_v55 = vpop.f32.mrf.mxu3  ;;  %1636 = vst [vmem:[%s2872_s14 + $0x170] sm:$0xff] %v1604_v11 }
 0x5ce   :  { %v1490_v56 = vadd.f32 %v1489_v54, %v2289_v19  ;;  %v1519_v58 = vadd.f32 %v1518_v55, %v2289_v19  ;;  %1637 = vst [vmem:[%s2872_s14 + $0x178] sm:$0xff] %v1605_v53 }
 0x5d0   :  { %v1598_v59 = vmax.f32 %v1490_v56, 0.0  ;;  %v1599_v60 = vmax.f32 %v1519_v58, 0.0  ;;  %v1552_v61 = vpop.f32.mrf.mxu0  ;;  %v1581_v62 = vpop.f32.mrf.mxu1 }
 0x5d1   :  { %v1553_v63 = vadd.f32 %v1552_v61, %v2326_v44  ;;  %v1582_v0 = vadd.f32 %v1581_v62, %v2326_v44 }
 0x5d2   :  { %1630 = vst [vmem:[%s2872_s14 + $0xe0] sm:$0xff] %v1598_v59 }
 0x5d3   :  { %1631 = vst [vmem:[%s2872_s14 + $0xe8] sm:$0xff] %v1599_v60  ;;  %v1608_v19 = vmax.f32 %v1553_v63, 0.0  ;;  %v1609_v1 = vmax.f32 %v1582_v0, 0.0 }
 0x5d5   :  { %v1492_v2 = vpop.f32.mrf.mxu2  ;;  %v1521_v3 = vpop.f32.mrf.mxu3  ;;  %1640 = vst [vmem:[%s2872_s14 + $0x1f0] sm:$0xff] %v1608_v19 }
 0x5d6   :  { %v1493_v4 = vadd.f32 %v1492_v2, %v2303_v30  ;;  %v1522_v5 = vadd.f32 %v1521_v3, %v2303_v30  ;;  %1641 = vst [vmem:[%s2872_s14 + $0x1f8] sm:$0xff] %v1609_v1 }
 0x5d8   :  { %v1602_v6 = vmax.f32 %v1493_v4, 0.0  ;;  %v1603_v8 = vmax.f32 %v1522_v5, 0.0  ;;  %v1555_v9 = vpop.f32.mrf.mxu0  ;;  %v1584_v10 = vpop.f32.mrf.mxu1 }
 0x5d9   :  { %v1556_v12 = vadd.f32 %v1555_v9, %v2346_v57  ;;  %v1585_v13 = vadd.f32 %v1584_v10, %v2346_v57 }
 0x5da   :  { %1634 = vst [vmem:[%s2872_s14 + $0x160] sm:$0xff] %v1602_v6 }
 0x5db   :  { %1635 = vst [vmem:[%s2872_s14 + $0x168] sm:$0xff] %v1603_v8  ;;  %v1612_v30 = vmax.f32 %v1556_v12, 0.0  ;;  %v1613_v14 = vmax.f32 %v1585_v13, 0.0 }
 0x5dd   :  { %v1494_v15 = vpop.f32.mrf.mxu2  ;;  %v1523_v16 = vpop.f32.mrf.mxu3  ;;  %1644 = vst [vmem:[%s2872_s14 + $0x270] sm:$0xff] %v1612_v30 }
 0x5de   :  { %v1495_v17 = vadd.f32 %v1494_v15, %v2326_v44  ;;  %v1524_v18 = vadd.f32 %v1523_v16, %v2326_v44  ;;  %1645 = vst [vmem:[%s2872_s14 + $0x278] sm:$0xff] %v1613_v14 }
 0x5e0   :  { %v1606_v20 = vmax.f32 %v1495_v17, 0.0  ;;  %v1607_v21 = vmax.f32 %v1524_v18, 0.0  ;;  %v1557_v23 = vpop.f32.mrf.mxu0  ;;  %v1586_v24 = vpop.f32.mrf.mxu1 }
 0x5e1   :  { %v1558_v25 = vadd.f32 %v1557_v23, %v2369_v7  ;;  %v1587_v26 = vadd.f32 %v1586_v24, %v2369_v7 }
 0x5e2   :  { %1638 = vst [vmem:[%s2872_s14 + $0x1e0] sm:$0xff] %v1606_v20 }
 0x5e3   :  { %1639 = vst [vmem:[%s2872_s14 + $0x1e8] sm:$0xff] %v1607_v21  ;;  %v1616_v44 = vmax.f32 %v1558_v25, 0.0  ;;  %v1617_v27 = vmax.f32 %v1587_v26, 0.0 }
 0x5e5   :  { %v1497_v28 = vpop.f32.mrf.mxu2  ;;  %v1526_v29 = vpop.f32.mrf.mxu3  ;;  %1648 = vst [vmem:[%s2872_s14 + $0x2f0] sm:$0xff] %v1616_v44 }
 0x5e6   :  { %v1498_v31 = vadd.f32 %v1497_v28, %v2346_v57  ;;  %v1527_v32 = vadd.f32 %v1526_v29, %v2346_v57  ;;  %1649 = vst [vmem:[%s2872_s14 + $0x2f8] sm:$0xff] %v1617_v27 }
 0x5e8   :  { %v1610_v33 = vmax.f32 %v1498_v31, 0.0  ;;  %v1611_v34 = vmax.f32 %v1527_v32, 0.0  ;;  %v1560_v35 = vpop.f32.mrf.mxu0  ;;  %v1589_v36 = vpop.f32.mrf.mxu1 }
 0x5e9   :  { %v1561_v38 = vadd.f32 %v1560_v35, %v2389_v22  ;;  %v1590_v39 = vadd.f32 %v1589_v36, %v2389_v22 }
 0x5ea   :  { %1642 = vst [vmem:[%s2872_s14 + $0x260] sm:$0xff] %v1610_v33 }
 0x5eb   :  { %1643 = vst [vmem:[%s2872_s14 + $0x268] sm:$0xff] %v1611_v34  ;;  %v1620_v57 = vmax.f32 %v1561_v38, 0.0  ;;  %v1621_v40 = vmax.f32 %v1590_v39, 0.0 }
 0x5ed   :  { %v1499_v41 = vpop.f32.mrf.mxu2  ;;  %v1528_v42 = vpop.f32.mrf.mxu3  ;;  %1652 = vst [vmem:[%s2872_s14 + $0x370] sm:$0xff] %v1620_v57 }
 0x5ee   :  { %v1500_v43 = vadd.f32 %v1499_v41, %v2369_v7  ;;  %v1529_v45 = vadd.f32 %v1528_v42, %v2369_v7  ;;  %1653 = vst [vmem:[%s2872_s14 + $0x378] sm:$0xff] %v1621_v40 }
 0x5f0   :  { %v1614_v46 = vmax.f32 %v1500_v43, 0.0  ;;  %v1615_v47 = vmax.f32 %v1529_v45, 0.0  ;;  %v1562_v48 = vpop.f32.mrf.mxu0  ;;  %v1591_v49 = vpop.f32.mrf.mxu1 }
 0x5f1   :  { %v1563_v50 = vadd.f32 %v1562_v48, %v2412_v37  ;;  %v1592_v51 = vadd.f32 %v1591_v49, %v2412_v37 }
 0x5f2   :  { %1646 = vst [vmem:[%s2872_s14 + $0x2e0] sm:$0xff] %v1614_v46 }
 0x5f3   :  { %1647 = vst [vmem:[%s2872_s14 + $0x2e8] sm:$0xff] %v1615_v47  ;;  %v1624_v7 = vmax.f32 %v1563_v50, 0.0  ;;  %v1625_v52 = vmax.f32 %v1592_v51, 0.0 }
 0x5f5   :  { %v1502_v11 = vpop.f32.mrf.mxu2  ;;  %v1531_v53 = vpop.f32.mrf.mxu3  ;;  %1656 = vst [vmem:[%s2872_s14 + $0x3f0] sm:$0xff] %v1624_v7 }
 0x5f6   :  { %v1503_v54 = vadd.f32 %v1502_v11, %v2389_v22  ;;  %v1532_v55 = vadd.f32 %v1531_v53, %v2389_v22  ;;  %1657 = vst [vmem:[%s2872_s14 + $0x3f8] sm:$0xff] %v1625_v52 }
 0x5f8   :  { %v1618_v56 = vmax.f32 %v1503_v54, 0.0  ;;  %v1619_v58 = vmax.f32 %v1532_v55, 0.0 }
 0x5fa   :  { %1650 = vst [vmem:[%s2872_s14 + $0x360] sm:$0xff] %v1618_v56 }
 0x5fb   :  { %1651 = vst [vmem:[%s2872_s14 + $0x368] sm:$0xff] %v1619_v58 }
 0x5fd   :  { %v1504_v59 = vpop.f32.mrf.mxu2  ;;  %v1533_v60 = vpop.f32.mrf.mxu3 }
 0x5fe   :  { %v1505_v61 = vadd.f32 %v1504_v59, %v2412_v37  ;;  %v1534_v22 = vadd.f32 %v1533_v60, %v2412_v37 }
 0x600   :  { %v1622_v62 = vmax.f32 %v1505_v61, 0.0  ;;  %v1623_v63 = vmax.f32 %v1534_v22, 0.0 }
 0x602   :  { %1654 = vst [vmem:[%s2872_s14 + $0x3e0] sm:$0xff] %v1622_v62 }
 0x603   :  { %1655 = vst [vmem:[%s2872_s14 + $0x3e8] sm:$0xff] %v1623_v63 }

// kernel: ae2_forward.11
= control target key start
LH: loop header
LB: loop body
LE: loop exit
PB: predicated region body
PF: predicated region fallthrough
CT: control target
= control target key end

     0   :  { %s2513_s12 = smov 0   ;;  %s2515_s13 = smov 0   ;;  %s3196_s0 = inlined_call_operand.vmem [shape: bf16[3,576], index: 0, kind: input, shape index: {}]   ;;  %s3197_s1 = inlined_call_operand.vmem [shape: bf16[576,2048], index: 1, kind: input, shape index: {}]   ;;  %s3198_s2 = inlined_call_operand.vmem [shape: f32[3,1], index: 2, kind: input, shape index: {}]   ;;  %s3199_s3 = inlined_call_operand.vmem [shape: f32[3,2048], index: 3, kind: output, shape index: {}]  }
   0x1   :  { %s2517_s14 = smov 0  }
   0x2 LB: > { %s1704_s15 = sadd.s32 4294967295, %s2490_s14   ;;  %s2530_s16 = sadd.s32 1, %s2490_s14   ;;  %s2490_s14 = sphi %s2517_s14, %s3202_s14   ;;  %s2486_s13 = sphi %s2515_s13, %s3201_s13   ;;  %s2482_s12 = sphi %s2513_s12, %s3200_s12  }
   0x3   : > { %s38_s17 = ssub.s32 %s2490_s14, %s2530_s16  ;;  %s41_s18 = sadd.s32 1, %s2486_s13 }
   0x4   : > { %p39_p0 = scmp.eq.s32.totalorder %s38_s17, 0  ;;  %p48_p1 = scmp.ne.s32.totalorder %s2486_s13, %s2482_s12 }
   0x5   : > { %p49_p2 = scmp.eq.s32.totalorder %s2490_s14, 0  ;;  %p1707_p4 = scmp.ge.s32.totalorder %s2490_s14, 4 }
   0x6   : > { %s2539_s19 = scalar_select %p39_p0, %s2486_s13, %s41_s18  }
   0x7   : > { %p50_p3 = por %p49_p2, %p48_p1  ;;  %127 = sbr.rel (%p1707_p4) target bundleno = 160 (0xa0), region = 24 }
   0xc   : > { %130 = sbr.rel (!%p50_p3) target bundleno = 160 (0xa0), region = 28  ;;  %s132_s20 = sand.u32 (%p50_p3), 1, %s2486_s13  }
   0xd   : > { %s2295_s21 = sshll.u32 (%p50_p3), %s2490_s14, 4  ;;  %s2440_s22 = smul.u32 (%p50_p3), 1152, %s132_s20 }
   0xe   : > { %s2547_s25 = scalar_lea.vmem (%p50_p3), %s3197_s1, %s2295_s21 }
   0xf   : > { %v150_v0 = vld [vmem:[%s2547_s25] sm:$0xff] (%p50_p3)  ;;  %v152_v1 = vld [vmem:[%s2547_s25 + $0x8] sm:$0xff] (%p50_p3)  ;;  %s2552_s26 = scalar_lea.vmem (%p50_p3), [#allocation2], %s2440_s22 }
  0x10   : > { %v154_v2 = vld [vmem:[%s2547_s25 + $0x40] sm:$0xff] (%p50_p3)  ;;  %151 = vst [vmem:[%s2552_s26] sm:$0xff] (%p50_p3), %v150_v0  ;;  %v156_v3 = vld [vmem:[%s2547_s25 + $0x48] sm:$0xff] (%p50_p3) }
  0x11   : > { %153 = vst [vmem:[%s2552_s26 + $0x8] sm:$0xff] %v152_v1  ;;  %v158_v4 = vld [vmem:[%s2547_s25 + $0x80] sm:$0xff]  ;;  %v160_v5 = vld [vmem:[%s2547_s25 + $0x88] sm:$0xff] }
  0x12   : > { %155 = vst [vmem:[%s2552_s26 + $0x10] sm:$0xff] %v154_v2  ;;  %v162_v6 = vld [vmem:[%s2547_s25 + $0xc0] sm:$0xff]  ;;  %v164_v7 = vld [vmem:[%s2547_s25 + $0xc8] sm:$0xff] }
  0x13   : > { %157 = vst [vmem:[%s2552_s26 + $0x18] sm:$0xff] %v156_v3  ;;  %v166_v8 = vld [vmem:[%s2547_s25 + $0x100] sm:$0xff]  ;;  %v168_v9 = vld [vmem:[%s2547_s25 + $0x108] sm:$0xff] }
  0x14   : > { %159 = vst [vmem:[%s2552_s26 + $0x20] sm:$0xff] %v158_v4  ;;  %v170_v10 = vld [vmem:[%s2547_s25 + $0x140] sm:$0xff]  ;;  %v172_v11 = vld [vmem:[%s2547_s25 + $0x148] sm:$0xff] }
  0x15   : > { %161 = vst [vmem:[%s2552_s26 + $0x28] sm:$0xff] %v160_v5  ;;  %v174_v12 = vld [vmem:[%s2547_s25 + $0x180] sm:$0xff]  ;;  %v176_v13 = vld [vmem:[%s2547_s25 + $0x188] sm:$0xff] }
  0x16   : > { %163 = vst [vmem:[%s2552_s26 + $0x30] sm:$0xff] %v162_v6  ;;  %v178_v14 = vld [vmem:[%s2547_s25 + $0x1c0] sm:$0xff]  ;;  %v180_v15 = vld [vmem:[%s2547_s25 + $0x1c8] sm:$0xff] }
  0x17   : > { %165 = vst [vmem:[%s2552_s26 + $0x38] sm:$0xff] %v164_v7  ;;  %v182_v16 = vld [vmem:[%s2547_s25 + $0x200] sm:$0xff]  ;;  %v184_v17 = vld [vmem:[%s2547_s25 + $0x208] sm:$0xff] }
  0x18   : > { %167 = vst [vmem:[%s2552_s26 + $0x40] sm:$0xff] %v166_v8  ;;  %v186_v18 = vld [vmem:[%s2547_s25 + $0x240] sm:$0xff]  ;;  %v188_v19 = vld [vmem:[%s2547_s25 + $0x248] sm:$0xff] }
  0x19   : > { %169 = vst [vmem:[%s2552_s26 + $0x48] sm:$0xff] %v168_v9  ;;  %v190_v20 = vld [vmem:[%s2547_s25 + $0x280] sm:$0xff]  ;;  %v192_v21 = vld [vmem:[%s2547_s25 + $0x288] sm:$0xff] }
  0x1a   : > { %171 = vst [vmem:[%s2552_s26 + $0x50] sm:$0xff] %v170_v10  ;;  %v194_v22 = vld [vmem:[%s2547_s25 + $0x2c0] sm:$0xff]  ;;  %v196_v23 = vld [vmem:[%s2547_s25 + $0x2c8] sm:$0xff] }
  0x1b   : > { %173 = vst [vmem:[%s2552_s26 + $0x58] sm:$0xff] %v172_v11  ;;  %v198_v24 = vld [vmem:[%s2547_s25 + $0x300] sm:$0xff]  ;;  %v200_v25 = vld [vmem:[%s2547_s25 + $0x308] sm:$0xff] }
  0x1c   : > { %175 = vst [vmem:[%s2552_s26 + $0x60] sm:$0xff] %v174_v12  ;;  %v202_v26 = vld [vmem:[%s2547_s25 + $0x340] sm:$0xff]  ;;  %v204_v27 = vld [vmem:[%s2547_s25 + $0x348] sm:$0xff] }
  0x1d   : > { %177 = vst [vmem:[%s2552_s26 + $0x68] sm:$0xff] %v176_v13  ;;  %v206_v28 = vld [vmem:[%s2547_s25 + $0x380] sm:$0xff]  ;;  %v208_v29 = vld [vmem:[%s2547_s25 + $0x388] sm:$0xff] }
  0x1e   : > { %179 = vst [vmem:[%s2552_s26 + $0x70] sm:$0xff] %v178_v14  ;;  %v210_v30 = vld [vmem:[%s2547_s25 + $0x3c0] sm:$0xff]  ;;  %v212_v31 = vld [vmem:[%s2547_s25 + $0x3c8] sm:$0xff] }
  0x1f   : > { %181 = vst [vmem:[%s2552_s26 + $0x78] sm:$0xff] %v180_v15  ;;  %v214_v32 = vld [vmem:[%s2547_s25 + $0x400] sm:$0xff]  ;;  %v216_v33 = vld [vmem:[%s2547_s25 + $0x408] sm:$0xff] }
  0x20   : > { %183 = vst [vmem:[%s2552_s26 + $0x80] sm:$0xff] %v182_v16  ;;  %v218_v34 = vld [vmem:[%s2547_s25 + $0x440] sm:$0xff]  ;;  %v220_v35 = vld [vmem:[%s2547_s25 + $0x448] sm:$0xff] }
  0x21   : > { %185 = vst [vmem:[%s2552_s26 + $0x88] sm:$0xff] %v184_v17  ;;  %v222_v36 = vld [vmem:[%s2547_s25 + $0x480] sm:$0xff]  ;;  %v224_v37 = vld [vmem:[%s2547_s25 + $0x488] sm:$0xff] }
  0x22   : > { %187 = vst [vmem:[%s2552_s26 + $0x90] sm:$0xff] %v186_v18  ;;  %v226_v38 = vld [vmem:[%s2547_s25 + $0x4c0] sm:$0xff]  ;;  %v228_v39 = vld [vmem:[%s2547_s25 + $0x4c8] sm:$0xff] }
  0x23   : > { %189 = vst [vmem:[%s2552_s26 + $0x98] sm:$0xff] %v188_v19  ;;  %v230_v40 = vld [vmem:[%s2547_s25 + $0x500] sm:$0xff]  ;;  %v232_v41 = vld [vmem:[%s2547_s25 + $0x508] sm:$0xff] }
  0x24   : > { %191 = vst [vmem:[%s2552_s26 + $0xa0] sm:$0xff] %v190_v20  ;;  %v234_v42 = vld [vmem:[%s2547_s25 + $0x540] sm:$0xff]  ;;  %v236_v43 = vld [vmem:[%s2547_s25 + $0x548] sm:$0xff] }
  0x25   : > { %193 = vst [vmem:[%s2552_s26 + $0xa8] sm:$0xff] %v192_v21  ;;  %v238_v44 = vld [vmem:[%s2547_s25 + $0x580] sm:$0xff]  ;;  %v240_v45 = vld [vmem:[%s2547_s25 + $0x588] sm:$0xff] }
  0x26   : > { %195 = vst [vmem:[%s2552_s26 + $0xb0] sm:$0xff] %v194_v22  ;;  %v242_v46 = vld [vmem:[%s2547_s25 + $0x5c0] sm:$0xff]  ;;  %v244_v47 = vld [vmem:[%s2547_s25 + $0x5c8] sm:$0xff] }
  0x27   : > { %197 = vst [vmem:[%s2552_s26 + $0xb8] sm:$0xff] %v196_v23  ;;  %v246_v48 = vld [vmem:[%s2547_s25 + $0x600] sm:$0xff]  ;;  %v248_v49 = vld [vmem:[%s2547_s25 + $0x608] sm:$0xff] }
  0x28   : > { %199 = vst [vmem:[%s2552_s26 + $0xc0] sm:$0xff] %v198_v24  ;;  %v250_v50 = vld [vmem:[%s2547_s25 + $0x640] sm:$0xff]  ;;  %v252_v51 = vld [vmem:[%s2547_s25 + $0x648] sm:$0xff] }
  0x29   : > { %201 = vst [vmem:[%s2552_s26 + $0xc8] sm:$0xff] %v200_v25  ;;  %v254_v52 = vld [vmem:[%s2547_s25 + $0x680] sm:$0xff]  ;;  %v256_v53 = vld [vmem:[%s2547_s25 + $0x688] sm:$0xff] }
  0x2a   : > { %203 = vst [vmem:[%s2552_s26 + $0xd0] sm:$0xff] %v202_v26  ;;  %v258_v54 = vld [vmem:[%s2547_s25 + $0x6c0] sm:$0xff]  ;;  %v260_v55 = vld [vmem:[%s2547_s25 + $0x6c8] sm:$0xff] }
  0x2b   : > { %205 = vst [vmem:[%s2552_s26 + $0xd8] sm:$0xff] %v204_v27  ;;  %v262_v56 = vld [vmem:[%s2547_s25 + $0x700] sm:$0xff]  ;;  %v264_v57 = vld [vmem:[%s2547_s25 + $0x708] sm:$0xff] }
  0x2c   : > { %207 = vst [vmem:[%s2552_s26 + $0xe0] sm:$0xff] %v206_v28  ;;  %v266_v58 = vld [vmem:[%s2547_s25 + $0x740] sm:$0xff]  ;;  %v268_v59 = vld [vmem:[%s2547_s25 + $0x748] sm:$0xff] }
  0x2d   : > { %209 = vst [vmem:[%s2552_s26 + $0xe8] sm:$0xff] %v208_v29  ;;  %v270_v60 = vld [vmem:[%s2547_s25 + $0x780] sm:$0xff]  ;;  %v272_v61 = vld [vmem:[%s2547_s25 + $0x788] sm:$0xff] }
  0x2e   : > { %211 = vst [vmem:[%s2552_s26 + $0xf0] sm:$0xff] %v210_v30  ;;  %v274_v62 = vld [vmem:[%s2547_s25 + $0x7c0] sm:$0xff]  ;;  %v276_v63 = vld [vmem:[%s2547_s25 + $0x7c8] sm:$0xff] }
  0x2f   : > { %213 = vst [vmem:[%s2552_s26 + $0xf8] sm:$0xff] %v212_v31  ;;  %v278_v0 = vld [vmem:[%s2547_s25 + $0x800] sm:$0xff]  ;;  %v280_v1 = vld [vmem:[%s2547_s25 + $0x808] sm:$0xff] }
  0x30   : > { %215 = vst [vmem:[%s2552_s26 + $0x100] sm:$0xff] %v214_v32  ;;  %v282_v2 = vld [vmem:[%s2547_s25 + $0x840] sm:$0xff]  ;;  %v284_v3 = vld [vmem:[%s2547_s25 + $0x848] sm:$0xff] }
  0x31   : > { %217 = vst [vmem:[%s2552_s26 + $0x108] sm:$0xff] %v216_v33  ;;  %v286_v4 = vld [vmem:[%s2547_s25 + $0x880] sm:$0xff]  ;;  %v288_v5 = vld [vmem:[%s2547_s25 + $0x888] sm:$0xff] }
  0x32   : > { %219 = vst [vmem:[%s2552_s26 + $0x110] sm:$0xff] %v218_v34  ;;  %v290_v6 = vld [vmem:[%s2547_s25 + $0x8c0] sm:$0xff]  ;;  %v292_v7 = vld [vmem:[%s2547_s25 + $0x8c8] sm:$0xff] }
  0x33   : > { %221 = vst [vmem:[%s2552_s26 + $0x118] sm:$0xff] %v220_v35  ;;  %v294_v8 = vld [vmem:[%s2547_s25 + $0x900] sm:$0xff]  ;;  %v296_v9 = vld [vmem:[%s2547_s25 + $0x908] sm:$0xff] }
  0x34   : > { %223 = vst [vmem:[%s2552_s26 + $0x120] sm:$0xff] %v222_v36  ;;  %v298_v10 = vld [vmem:[%s2547_s25 + $0x940] sm:$0xff]  ;;  %v300_v11 = vld [vmem:[%s2547_s25 + $0x948] sm:$0xff] }
  0x35   : > { %225 = vst [vmem:[%s2552_s26 + $0x128] sm:$0xff] %v224_v37  ;;  %v302_v12 = vld [vmem:[%s2547_s25 + $0x980] sm:$0xff]  ;;  %v304_v13 = vld [vmem:[%s2547_s25 + $0x988] sm:$0xff] }
  0x36   : > { %227 = vst [vmem:[%s2552_s26 + $0x130] sm:$0xff] %v226_v38  ;;  %v306_v14 = vld [vmem:[%s2547_s25 + $0x9c0] sm:$0xff]  ;;  %v308_v15 = vld [vmem:[%s2547_s25 + $0x9c8] sm:$0xff] }
  0x37   : > { %229 = vst [vmem:[%s2552_s26 + $0x138] sm:$0xff] %v228_v39  ;;  %v310_v16 = vld [vmem:[%s2547_s25 + $0xa00] sm:$0xff]  ;;  %v312_v17 = vld [vmem:[%s2547_s25 + $0xa08] sm:$0xff] }
  0x38   : > { %231 = vst [vmem:[%s2552_s26 + $0x140] sm:$0xff] %v230_v40  ;;  %v314_v18 = vld [vmem:[%s2547_s25 + $0xa40] sm:$0xff]  ;;  %v316_v19 = vld [vmem:[%s2547_s25 + $0xa48] sm:$0xff] }
  0x39   : > { %233 = vst [vmem:[%s2552_s26 + $0x148] sm:$0xff] %v232_v41  ;;  %v318_v20 = vld [vmem:[%s2547_s25 + $0xa80] sm:$0xff]  ;;  %v320_v21 = vld [vmem:[%s2547_s25 + $0xa88] sm:$0xff] }
  0x3a   : > { %235 = vst [vmem:[%s2552_s26 + $0x150] sm:$0xff] %v234_v42  ;;  %v322_v22 = vld [vmem:[%s2547_s25 + $0xac0] sm:$0xff]  ;;  %v324_v23 = vld [vmem:[%s2547_s25 + $0xac8] sm:$0xff] }
  0x3b   : > { %237 = vst [vmem:[%s2552_s26 + $0x158] sm:$0xff] %v236_v43  ;;  %v326_v24 = vld [vmem:[%s2547_s25 + $0xb00] sm:$0xff]  ;;  %v328_v25 = vld [vmem:[%s2547_s25 + $0xb08] sm:$0xff] }
  0x3c   : > { %239 = vst [vmem:[%s2552_s26 + $0x160] sm:$0xff] %v238_v44  ;;  %v330_v26 = vld [vmem:[%s2547_s25 + $0xb40] sm:$0xff]  ;;  %v332_v27 = vld [vmem:[%s2547_s25 + $0xb48] sm:$0xff] }
  0x3d   : > { %241 = vst [vmem:[%s2552_s26 + $0x168] sm:$0xff] %v240_v45  ;;  %v334_v28 = vld [vmem:[%s2547_s25 + $0xb80] sm:$0xff]  ;;  %v336_v29 = vld [vmem:[%s2547_s25 + $0xb88] sm:$0xff] }
  0x3e   : > { %243 = vst [vmem:[%s2552_s26 + $0x170] sm:$0xff] %v242_v46  ;;  %v338_v30 = vld [vmem:[%s2547_s25 + $0xbc0] sm:$0xff]  ;;  %v340_v31 = vld [vmem:[%s2547_s25 + $0xbc8] sm:$0xff] }
  0x3f   : > { %245 = vst [vmem:[%s2552_s26 + $0x178] sm:$0xff] %v244_v47  ;;  %v342_v32 = vld [vmem:[%s2547_s25 + $0xc00] sm:$0xff]  ;;  %v344_v33 = vld [vmem:[%s2547_s25 + $0xc08] sm:$0xff] }
  0x40   : > { %247 = vst [vmem:[%s2552_s26 + $0x180] sm:$0xff] %v246_v48  ;;  %v346_v34 = vld [vmem:[%s2547_s25 + $0xc40] sm:$0xff]  ;;  %v348_v35 = vld [vmem:[%s2547_s25 + $0xc48] sm:$0xff] }
  0x41   : > { %249 = vst [vmem:[%s2552_s26 + $0x188] sm:$0xff] %v248_v49  ;;  %v350_v36 = vld [vmem:[%s2547_s25 + $0xc80] sm:$0xff]  ;;  %v352_v37 = vld [vmem:[%s2547_s25 + $0xc88] sm:$0xff] }
  0x42   : > { %251 = vst [vmem:[%s2552_s26 + $0x190] sm:$0xff] %v250_v50  ;;  %v354_v38 = vld [vmem:[%s2547_s25 + $0xcc0] sm:$0xff]  ;;  %v356_v39 = vld [vmem:[%s2547_s25 + $0xcc8] sm:$0xff] }
  0x43   : > { %253 = vst [vmem:[%s2552_s26 + $0x198] sm:$0xff] %v252_v51  ;;  %v358_v40 = vld [vmem:[%s2547_s25 + $0xd00] sm:$0xff]  ;;  %v360_v41 = vld [vmem:[%s2547_s25 + $0xd08] sm:$0xff] }
  0x44   : > { %255 = vst [vmem:[%s2552_s26 + $0x1a0] sm:$0xff] %v254_v52  ;;  %v362_v42 = vld [vmem:[%s2547_s25 + $0xd40] sm:$0xff]  ;;  %v364_v43 = vld [vmem:[%s2547_s25 + $0xd48] sm:$0xff] }
  0x45   : > { %257 = vst [vmem:[%s2552_s26 + $0x1a8] sm:$0xff] %v256_v53  ;;  %v366_v44 = vld [vmem:[%s2547_s25 + $0xd80] sm:$0xff]  ;;  %v368_v45 = vld [vmem:[%s2547_s25 + $0xd88] sm:$0xff] }
  0x46   : > { %259 = vst [vmem:[%s2552_s26 + $0x1b0] sm:$0xff] %v258_v54  ;;  %v370_v46 = vld [vmem:[%s2547_s25 + $0xdc0] sm:$0xff]  ;;  %v372_v47 = vld [vmem:[%s2547_s25 + $0xdc8] sm:$0xff] }
  0x47   : > { %261 = vst [vmem:[%s2552_s26 + $0x1b8] sm:$0xff] %v260_v55  ;;  %v374_v48 = vld [vmem:[%s2547_s25 + $0xe00] sm:$0xff]  ;;  %v376_v49 = vld [vmem:[%s2547_s25 + $0xe08] sm:$0xff] }
  0x48   : > { %263 = vst [vmem:[%s2552_s26 + $0x1c0] sm:$0xff] %v262_v56  ;;  %v378_v50 = vld [vmem:[%s2547_s25 + $0xe40] sm:$0xff]  ;;  %v380_v51 = vld [vmem:[%s2547_s25 + $0xe48] sm:$0xff] }
  0x49   : > { %265 = vst [vmem:[%s2552_s26 + $0x1c8] sm:$0xff] %v264_v57  ;;  %v382_v52 = vld [vmem:[%s2547_s25 + $0xe80] sm:$0xff]  ;;  %v384_v53 = vld [vmem:[%s2547_s25 + $0xe88] sm:$0xff] }
  0x4a   : > { %267 = vst [vmem:[%s2552_s26 + $0x1d0] sm:$0xff] %v266_v58  ;;  %v386_v54 = vld [vmem:[%s2547_s25 + $0xec0] sm:$0xff]  ;;  %v388_v55 = vld [vmem:[%s2547_s25 + $0xec8] sm:$0xff] }
  0x4b   : > { %269 = vst [vmem:[%s2552_s26 + $0x1d8] sm:$0xff] %v268_v59  ;;  %v390_v56 = vld [vmem:[%s2547_s25 + $0xf00] sm:$0xff]  ;;  %v392_v57 = vld [vmem:[%s2547_s25 + $0xf08] sm:$0xff] }
  0x4c   : > { %271 = vst [vmem:[%s2552_s26 + $0x1e0] sm:$0xff] %v270_v60  ;;  %v394_v58 = vld [vmem:[%s2547_s25 + $0xf40] sm:$0xff]  ;;  %v396_v59 = vld [vmem:[%s2547_s25 + $0xf48] sm:$0xff] }
  0x4d   : > { %273 = vst [vmem:[%s2552_s26 + $0x1e8] sm:$0xff] %v272_v61  ;;  %v398_v60 = vld [vmem:[%s2547_s25 + $0xf80] sm:$0xff]  ;;  %v400_v61 = vld [vmem:[%s2547_s25 + $0xf88] sm:$0xff] }
  0x4e   : > { %275 = vst [vmem:[%s2552_s26 + $0x1f0] sm:$0xff] %v274_v62  ;;  %v402_v62 = vld [vmem:[%s2547_s25 + $0xfc0] sm:$0xff] }
  0x4f   : > { %277 = vst [vmem:[%s2552_s26 + $0x1f8] sm:$0xff] %v276_v63  ;;  %v404_v63 = vld [vmem:[%s2547_s25 + $0xfc8] sm:$0xff] }
  0x50   : > { %279 = vst [vmem:[%s2552_s26 + $0x200] sm:$0xff] %v278_v0  ;;  %v406_v0 = vld [vmem:[%s2547_s25 + $0x1000] sm:$0xff] }
  0x51   : > { %281 = vst [vmem:[%s2552_s26 + $0x208] sm:$0xff] %v280_v1  ;;  %v408_v1 = vld [vmem:[%s2547_s25 + $0x1008] sm:$0xff] }
  0x52   : > { %283 = vst [vmem:[%s2552_s26 + $0x210] sm:$0xff] %v282_v2  ;;  %v410_v2 = vld [vmem:[%s2547_s25 + $0x1040] sm:$0xff] }
  0x53   : > { %285 = vst [vmem:[%s2552_s26 + $0x218] sm:$0xff] %v284_v3  ;;  %v412_v3 = vld [vmem:[%s2547_s25 + $0x1048] sm:$0xff] }
  0x54   : > { %287 = vst [vmem:[%s2552_s26 + $0x220] sm:$0xff] %v286_v4  ;;  %v414_v4 = vld [vmem:[%s2547_s25 + $0x1080] sm:$0xff] }
  0x55   : > { %289 = vst [vmem:[%s2552_s26 + $0x228] sm:$0xff] %v288_v5  ;;  %v416_v5 = vld [vmem:[%s2547_s25 + $0x1088] sm:$0xff] }
  0x56   : > { %291 = vst [vmem:[%s2552_s26 + $0x230] sm:$0xff] %v290_v6  ;;  %v418_v6 = vld [vmem:[%s2547_s25 + $0x10c0] sm:$0xff] }
  0x57   : > { %293 = vst [vmem:[%s2552_s26 + $0x238] sm:$0xff] %v292_v7  ;;  %v420_v7 = vld [vmem:[%s2547_s25 + $0x10c8] sm:$0xff] }
  0x58   : > { %295 = vst [vmem:[%s2552_s26 + $0x240] sm:$0xff] %v294_v8  ;;  %v422_v8 = vld [vmem:[%s2547_s25 + $0x1100] sm:$0xff] }
  0x59   : > { %297 = vst [vmem:[%s2552_s26 + $0x248] sm:$0xff] %v296_v9  ;;  %v424_v9 = vld [vmem:[%s2547_s25 + $0x1108] sm:$0xff] }
  0x5a   : > { %299 = vst [vmem:[%s2552_s26 + $0x250] sm:$0xff] %v298_v10  ;;  %v426_v10 = vld [vmem:[%s2547_s25 + $0x1140] sm:$0xff] }
  0x5b   : > { %301 = vst [vmem:[%s2552_s26 + $0x258] sm:$0xff] %v300_v11  ;;  %v428_v11 = vld [vmem:[%s2547_s25 + $0x1148] sm:$0xff] }
  0x5c   : > { %303 = vst [vmem:[%s2552_s26 + $0x260] sm:$0xff] %v302_v12  ;;  %v430_v12 = vld [vmem:[%s2547_s25 + $0x1180] sm:$0xff] }
  0x5d   : > { %305 = vst [vmem:[%s2552_s26 + $0x268] sm:$0xff] %v304_v13  ;;  %v432_v13 = vld [vmem:[%s2547_s25 + $0x1188] sm:$0xff] }
  0x5e   : > { %307 = vst [vmem:[%s2552_s26 + $0x270] sm:$0xff] %v306_v14  ;;  %v434_v14 = vld [vmem:[%s2547_s25 + $0x11c0] sm:$0xff] }
  0x5f   : > { %309 = vst [vmem:[%s2552_s26 + $0x278] sm:$0xff] %v308_v15  ;;  %v436_v15 = vld [vmem:[%s2547_s25 + $0x11c8] sm:$0xff] }
  0x60   : > { %311 = vst [vmem:[%s2552_s26 + $0x280] sm:$0xff] %v310_v16 }
  0x61   : > { %313 = vst [vmem:[%s2552_s26 + $0x288] sm:$0xff] %v312_v17 }
  0x62   : > { %315 = vst [vmem:[%s2552_s26 + $0x290] sm:$0xff] %v314_v18 }
  0x63   : > { %317 = vst [vmem:[%s2552_s26 + $0x298] sm:$0xff] %v316_v19 }
  0x64   : > { %319 = vst [vmem:[%s2552_s26 + $0x2a0] sm:$0xff] %v318_v20 }
  0x65   : > { %321 = vst [vmem:[%s2552_s26 + $0x2a8] sm:$0xff] %v320_v21 }
  0x66   : > { %323 = vst [vmem:[%s2552_s26 + $0x2b0] sm:$0xff] %v322_v22 }
  0x67   : > { %325 = vst [vmem:[%s2552_s26 + $0x2b8] sm:$0xff] %v324_v23 }
  0x68   : > { %327 = vst [vmem:[%s2552_s26 + $0x2c0] sm:$0xff] %v326_v24 }
  0x69   : > { %329 = vst [vmem:[%s2552_s26 + $0x2c8] sm:$0xff] %v328_v25 }
  0x6a   : > { %331 = vst [vmem:[%s2552_s26 + $0x2d0] sm:$0xff] %v330_v26 }
  0x6b   : > { %333 = vst [vmem:[%s2552_s26 + $0x2d8] sm:$0xff] %v332_v27 }
  0x6c   : > { %335 = vst [vmem:[%s2552_s26 + $0x2e0] sm:$0xff] %v334_v28 }
  0x6d   : > { %337 = vst [vmem:[%s2552_s26 + $0x2e8] sm:$0xff] %v336_v29 }
  0x6e   : > { %339 = vst [vmem:[%s2552_s26 + $0x2f0] sm:$0xff] %v338_v30 }
  0x6f   : > { %341 = vst [vmem:[%s2552_s26 + $0x2f8] sm:$0xff] %v340_v31 }
  0x70   : > { %343 = vst [vmem:[%s2552_s26 + $0x300] sm:$0xff] %v342_v32 }
  0x71   : > { %345 = vst [vmem:[%s2552_s26 + $0x308] sm:$0xff] %v344_v33 }
  0x72   : > { %347 = vst [vmem:[%s2552_s26 + $0x310] sm:$0xff] %v346_v34 }
  0x73   : > { %349 = vst [vmem:[%s2552_s26 + $0x318] sm:$0xff] %v348_v35 }
  0x74   : > { %351 = vst [vmem:[%s2552_s26 + $0x320] sm:$0xff] %v350_v36 }
  0x75   : > { %353 = vst [vmem:[%s2552_s26 + $0x328] sm:$0xff] %v352_v37 }
  0x76   : > { %355 = vst [vmem:[%s2552_s26 + $0x330] sm:$0xff] %v354_v38 }
  0x77   : > { %357 = vst [vmem:[%s2552_s26 + $0x338] sm:$0xff] %v356_v39 }
  0x78   : > { %359 = vst [vmem:[%s2552_s26 + $0x340] sm:$0xff] %v358_v40 }
  0x79   : > { %361 = vst [vmem:[%s2552_s26 + $0x348] sm:$0xff] %v360_v41 }
  0x7a   : > { %363 = vst [vmem:[%s2552_s26 + $0x350] sm:$0xff] %v362_v42 }
  0x7b   : > { %365 = vst [vmem:[%s2552_s26 + $0x358] sm:$0xff] %v364_v43 }
  0x7c   : > { %367 = vst [vmem:[%s2552_s26 + $0x360] sm:$0xff] %v366_v44 }
  0x7d   : > { %369 = vst [vmem:[%s2552_s26 + $0x368] sm:$0xff] %v368_v45 }
  0x7e   : > { %371 = vst [vmem:[%s2552_s26 + $0x370] sm:$0xff] %v370_v46 }
  0x7f   : > { %373 = vst [vmem:[%s2552_s26 + $0x378] sm:$0xff] %v372_v47 }
  0x80   : > { %375 = vst [vmem:[%s2552_s26 + $0x380] sm:$0xff] %v374_v48 }
  0x81   : > { %377 = vst [vmem:[%s2552_s26 + $0x388] sm:$0xff] %v376_v49 }
  0x82   : > { %379 = vst [vmem:[%s2552_s26 + $0x390] sm:$0xff] %v378_v50 }
  0x83   : > { %381 = vst [vmem:[%s2552_s26 + $0x398] sm:$0xff] %v380_v51 }
  0x84   : > { %383 = vst [vmem:[%s2552_s26 + $0x3a0] sm:$0xff] %v382_v52 }
  0x85   : > { %385 = vst [vmem:[%s2552_s26 + $0x3a8] sm:$0xff] %v384_v53 }
  0x86   : > { %387 = vst [vmem:[%s2552_s26 + $0x3b0] sm:$0xff] %v386_v54 }
  0x87   : > { %389 = vst [vmem:[%s2552_s26 + $0x3b8] sm:$0xff] %v388_v55 }
  0x88   : > { %391 = vst [vmem:[%s2552_s26 + $0x3c0] sm:$0xff] %v390_v56 }
  0x89   : > { %393 = vst [vmem:[%s2552_s26 + $0x3c8] sm:$0xff] %v392_v57 }
  0x8a   : > { %395 = vst [vmem:[%s2552_s26 + $0x3d0] sm:$0xff] %v394_v58 }
  0x8b   : > { %397 = vst [vmem:[%s2552_s26 + $0x3d8] sm:$0xff] %v396_v59 }
  0x8c   : > { %399 = vst [vmem:[%s2552_s26 + $0x3e0] sm:$0xff] %v398_v60 }
  0x8d   : > { %401 = vst [vmem:[%s2552_s26 + $0x3e8] sm:$0xff] %v400_v61 }
  0x8e   : > { %403 = vst [vmem:[%s2552_s26 + $0x3f0] sm:$0xff] %v402_v62 }
  0x8f   : > { %405 = vst [vmem:[%s2552_s26 + $0x3f8] sm:$0xff] %v404_v63 }
  0x90   : > { %407 = vst [vmem:[%s2552_s26 + $0x400] sm:$0xff] %v406_v0 }
  0x91   : > { %409 = vst [vmem:[%s2552_s26 + $0x408] sm:$0xff] %v408_v1 }
  0x92   : > { %411 = vst [vmem:[%s2552_s26 + $0x410] sm:$0xff] %v410_v2 }
  0x93   : > { %413 = vst [vmem:[%s2552_s26 + $0x418] sm:$0xff] %v412_v3 }
  0x94   : > { %415 = vst [vmem:[%s2552_s26 + $0x420] sm:$0xff] %v414_v4 }
  0x95   : > { %417 = vst [vmem:[%s2552_s26 + $0x428] sm:$0xff] %v416_v5 }
  0x96   : > { %419 = vst [vmem:[%s2552_s26 + $0x430] sm:$0xff] %v418_v6 }
  0x97   : > { %421 = vst [vmem:[%s2552_s26 + $0x438] sm:$0xff] %v420_v7 }
  0x98   : > { %423 = vst [vmem:[%s2552_s26 + $0x440] sm:$0xff] %v422_v8 }
  0x99   : > { %425 = vst [vmem:[%s2552_s26 + $0x448] sm:$0xff] %v424_v9 }
  0x9a   : > { %427 = vst [vmem:[%s2552_s26 + $0x450] sm:$0xff] %v426_v10 }
  0x9b   : > { %429 = vst [vmem:[%s2552_s26 + $0x458] sm:$0xff] %v428_v11 }
  0x9c   : > { %431 = vst [vmem:[%s2552_s26 + $0x460] sm:$0xff] %v430_v12 }
  0x9d   : > { %433 = vst [vmem:[%s2552_s26 + $0x468] sm:$0xff] %v432_v13 }
  0x9e   : > { %435 = vst [vmem:[%s2552_s26 + $0x470] sm:$0xff] %v434_v14 }
  0x9f   : > { %437 = vst [vmem:[%s2552_s26 + $0x478] sm:$0xff] %v436_v15 }
  0xa0 PF: > { %p1710_p5 = scmp.ge.s32.totalorder %s2490_s14, 1  ;;  %p442_p6 = scmp.lt.s32.totalorder %s2490_s14, 5 }
  0xa2   : > { %p443_p7 = pnand %p1710_p5, %p442_p6 }
  0xa3   : > { %s449_s27 = sand.u32 (!%p443_p7), 1, %s2482_s12   ;;  %s1711_s9 = sshll.u32 (!%p443_p7), %s1704_s15, 2 }
  0xa4   : > { %446 = sbr.rel (%p443_p7) target bundleno = 458 (0x1ca), region = 51  ;;  %p474_p8 = scmp.lt.s32.totalorder (!%p443_p7), %s1711_s9, 15 }
  0xa5   : > { %s2441_s28 = smul.u32 (!%p443_p7), 1152, %s449_s27 }
  0xa7   : > { %s2842_s29 = scalar_lea.vmem (!%p443_p7), [#allocation2], %s2441_s28 }
  0xa9   : > { %v1827_v16 = vld [vmem:[%s2842_s29 + $0xe0] sm:$0xf]  ;;  %v2326_v17 = vld [vmem:[%s2842_s29 + $0xec] sm:$0xf0]  ;;  %vm1366_vm0 = vcmask 523264   ;;  %s3204_s9 = smov (!%p474_p8, %s1711_s9), 15 }
  0xaa   : > { %v1955_v18 = vld [vmem:[%s2842_s29 + $0x1e0] sm:$0xf]  ;;  %v1828_v19 = vor.u32 %v2326_v17, %v1827_v16  ;;  %v2358_v20 = vld [vmem:[%s2842_s29 + $0x1ec] sm:$0xf0]  ;;  %s1712_s10 = sshll.u32 %s3204_s9, 2  ;;  %vm1635_vm1 = vcmask 1043456  }
  0xab   : > { %v2083_v21 = vld [vmem:[%s2842_s29 + $0x2e0] sm:$0xf]  ;;  %v2390_v22 = vld [vmem:[%s2842_s29 + $0x2ec] sm:$0xf0]  ;;  %v1956_v23 = vor.u32 %v2358_v20, %v1955_v18  ;;  %s3180_s14 = scalar_lea.vmem %s3199_s3, %s1712_s10 }
  0xac   : > { %v2084_v24 = vor.u32 %v2390_v22, %v2083_v21  ;;  %v2211_v25 = vld [vmem:[%s2842_s29 + $0x3e0] sm:$0xf]  ;;  %v2422_v26 = vld [vmem:[%s2842_s29 + $0x3ec] sm:$0xf0]  ;;  %1369 = vmatpush.bf16.msra.mxu0 %v1828_v19 }
  0xad   : > { %v1811_v27 = vld [vmem:[%s2842_s29 + $0xc0] sm:$0xf]  ;;  %v2212_v28 = vor.u32 %v2422_v26, %v2211_v25  ;;  %v2322_v29 = vld [vmem:[%s2842_s29 + $0xcc] sm:$0xf0]  ;;  %1382 = vmatpush.bf16.msra.mxu1 %v1956_v23 }
  0xae   : > { %v1939_v30 = vld [vmem:[%s2842_s29 + $0x1c0] sm:$0xf]  ;;  %v2354_v31 = vld [vmem:[%s2842_s29 + $0x1cc] sm:$0xf0]  ;;  %1395 = vmatpush.bf16.msra.mxu2 %v2084_v24  ;;  %v1812_v32 = vor.u32 %v2322_v29, %v1811_v27 }
  0xaf   : > { %v1940_v33 = vor.u32 %v2354_v31, %v1939_v30  ;;  %v2067_v34 = vld [vmem:[%s2842_s29 + $0x2c0] sm:$0xf]  ;;  %v2386_v35 = vld [vmem:[%s2842_s29 + $0x2cc] sm:$0xf0]  ;;  %1408 = vmatpush.bf16.msra.mxu3 %v2212_v28 }
  0xb0   : > { %v2195_v36 = vld [vmem:[%s2842_s29 + $0x3c0] sm:$0xf]  ;;  %v2068_v37 = vor.u32 %v2386_v35, %v2067_v34  ;;  %v2418_v38 = vld [vmem:[%s2842_s29 + $0x3cc] sm:$0xf0]  ;;  %1370 = vmatpush.bf16.msra.mxu0 %v1812_v32 }
  0xb1   : > { %v1795_v39 = vld [vmem:[%s2842_s29 + $0xa0] sm:$0xf]  ;;  %v2318_v40 = vld [vmem:[%s2842_s29 + $0xac] sm:$0xf0]  ;;  %v2196_v41 = vor.u32 %v2418_v38, %v2195_v36  ;;  %1383 = vmatpush.bf16.msra.mxu1 %v1940_v33 }
  0xb2   : > { %v1923_v42 = vld [vmem:[%s2842_s29 + $0x1a0] sm:$0xf]  ;;  %v2350_v43 = vld [vmem:[%s2842_s29 + $0x1ac] sm:$0xf0]  ;;  %v1796_v45 = vor.u32 %v2318_v40, %v1795_v39  ;;  %1396 = vmatpush.bf16.msra.mxu2 %v2068_v37 }
  0xb3   : > { %v2051_v44 = vld [vmem:[%s2842_s29 + $0x2a0] sm:$0xf]  ;;  %v2382_v46 = vld [vmem:[%s2842_s29 + $0x2ac] sm:$0xf0]  ;;  %v1924_v49 = vor.u32 %v2350_v43, %v1923_v42  ;;  %1409 = vmatpush.bf16.msra.mxu3 %v2196_v41 }
  0xb4   : > { %v2179_v47 = vld [vmem:[%s2842_s29 + $0x3a0] sm:$0xf]  ;;  %v2414_v48 = vld [vmem:[%s2842_s29 + $0x3ac] sm:$0xf0]  ;;  %v2052_v50 = vor.u32 %v2382_v46, %v2051_v44  ;;  %1371 = vmatpush.bf16.msra.mxu0 %v1796_v45  ;;  %v2324_v46 = vld [vmem:[%s2842_s29 + $0xe4] sm:$0xf] }
  0xb5   : > { %v1779_v51 = vld [vmem:[%s2842_s29 + $0x80] sm:$0xf]  ;;  %v2314_v52 = vld [vmem:[%s2842_s29 + $0x8c] sm:$0xf0]  ;;  %v2180_v54 = vor.u32 %v2414_v48, %v2179_v47  ;;  %1384 = vmatpush.bf16.msra.mxu1 %v1924_v49  ;;  %v1829_v48 = vld [vmem:[%s2842_s29 + $0xf0] sm:$0xf0] }
  0xb6   : > { %v1907_v53 = vld [vmem:[%s2842_s29 + $0x180] sm:$0xf]  ;;  %v2346_v55 = vld [vmem:[%s2842_s29 + $0x18c] sm:$0xf0]  ;;  %v1780_v60 = vor.u32 %v2314_v52, %v1779_v51  ;;  %1397 = vmatpush.bf16.msra.mxu2 %v2052_v50  ;;  %v2356_v49 = vld [vmem:[%s2842_s29 + $0x1e4] sm:$0xf] }
  0xb7   : > { %v2035_v56 = vld [vmem:[%s2842_s29 + $0x280] sm:$0xf]  ;;  %v2378_v57 = vld [vmem:[%s2842_s29 + $0x28c] sm:$0xf0]  ;;  %v1908_v61 = vor.u32 %v2346_v55, %v1907_v53  ;;  %1410 = vmatpush.bf16.msra.mxu3 %v2180_v54  ;;  %v1957_v50 = vld [vmem:[%s2842_s29 + $0x1f0] sm:$0xf0] }
  0xb8   : > { %v2163_v58 = vld [vmem:[%s2842_s29 + $0x380] sm:$0xf]  ;;  %v2410_v59 = vld [vmem:[%s2842_s29 + $0x38c] sm:$0xf0]  ;;  %v2036_v62 = vor.u32 %v2378_v57, %v2035_v56  ;;  %1372 = vmatpush.bf16.msra.mxu0 %v1780_v60  ;;  %v2388_v53 = vld [vmem:[%s2842_s29 + $0x2e4] sm:$0xf]  ;;  %v1960_v60 = vor.u32 %v2356_v49, %v1957_v50 }
  0xb9   : > { %v1763_v63 = vld [vmem:[%s2842_s29 + $0x60] sm:$0xf]  ;;  %v2310_v0 = vld [vmem:[%s2842_s29 + $0x6c] sm:$0xf0]  ;;  %v2164_v2 = vor.u32 %v2410_v59, %v2163_v58  ;;  %1385 = vmatpush.bf16.msra.mxu1 %v1908_v61  ;;  %v2085_v54 = vld [vmem:[%s2842_s29 + $0x2f0] sm:$0xf0]  ;;  %v1832_v59 = vor.u32 %v2324_v46, %v1829_v48 }
  0xba   : > { %v1891_v1 = vld [vmem:[%s2842_s29 + $0x160] sm:$0xf]  ;;  %v2342_v3 = vld [vmem:[%s2842_s29 + $0x16c] sm:$0xf0]  ;;  %v1764_v8 = vor.u32 %v2310_v0, %v1763_v63  ;;  %1398 = vmatpush.bf16.msra.mxu2 %v2036_v62  ;;  %v480_v58 = vld [vmem:[%s3196_s0] sm:$0xff]  ;;  %v2088_v63 = vor.u32 %v2388_v53, %v2085_v54  ;;  %v2492_v49 = vmov 0  }
  0xbb   : > { %v2019_v4 = vld [vmem:[%s2842_s29 + $0x260] sm:$0xf]  ;;  %v2374_v5 = vld [vmem:[%s2842_s29 + $0x26c] sm:$0xf0]  ;;  %v1892_v9 = vor.u32 %v2342_v3, %v1891_v1  ;;  %1411 = vmatpush.bf16.msra.mxu3 %v2164_v2  ;;  %v2320_v62 = vld [vmem:[%s2842_s29 + $0xc4] sm:$0xf]  ;;  %2467 = vset.pattern.permute.xlu0 %v2492_v49 }
  0xbc   : > { %v2147_v6 = vld [vmem:[%s2842_s29 + $0x360] sm:$0xf]  ;;  %v2406_v7 = vld [vmem:[%s2842_s29 + $0x36c] sm:$0xf0]  ;;  %v2020_v10 = vor.u32 %v2374_v5, %v2019_v4  ;;  %1373 = vmatpush.bf16.msra.mxu0 %v1764_v8  ;;  %633 = vst [vmem:[#allocation1] ss:$4 sm:$0xff] %v480_v58 }
  0xbd   : > { %v1747_v11 = vld [vmem:[%s2842_s29 + $0x40] sm:$0xf]  ;;  %v2306_v12 = vld [vmem:[%s2842_s29 + $0x4c] sm:$0xf0]  ;;  %v2148_v14 = vor.u32 %v2406_v7, %v2147_v6  ;;  %1386 = vmatpush.bf16.msra.mxu1 %v1892_v9  ;;  %v1813_v0 = vld [vmem:[%s2842_s29 + $0xd0] sm:$0xf0] }
  0xbe   : > { %v1875_v13 = vld [vmem:[%s2842_s29 + $0x140] sm:$0xf]  ;;  %v2338_v15 = vld [vmem:[%s2842_s29 + $0x14c] sm:$0xf0]  ;;  %v1748_v20 = vor.u32 %v2306_v12, %v1747_v11  ;;  %1399 = vmatpush.bf16.msra.mxu2 %v2020_v10  ;;  %v2352_v1 = vld [vmem:[%s2842_s29 + $0x1c4] sm:$0xf]  ;;  %v1816_v7 = vor.u32 %v2320_v62, %v1813_v0 }
  0xbf   : > { %v2003_v16 = vld [vmem:[%s2842_s29 + $0x240] sm:$0xf]  ;;  %v2370_v17 = vld [vmem:[%s2842_s29 + $0x24c] sm:$0xf0]  ;;  %v1876_v21 = vor.u32 %v2338_v15, %v1875_v13  ;;  %1412 = vmatpush.bf16.msra.mxu3 %v2148_v14  ;;  %v1941_v2 = vld [vmem:[%s2842_s29 + $0x1d0] sm:$0xf0] }
  0xc0   : > { %v2131_v18 = vld [vmem:[%s2842_s29 + $0x340] sm:$0xf]  ;;  %v2402_v19 = vld [vmem:[%s2842_s29 + $0x34c] sm:$0xf0]  ;;  %v2004_v22 = vor.u32 %v2370_v17, %v2003_v16  ;;  %1374 = vmatpush.bf16.msra.mxu0 %v1748_v20  ;;  %v2384_v3 = vld [vmem:[%s2842_s29 + $0x2c4] sm:$0xf]  ;;  %v1944_v8 = vor.u32 %v2352_v1, %v1941_v2 }
  0xc1   : > { %v1731_v23 = vld [vmem:[%s2842_s29 + $0x20] sm:$0xf]  ;;  %v2302_v24 = vld [vmem:[%s2842_s29 + $0x2c] sm:$0xf0]  ;;  %v2132_v26 = vor.u32 %v2402_v19, %v2131_v18  ;;  %1387 = vmatpush.bf16.msra.mxu1 %v1876_v21  ;;  %v2069_v4 = vld [vmem:[%s2842_s29 + $0x2d0] sm:$0xf0] }
  0xc2   : > { %v1859_v25 = vld [vmem:[%s2842_s29 + $0x120] sm:$0xf]  ;;  %v2334_v27 = vld [vmem:[%s2842_s29 + $0x12c] sm:$0xf0]  ;;  %v1732_v32 = vor.u32 %v2302_v24, %v1731_v23  ;;  %1400 = vmatpush.bf16.msra.mxu2 %v2004_v22  ;;  %v2316_v10 = vld [vmem:[%s2842_s29 + $0xa4] sm:$0xf]  ;;  %v2072_v12 = vor.u32 %v2384_v3, %v2069_v4 }
  0xc3   : > { %v1987_v28 = vld [vmem:[%s2842_s29 + $0x220] sm:$0xf]  ;;  %v2366_v29 = vld [vmem:[%s2842_s29 + $0x22c] sm:$0xf0]  ;;  %v1860_v35 = vor.u32 %v2334_v27, %v1859_v25  ;;  %1413 = vmatpush.bf16.msra.mxu3 %v2132_v26  ;;  %v1797_v11 = vld [vmem:[%s2842_s29 + $0xb0] sm:$0xf0] }
  0xc4   : > { %v2115_v30 = vld [vmem:[%s2842_s29 + $0x320] sm:$0xf]  ;;  %v2398_v31 = vld [vmem:[%s2842_s29 + $0x32c] sm:$0xf0]  ;;  %v1988_v36 = vor.u32 %v2366_v29, %v1987_v28  ;;  %1375 = vmatpush.bf16.msra.mxu0 %v1732_v32  ;;  %v2348_v13 = vld [vmem:[%s2842_s29 + $0x1a4] sm:$0xf]  ;;  %v1800_v24 = vor.u32 %v2316_v10, %v1797_v11 }
  0xc5   : > { %v1715_v33 = vld [vmem:[%s2842_s29] sm:$0xf]  ;;  %v2298_v34 = vld [vmem:[%s2842_s29 + $0xc] sm:$0xf0]  ;;  %v2116_v40 = vor.u32 %v2398_v31, %v2115_v30  ;;  %1388 = vmatpush.bf16.msra.mxu1 %v1860_v35  ;;  %v1925_v14 = vld [vmem:[%s2842_s29 + $0x1b0] sm:$0xf0] }
  0xc6   : > { %v1843_v37 = vld [vmem:[%s2842_s29 + $0x100] sm:$0xf]  ;;  %v2330_v38 = vld [vmem:[%s2842_s29 + $0x10c] sm:$0xf0]  ;;  %v1716_v47 = vor.u32 %v2298_v34, %v1715_v33  ;;  %1401 = vmatpush.bf16.msra.mxu2 %v1988_v36  ;;  %v2380_v15 = vld [vmem:[%s2842_s29 + $0x2a4] sm:$0xf]  ;;  %v1928_v25 = vor.u32 %v2348_v13, %v1925_v14 }
  0xc7   : > { %v1971_v39 = vld [vmem:[%s2842_s29 + $0x200] sm:$0xf]  ;;  %v2362_v41 = vld [vmem:[%s2842_s29 + $0x20c] sm:$0xf0]  ;;  %v1844_v51 = vor.u32 %v2330_v38, %v1843_v37  ;;  %1414 = vmatpush.bf16.msra.mxu3 %v2116_v40  ;;  %v2053_v16 = vld [vmem:[%s2842_s29 + $0x2b0] sm:$0xf0] }
  0xc8   : > { %v2099_v42 = vld [vmem:[%s2842_s29 + $0x300] sm:$0xf]  ;;  %v2394_v43 = vld [vmem:[%s2842_s29 + $0x30c] sm:$0xf0]  ;;  %v1972_v52 = vor.u32 %v2362_v41, %v1971_v39  ;;  %1376 = vmatpush.bf16.msra.mxu0 %v1716_v47  ;;  %v2312_v21 = vld [vmem:[%s2842_s29 + $0x84] sm:$0xf]  ;;  %v2056_v28 = vor.u32 %v2380_v15, %v2053_v16 }
  0xc9   : > { %v2275_v44 = vld [vmem:[%s2842_s29 + $0x460] sm:$0xf]  ;;  %v2438_v45 = vld [vmem:[%s2842_s29 + $0x46c] sm:$0xf0]  ;;  %v2100_v55 = vor.u32 %v2394_v43, %v2099_v42  ;;  %1389 = vmatpush.bf16.msra.mxu1 %v1844_v51  ;;  %v1781_v22 = vld [vmem:[%s2842_s29 + $0x90] sm:$0xf0] }
  0xca   : > { %v2276_v56 = vor.u32 %v2438_v45, %v2275_v44  ;;  %v2259_v57 = vld [vmem:[%s2842_s29 + $0x440] sm:$0xf]  ;;  %v2434_v61 = vld [vmem:[%s2842_s29 + $0x44c] sm:$0xf0]  ;;  %1402 = vmatpush.bf16.msra.mxu2 %v1972_v52  ;;  %v2344_v29 = vld [vmem:[%s2842_s29 + $0x184] sm:$0xf]  ;;  %v1784_v38 = vor.u32 %v2312_v21, %v1781_v22 }
  0xcb   : > { %1415 = vmatpush.bf16.msra.mxu3 %v2100_v55  ;;  %v2260_v5 = vor.u32 %v2434_v61, %v2259_v57  ;;  %v2243_v6 = vld [vmem:[%s2842_s29 + $0x420] sm:$0xf]  ;;  %v2430_v9 = vld [vmem:[%s2842_s29 + $0x42c] sm:$0xf0]  ;;  %v1909_v30 = vld [vmem:[%s2842_s29 + $0x190] sm:$0xf0] }
  0xcc   : > { %1425 = vmatpush.bf16.msrb.mxu0 %v2276_v56  ;;  %v2227_v17 = vld [vmem:[%s2842_s29 + $0x400] sm:$0xf]  ;;  %v2426_v18 = vld [vmem:[%s2842_s29 + $0x40c] sm:$0xf0]  ;;  %v2244_v19 = vor.u32 %v2430_v9, %v2243_v6  ;;  %v2376_v31 = vld [vmem:[%s2842_s29 + $0x284] sm:$0xf]  ;;  %v1912_v39 = vor.u32 %v2344_v29, %v1909_v30 }
  0xcd   : > { %1434 = vmatpush.bf16.msrb.mxu1 %v1832_v59  ;;  %v2937_v20 = vld.sshfl [vmem:[#allocation1] sm:$0xff pattern:$0x73625140]  ;;  %v2941_v23 = vld.sshfl [vmem:[#allocation1 + $0x8] sm:$0xff pattern:$0x73625140]  ;;  %v2228_v35 = vor.u32 %v2426_v18, %v2227_v17 }
  0xce   : > { %1447 = vmatpush.bf16.msrb.mxu2 %v1960_v60  ;;  %v2943_v26 = vld.sshfl [vmem:[#allocation1 + $0x10] sm:$0xff pattern:$0x73625140]  ;;  %v2945_v27 = vld.sshfl [vmem:[#allocation1 + $0x18] sm:$0xff pattern:$0x73625140]  ;;  %1377 = vmatmul.bf16.vlgmr.msra.gmra.mxu0 %v2937_v20 }
  0xcf   : > { %1460 = vmatpush.bf16.msrb.mxu3 %v2088_v63  ;;  %v2037_v32 = vld [vmem:[%s2842_s29 + $0x290] sm:$0xf0]  ;;  %v2420_v33 = vld [vmem:[%s2842_s29 + $0x3e4] sm:$0xf]  ;;  %1390 = vmatmul.bf16.vlgmr.msra.gmra.mxu1 %v2941_v23  ;;  %v481_v46 = vld [vmem:[%s3196_s0 + $0x8] sm:$0x3] }
  0xd0   : > { %1426 = vmatpush.bf16.msrb.mxu0 %v2260_v5  ;;  %v2213_v34 = vld [vmem:[%s2842_s29 + $0x3f0] sm:$0xf0]  ;;  %1403 = vmatmul.bf16.vlgmr.msra.gmra.mxu2 %v2943_v26  ;;  %v2308_v36 = vld [vmem:[%s2842_s29 + $0x64] sm:$0xf]  ;;  %v2040_v43 = vor.u32 %v2376_v31, %v2037_v32  ;;  %636 = vst [vmem:[#allocation1 + $0x20] ss:$4 sm:$0xff] %v481_v46 }
  0xd1   : > { %1435 = vmatpush.bf16.msrb.mxu1 %v1816_v7  ;;  %v1765_v37 = vld [vmem:[%s2842_s29 + $0x70] sm:$0xf0]  ;;  %1416 = vmatmul.bf16.vlgmr.msra.gmra.mxu3 %v2945_v27  ;;  %v2340_v40 = vld [vmem:[%s2842_s29 + $0x164] sm:$0xf]  ;;  %v2216_v44 = vor.u32 %v2420_v33, %v2213_v34  ;;  %v626_v54 = vld [vmem:[%s3198_s2] sm:$0x7] }
  0xd2   : > { %1448 = vmatpush.bf16.msrb.mxu2 %v1944_v8  ;;  %v1893_v41 = vld [vmem:[%s2842_s29 + $0x170] sm:$0xf0]  ;;  %v2372_v42 = vld [vmem:[%s2842_s29 + $0x264] sm:$0xf]  ;;  %v1768_v50 = vor.u32 %v2308_v36, %v1765_v37  ;;  %629 = vperm.xlu0 %2467, %v626_v54   ;;  %v1835_v30 = vld [vmem:[%s2842_s29 + $0xe8] sm:$0xf] }
  0xd3   : > { %1461 = vmatpush.bf16.msrb.mxu3 %v2072_v12  ;;  %v2021_v45 = vld [vmem:[%s2842_s29 + $0x270] sm:$0xf0]  ;;  %v2416_v47 = vld [vmem:[%s2842_s29 + $0x3c4] sm:$0xf]  ;;  %v1896_v51 = vor.u32 %v2340_v40, %v1893_v41  ;;  %v2327_v31 = vld [vmem:[%s2842_s29 + $0xf4] sm:$0xf0] }
  0xd4   : > { %1427 = vmatpush.bf16.msrb.mxu0 %v2244_v19  ;;  %v2197_v48 = vld [vmem:[%s2842_s29 + $0x3d0] sm:$0xf0]  ;;  %v2304_v52 = vld [vmem:[%s2842_s29 + $0x44] sm:$0xf]  ;;  %v2024_v55 = vor.u32 %v2372_v42, %v2021_v45  ;;  %v1963_v34 = vld [vmem:[%s2842_s29 + $0x1e8] sm:$0xf] }
  0xd5   : > { %1436 = vmatpush.bf16.msrb.mxu1 %v1800_v24  ;;  %v1749_v53 = vld [vmem:[%s2842_s29 + $0x50] sm:$0xf0]  ;;  %v2200_v56 = vor.u32 %v2416_v47, %v2197_v48  ;;  %v2336_v57 = vld [vmem:[%s2842_s29 + $0x144] sm:$0xf]  ;;  %v1819_v45 = vld [vmem:[%s2842_s29 + $0xc8] sm:$0xf] }
  0xd6   : > { %1449 = vmatpush.bf16.msrb.mxu2 %v1928_v25  ;;  %v1877_v58 = vld [vmem:[%s2842_s29 + $0x150] sm:$0xf0]  ;;  %v2368_v59 = vld [vmem:[%s2842_s29 + $0x244] sm:$0xf]  ;;  %v1752_v63 = vor.u32 %v2304_v52, %v1749_v53  ;;  %v2323_v46 = vld [vmem:[%s2842_s29 + $0xd4] sm:$0xf0] }
  0xd7   : > { %1462 = vmatpush.bf16.msrb.mxu3 %v2056_v28  ;;  %v2005_v60 = vld [vmem:[%s2842_s29 + $0x250] sm:$0xf0]  ;;  %v2412_v61 = vld [vmem:[%s2842_s29 + $0x3a4] sm:$0xf]  ;;  %v1880_v0 = vor.u32 %v2336_v57, %v1877_v58  ;;  %v1947_v47 = vld [vmem:[%s2842_s29 + $0x1c8] sm:$0xf] }
  0xd8   : > { %1428 = vmatpush.bf16.msrb.mxu0 %v2228_v35  ;;  %v2181_v62 = vld [vmem:[%s2842_s29 + $0x3b0] sm:$0xf0]  ;;  %v2300_v1 = vld [vmem:[%s2842_s29 + $0x24] sm:$0xf]  ;;  %v2008_v3 = vor.u32 %v2368_v59, %v2005_v60  ;;  %v2359_v35 = vld [vmem:[%s2842_s29 + $0x1f4] sm:$0xf0] }
  0xd9   : > { %1437 = vmatpush.bf16.msrb.mxu1 %v1784_v38  ;;  %v1733_v2 = vld [vmem:[%s2842_s29 + $0x30] sm:$0xf0]  ;;  %v2184_v4 = vor.u32 %v2412_v61, %v2181_v62  ;;  %v2332_v5 = vld [vmem:[%s2842_s29 + $0x124] sm:$0xf]  ;;  %v2355_v48 = vld [vmem:[%s2842_s29 + $0x1d4] sm:$0xf0] }
  0xda   : > { %1450 = vmatpush.bf16.msrb.mxu2 %v1912_v39  ;;  %v1861_v6 = vld [vmem:[%s2842_s29 + $0x130] sm:$0xf0]  ;;  %v2364_v7 = vld [vmem:[%s2842_s29 + $0x224] sm:$0xf]  ;;  %v1736_v12 = vor.u32 %v2300_v1, %v1733_v2  ;;  %v1836_v39 = vor.u32 %v2327_v31, %v1835_v30  ;;  %v1803_v57 = vld [vmem:[%s2842_s29 + $0xa8] sm:$0xf] }
  0xdb   : > { %1463 = vmatpush.bf16.msrb.mxu3 %v2040_v43  ;;  %v1989_v8 = vld [vmem:[%s2842_s29 + $0x230] sm:$0xf0]  ;;  %v2408_v9 = vld [vmem:[%s2842_s29 + $0x384] sm:$0xf]  ;;  %v1864_v13 = vor.u32 %v2332_v5, %v1861_v6  ;;  %v1964_v43 = vor.u32 %v2359_v35, %v1963_v34  ;;  %v2319_v58 = vld [vmem:[%s2842_s29 + $0xb4] sm:$0xf0] }
  0xdc   : > { %1473 = vmatpush.bf16.msra.mxu0 %v2216_v44  ;;  %v2165_v10 = vld [vmem:[%s2842_s29 + $0x390] sm:$0xf0]  ;;  %v2987_v11 = vld.sshfl [vmem:[#allocation1 + $0x20] sm:$0xff pattern:$0x73625140]  ;;  %v1992_v17 = vor.u32 %v2364_v7, %v1989_v8 }
  0xdd   : > { %1438 = vmatpush.bf16.msrb.mxu1 %v1768_v50  ;;  %v2296_v14 = vld [vmem:[%s2842_s29 + $0x4] sm:$0xf]  ;;  %v1717_v15 = vld [vmem:[%s2842_s29 + $0x10] sm:$0xf0]  ;;  %v2168_v18 = vor.u32 %v2408_v9, %v2165_v10  ;;  %v1931_v59 = vld [vmem:[%s2842_s29 + $0x1a8] sm:$0xf] }
  0xde   : > { %1451 = vmatpush.bf16.msrb.mxu2 %v1896_v51  ;;  %v2328_v16 = vld [vmem:[%s2842_s29 + $0x104] sm:$0xf]  ;;  %v1845_v19 = vld [vmem:[%s2842_s29 + $0x110] sm:$0xf0]  ;;  %2289 = vmatmul.msk.bf16.vlgmr.msrb.gmra.mxu0 %vm1366_vm0, %v2987_v11  ;;  %v1720_v32 = vor.u32 %v2296_v14, %v1717_v15  ;;  %v1820_v51 = vor.u32 %v2323_v46, %v1819_v45  ;;  %v2351_v60 = vld [vmem:[%s2842_s29 + $0x1b4] sm:$0xf0] }
  0xdf   : > { %1464 = vmatpush.bf16.msrb.mxu3 %v2024_v55  ;;  %v2360_v21 = vld [vmem:[%s2842_s29 + $0x204] sm:$0xf]  ;;  %v1973_v22 = vld [vmem:[%s2842_s29 + $0x210] sm:$0xf0]  ;;  %v1848_v33 = vor.u32 %v2328_v16, %v1845_v19  ;;  %v1948_v55 = vor.u32 %v2355_v48, %v1947_v47  ;;  %v1787_v5 = vld [vmem:[%s2842_s29 + $0x88] sm:$0xf] }
  0xe0   : > { %1474 = vmatpush.bf16.msra.mxu0 %v2200_v56  ;;  %v2404_v24 = vld [vmem:[%s2842_s29 + $0x364] sm:$0xf]  ;;  %v2149_v25 = vld [vmem:[%s2842_s29 + $0x370] sm:$0xf0]  ;;  %v1976_v36 = vor.u32 %v2360_v21, %v1973_v22  ;;  %v2315_v6 = vld [vmem:[%s2842_s29 + $0x94] sm:$0xf0] }
  0xe1   : > { %1439 = vmatpush.bf16.msrb.mxu1 %v1752_v63  ;;  %v2436_v28 = vld [vmem:[%s2842_s29 + $0x464] sm:$0xf]  ;;  %v2277_v29 = vld [vmem:[%s2842_s29 + $0x470] sm:$0xf0]  ;;  %v2152_v37 = vor.u32 %v2404_v24, %v2149_v25  ;;  %v1915_v7 = vld [vmem:[%s2842_s29 + $0x188] sm:$0xf]  ;;  %v1788_v16 = vor.u32 %v2315_v6, %v1787_v5 }
  0xe2   : > { %1452 = vmatpush.bf16.msrb.mxu2 %v1880_v0  ;;  %v2280_v38 = vor.u32 %v2436_v28, %v2277_v29  ;;  %v2400_v40 = vld [vmem:[%s2842_s29 + $0x344] sm:$0xf]  ;;  %v2133_v41 = vld [vmem:[%s2842_s29 + $0x350] sm:$0xf0]  ;;  %v1804_v0 = vor.u32 %v2319_v58, %v1803_v57  ;;  %v2347_v8 = vld [vmem:[%s2842_s29 + $0x194] sm:$0xf0] }
  0xe3   : > { %1465 = vmatpush.bf16.msrb.mxu3 %v2008_v3  ;;  %v2432_v42 = vld [vmem:[%s2842_s29 + $0x444] sm:$0xf]  ;;  %v2261_v44 = vld [vmem:[%s2842_s29 + $0x450] sm:$0xf0]  ;;  %v2136_v49 = vor.u32 %v2400_v40, %v2133_v41  ;;  %v2091_v9 = vld [vmem:[%s2842_s29 + $0x2e8] sm:$0xf] }
  0xe4   : > { %1475 = vmatpush.bf16.msra.mxu0 %v2184_v4  ;;  %v2264_v50 = vor.u32 %v2432_v42, %v2261_v44  ;;  %v2396_v52 = vld [vmem:[%s2842_s29 + $0x324] sm:$0xf]  ;;  %v2117_v53 = vld [vmem:[%s2842_s29 + $0x330] sm:$0xf0]  ;;  %v1932_v4 = vor.u32 %v2351_v60, %v1931_v59  ;;  %v2391_v10 = vld [vmem:[%s2842_s29 + $0x2f4] sm:$0xf0] }
  0xe5   : > { %1440 = vmatpush.bf16.msrb.mxu1 %v1736_v12  ;;  %v2428_v54 = vld [vmem:[%s2842_s29 + $0x424] sm:$0xf]  ;;  %v2245_v56 = vld [vmem:[%s2842_s29 + $0x430] sm:$0xf0]  ;;  %v2120_v61 = vor.u32 %v2396_v52, %v2117_v53  ;;  %v2423_v14 = vld [vmem:[%s2842_s29 + $0x3f4] sm:$0xf0] }
  0xe6   : > { %1453 = vmatpush.bf16.msrb.mxu2 %v1864_v13  ;;  %v2392_v62 = vld [vmem:[%s2842_s29 + $0x304] sm:$0xf]  ;;  %v2248_v63 = vor.u32 %v2428_v54, %v2245_v56  ;;  %v2101_v1 = vld [vmem:[%s2842_s29 + $0x310] sm:$0xf0]  ;;  %v2219_v13 = vld [vmem:[%s2842_s29 + $0x3e8] sm:$0xf] }
  0xe7   : > { %1466 = vmatpush.bf16.msrb.mxu3 %v1992_v17  ;;  %v2424_v2 = vld [vmem:[%s2842_s29 + $0x404] sm:$0xf]  ;;  %v2229_v3 = vld [vmem:[%s2842_s29 + $0x410] sm:$0xf0]  ;;  %v2104_v12 = vor.u32 %v2392_v62, %v2101_v1  ;;  %v1916_v17 = vor.u32 %v2347_v8, %v1915_v7  ;;  %v1771_v19 = vld [vmem:[%s2842_s29 + $0x68] sm:$0xf]  ;;  %v2220_v24 = vor.u32 %v2423_v14, %v2219_v13 }
  0xe8   : > { %1476 = vmatpush.bf16.msra.mxu0 %v2168_v18  ;;  %v2232_v15 = vor.u32 %v2424_v2, %v2229_v3  ;;  %v2092_v18 = vor.u32 %v2391_v10, %v2091_v9  ;;  %v2311_v21 = vld [vmem:[%s2842_s29 + $0x74] sm:$0xf0]  ;;  %v1899_v22 = vld [vmem:[%s2842_s29 + $0x168] sm:$0xf]  ;;  %v2325_v7 = vld [vmem:[%s2842_s29 + $0xec] sm:$0xf] }
  0xe9   : > { %1441 = vmatpush.bf16.msrb.mxu1 %v1720_v32  ;;  %v2343_v25 = vld [vmem:[%s2842_s29 + $0x174] sm:$0xf0]  ;;  %v2075_v28 = vld [vmem:[%s2842_s29 + $0x2c8] sm:$0xf]  ;;  %v1772_v32 = vor.u32 %v2311_v21, %v1771_v19  ;;  %v1837_v8 = vld [vmem:[%s2842_s29 + $0xf8] sm:$0xf0] }
  0xea   : > { %1454 = vmatpush.bf16.msrb.mxu2 %v1848_v33  ;;  %v2387_v29 = vld [vmem:[%s2842_s29 + $0x2d4] sm:$0xf0]  ;;  %v2203_v30 = vld [vmem:[%s2842_s29 + $0x3c8] sm:$0xf]  ;;  %v1900_v33 = vor.u32 %v2343_v25, %v1899_v22  ;;  %v2321_v22 = vld [vmem:[%s2842_s29 + $0xcc] sm:$0xf] }
  0xeb   : > { %1467 = vmatpush.bf16.msrb.mxu3 %v1976_v36  ;;  %v2419_v31 = vld [vmem:[%s2842_s29 + $0x3d4] sm:$0xf0]  ;;  %v2076_v34 = vor.u32 %v2387_v29, %v2075_v28  ;;  %v1755_v35 = vld [vmem:[%s2842_s29 + $0x48] sm:$0xf] }
  0xec   : > { %1477 = vmatpush.bf16.msra.mxu0 %v2152_v37  ;;  %1442 = vmatmul.bf16.vlgmr.msrb.gmra.mxu1 %v2937_v20  ;;  %v2307_v36 = vld [vmem:[%s2842_s29 + $0x54] sm:$0xf0]  ;;  %v1883_v37 = vld [vmem:[%s2842_s29 + $0x148] sm:$0xf] }
  0xed   : > { %1490 = vmatpush.bf16.msra.mxu1 %v2280_v38  ;;  %1455 = vmatmul.bf16.vlgmr.msrb.gmra.mxu2 %v2941_v23  ;;  %v2204_v38 = vor.u32 %v2419_v31, %v2203_v30  ;;  %v2059_v40 = vld [vmem:[%s2842_s29 + $0x2a8] sm:$0xf]  ;;  %v2383_v41 = vld [vmem:[%s2842_s29 + $0x2b4] sm:$0xf0]  ;;  %v1756_v44 = vor.u32 %v2307_v36, %v1755_v35 }
  0xee   : > { %1499 = vmatpush.bf16.msra.mxu2 %v1836_v39  ;;  %1468 = vmatmul.bf16.vlgmr.msrb.gmra.mxu3 %v2943_v26  ;;  %v2339_v39 = vld [vmem:[%s2842_s29 + $0x154] sm:$0xf0]  ;;  %v2187_v42 = vld [vmem:[%s2842_s29 + $0x3a8] sm:$0xf]  ;;  %v2060_v46 = vor.u32 %v2383_v41, %v2059_v40 }
  0xef   : > { %1512 = vmatpush.bf16.msra.mxu3 %v1964_v43  ;;  %v2415_v43 = vld [vmem:[%s2842_s29 + $0x3b4] sm:$0xf0]  ;;  %v1884_v45 = vor.u32 %v2339_v39, %v1883_v37  ;;  %v1739_v47 = vld [vmem:[%s2842_s29 + $0x28] sm:$0xf]  ;;  %v2317_v37 = vld [vmem:[%s2842_s29 + $0xac] sm:$0xf] }
  0xf0   : > { %1478 = vmatpush.bf16.msra.mxu0 %v2136_v49  ;;  %v2303_v48 = vld [vmem:[%s2842_s29 + $0x34] sm:$0xf0]  ;;  %v1867_v49 = vld [vmem:[%s2842_s29 + $0x128] sm:$0xf] }
  0xf1   : > { %1491 = vmatpush.bf16.msra.mxu1 %v2264_v50  ;;  %v2188_v50 = vor.u32 %v2415_v43, %v2187_v42  ;;  %v2043_v52 = vld [vmem:[%s2842_s29 + $0x288] sm:$0xf]  ;;  %v2379_v53 = vld [vmem:[%s2842_s29 + $0x294] sm:$0xf0]  ;;  %v1740_v56 = vor.u32 %v2303_v48, %v1739_v47 }
  0xf2   : > { %1500 = vmatpush.bf16.msra.mxu2 %v1820_v51  ;;  %v2335_v51 = vld [vmem:[%s2842_s29 + $0x134] sm:$0xf0]  ;;  %v2171_v54 = vld [vmem:[%s2842_s29 + $0x388] sm:$0xf]  ;;  %v2044_v59 = vor.u32 %v2379_v53, %v2043_v52  ;;  %v1965_v52 = vld [vmem:[%s2842_s29 + $0x1f8] sm:$0xf0] }
  0xf3   : > { %1513 = vmatpush.bf16.msra.mxu3 %v1948_v55  ;;  %v2411_v55 = vld [vmem:[%s2842_s29 + $0x394] sm:$0xf0]  ;;  %v1723_v57 = vld [vmem:[%s2842_s29 + $0x8] sm:$0xf]  ;;  %v1868_v58 = vor.u32 %v2335_v51, %v1867_v49  ;;  %v2313_v49 = vld [vmem:[%s2842_s29 + $0x8c] sm:$0xf] }
  0xf4   : > { %1479 = vmatpush.bf16.msra.mxu0 %v2120_v61  ;;  %v2299_v60 = vld [vmem:[%s2842_s29 + $0x14] sm:$0xf0]  ;;  %v1851_v61 = vld [vmem:[%s2842_s29 + $0x108] sm:$0xf]  ;;  %v2357_v51 = vld [vmem:[%s2842_s29 + $0x1ec] sm:$0xf] }
  0xf5   : > { %1492 = vmatpush.bf16.msra.mxu1 %v2248_v63  ;;  %v2331_v62 = vld [vmem:[%s2842_s29 + $0x114] sm:$0xf0]  ;;  %v2172_v63 = vor.u32 %v2411_v55, %v2171_v54  ;;  %v2155_v2 = vld [vmem:[%s2842_s29 + $0x368] sm:$0xf]  ;;  %v1724_v6 = vor.u32 %v2299_v60, %v1723_v57  ;;  %v2389_v53 = vld [vmem:[%s2842_s29 + $0x2ec] sm:$0xf] }
  0xf6   : > { %1501 = vmatpush.bf16.msra.mxu2 %v1804_v0  ;;  %v2027_v0 = vld [vmem:[%s2842_s29 + $0x268] sm:$0xf]  ;;  %v2375_v1 = vld [vmem:[%s2842_s29 + $0x274] sm:$0xf0]  ;;  %v1852_v9 = vor.u32 %v2331_v62, %v1851_v61  ;;  %v2093_v55 = vld [vmem:[%s2842_s29 + $0x2f8] sm:$0xf0]  ;;  %v1968_v61 = vor.u32 %v2357_v51, %v1965_v52 }
  0xf7   : > { %1514 = vmatpush.bf16.msra.mxu3 %v1932_v4  ;;  %v2407_v3 = vld [vmem:[%s2842_s29 + $0x374] sm:$0xf0]  ;;  %v2283_v4 = vld [vmem:[%s2842_s29 + $0x468] sm:$0xf]  ;;  %v2028_v10 = vor.u32 %v2375_v1, %v2027_v0  ;;  %v2221_v57 = vld [vmem:[%s2842_s29 + $0x3f8] sm:$0xf0]  ;;  %v2096_v0 = vor.u32 %v2389_v53, %v2093_v55 }
  0xf8   : > { %1480 = vmatpush.bf16.msra.mxu0 %v2104_v12  ;;  %v2439_v5 = vld [vmem:[%s2842_s29 + $0x474] sm:$0xf0]  ;;  %v2156_v12 = vor.u32 %v2407_v3, %v2155_v2  ;;  %v2011_v14 = vld [vmem:[%s2842_s29 + $0x248] sm:$0xf]  ;;  %v2309_v62 = vld [vmem:[%s2842_s29 + $0x6c] sm:$0xf] }
  0xf9   : > { %1493 = vmatpush.bf16.msra.mxu1 %v2232_v15  ;;  %v2284_v13 = vor.u32 %v2439_v5, %v2283_v4  ;;  %v2371_v15 = vld [vmem:[%s2842_s29 + $0x254] sm:$0xf0]  ;;  %v2267_v19 = vld [vmem:[%s2842_s29 + $0x448] sm:$0xf]  ;;  %v2353_v2 = vld [vmem:[%s2842_s29 + $0x1cc] sm:$0xf] }
  0xfa   : > { %1502 = vmatpush.bf16.msra.mxu2 %v1788_v16  ;;  %v2139_v16 = vld [vmem:[%s2842_s29 + $0x348] sm:$0xf]  ;;  %v2435_v21 = vld [vmem:[%s2842_s29 + $0x454] sm:$0xf0]  ;;  %v2012_v25 = vor.u32 %v2371_v15, %v2011_v14  ;;  %v1949_v3 = vld [vmem:[%s2842_s29 + $0x1d8] sm:$0xf0] }
  0xfb   : > { %1515 = vmatpush.bf16.msra.mxu3 %v1916_v17  ;;  %1481 = vmatmul.bf16.vlgmr.msra.gmra.mxu0 %v2945_v27  ;;  %v1840_v17 = vor.u32 %v2325_v7, %v1837_v8  ;;  %v2268_v29 = vor.u32 %v2435_v21, %v2267_v19  ;;  %v1995_v30 = vld [vmem:[%s2842_s29 + $0x228] sm:$0xf]  ;;  %v2367_v31 = vld [vmem:[%s2842_s29 + $0x234] sm:$0xf0]  ;;  %v2385_v4 = vld [vmem:[%s2842_s29 + $0x2cc] sm:$0xf] }
  0xfc   : > { %1525 = vmatpush.bf16.msrb.mxu0 %v2092_v18  ;;  %2290 = vmatmul.msk.bf16.vlgmr.msra.gmra.mxu1 %vm1366_vm0, %v2987_v11  ;;  %v2403_v18 = vld [vmem:[%s2842_s29 + $0x354] sm:$0xf0]  ;;  %v2251_v35 = vld [vmem:[%s2842_s29 + $0x428] sm:$0xf]  ;;  %v1996_v39 = vor.u32 %v2367_v31, %v1995_v30  ;;  %v2077_v5 = vld [vmem:[%s2842_s29 + $0x2d8] sm:$0xf0] }
  0xfd   : > { %1538 = vmatpush.bf16.msrb.mxu1 %v2220_v24  ;;  %v1821_v24 = vld [vmem:[%s2842_s29 + $0xd8] sm:$0xf0]  ;;  %v2140_v28 = vor.u32 %v2403_v18, %v2139_v16  ;;  %v2431_v36 = vld [vmem:[%s2842_s29 + $0x434] sm:$0xf0]  ;;  %v1979_v40 = vld [vmem:[%s2842_s29 + $0x208] sm:$0xf] }
  0xfe   : > { %1503 = vmatpush.bf16.msra.mxu2 %v1772_v32  ;;  %v2123_v32 = vld [vmem:[%s2842_s29 + $0x328] sm:$0xf]  ;;  %v2363_v41 = vld [vmem:[%s2842_s29 + $0x214] sm:$0xf0]  ;;  %v2252_v43 = vor.u32 %v2431_v36, %v2251_v35  ;;  %v2205_v7 = vld [vmem:[%s2842_s29 + $0x3d8] sm:$0xf0] }
  0xff   : > { %1516 = vmatpush.bf16.msra.mxu3 %v1900_v33  ;;  %v1824_v33 = vor.u32 %v2321_v22, %v1821_v24  ;;  %v2427_v48 = vld [vmem:[%s2842_s29 + $0x414] sm:$0xf0]  ;;  %v1980_v54 = vor.u32 %v2363_v41, %v1979_v40  ;;  %v2349_v15 = vld [vmem:[%s2842_s29 + $0x1ac] sm:$0xf]  ;;  %v1933_v16 = vld [vmem:[%s2842_s29 + $0x1b8] sm:$0xf0] }
 0x100   : > { %1526 = vmatpush.bf16.msrb.mxu0 %v2076_v34  ;;  %v2399_v34 = vld [vmem:[%s2842_s29 + $0x334] sm:$0xf0]  ;;  %v2061_v18 = vld [vmem:[%s2842_s29 + $0x2b8] sm:$0xf0]  ;;  %v2413_v19 = vld [vmem:[%s2842_s29 + $0x3ac] sm:$0xf]  ;;  %v1936_v24 = vor.u32 %v2349_v15, %v1933_v16 }
 0x101   : > { %1539 = vmatpush.bf16.msrb.mxu1 %v2204_v38  ;;  %v1805_v38 = vld [vmem:[%s2842_s29 + $0xb8] sm:$0xf0]  ;;  %v2124_v42 = vor.u32 %v2399_v34, %v2123_v32  ;;  %v2345_v31 = vld [vmem:[%s2842_s29 + $0x18c] sm:$0xf] }
 0x102   : > { %1504 = vmatpush.bf16.msra.mxu2 %v1756_v44  ;;  %v2107_v44 = vld [vmem:[%s2842_s29 + $0x308] sm:$0xf]  ;;  %v1808_v47 = vor.u32 %v2317_v37, %v1805_v38  ;;  %v2189_v21 = vld [vmem:[%s2842_s29 + $0x3b8] sm:$0xf0]  ;;  %v2409_v35 = vld [vmem:[%s2842_s29 + $0x38c] sm:$0xf] }
 0x103   : > { %1517 = vmatpush.bf16.msra.mxu3 %v1884_v45  ;;  %v2395_v45 = vld [vmem:[%s2842_s29 + $0x314] sm:$0xf0]  ;;  %v2192_v30 = vor.u32 %v2413_v19, %v2189_v21  ;;  %v1917_v32 = vld [vmem:[%s2842_s29 + $0x198] sm:$0xf0]  ;;  %v2337_v55 = vld [vmem:[%s2842_s29 + $0x14c] sm:$0xf] }
 0x104   : > { %1527 = vmatpush.bf16.msrb.mxu0 %v2060_v46  ;;  %v2235_v46 = vld [vmem:[%s2842_s29 + $0x408] sm:$0xf]  ;;  %v2045_v34 = vld [vmem:[%s2842_s29 + $0x298] sm:$0xf0]  ;;  %v1920_v38 = vor.u32 %v2345_v31, %v1917_v32  ;;  %v2329_v16 = vld [vmem:[%s2842_s29 + $0x10c] sm:$0xf] }
 0x105   : > { %1540 = vmatpush.bf16.msrb.mxu1 %v2188_v50  ;;  %v1789_v50 = vld [vmem:[%s2842_s29 + $0x98] sm:$0xf0] }
 0x106   : > { %1505 = vmatpush.bf16.msra.mxu2 %v1740_v56  ;;  %v2421_v56 = vld [vmem:[%s2842_s29 + $0x3ec] sm:$0xf]  ;;  %v1792_v60 = vor.u32 %v2313_v49, %v1789_v50  ;;  %v2173_v36 = vld [vmem:[%s2842_s29 + $0x398] sm:$0xf0] }
 0x107   : > { %1518 = vmatpush.bf16.msra.mxu3 %v1868_v58  ;;  %v2108_v58 = vor.u32 %v2395_v45, %v2107_v44  ;;  %v2224_v1 = vor.u32 %v2421_v56, %v2221_v57  ;;  %v1725_v40 = vld [vmem:[%s2842_s29 + $0x18] sm:$0xf0]  ;;  %v2373_v45 = vld [vmem:[%s2842_s29 + $0x26c] sm:$0xf] }
 0x108   : > { %1528 = vmatpush.bf16.msrb.mxu0 %v2044_v59  ;;  %v2236_v59 = vor.u32 %v2427_v48, %v2235_v46  ;;  %v1901_v44 = vld [vmem:[%s2842_s29 + $0x178] sm:$0xf0]  ;;  %v2437_v49 = vld [vmem:[%s2842_s29 + $0x46c] sm:$0xf] }
 0x109   : > { %1541 = vmatpush.bf16.msrb.mxu1 %v2172_v63  ;;  %v1773_v63 = vld [vmem:[%s2842_s29 + $0x78] sm:$0xf0]  ;;  %v2369_v57 = vld [vmem:[%s2842_s29 + $0x24c] sm:$0xf] }
 0x10a   : > { %1506 = vmatpush.bf16.msra.mxu2 %v1724_v6  ;;  %v2417_v6 = vld [vmem:[%s2842_s29 + $0x3cc] sm:$0xf]  ;;  %v1776_v8 = vor.u32 %v2309_v62, %v1773_v63  ;;  %v2029_v46 = vld [vmem:[%s2842_s29 + $0x278] sm:$0xf0] }
 0x10b   : > { %1519 = vmatpush.bf16.msra.mxu3 %v1852_v9  ;;  %v1952_v9 = vor.u32 %v2353_v2, %v1949_v3  ;;  %v2208_v14 = vor.u32 %v2417_v6, %v2205_v7  ;;  %v2157_v48 = vld [vmem:[%s2842_s29 + $0x378] sm:$0xf0]  ;;  %v2032_v53 = vor.u32 %v2373_v45, %v2029_v46  ;;  %v2433_v62 = vld [vmem:[%s2842_s29 + $0x44c] sm:$0xf] }
 0x10c   : > { %1529 = vmatpush.bf16.msrb.mxu0 %v2028_v10  ;;  %v2305_v10 = vld [vmem:[%s2842_s29 + $0x4c] sm:$0xf]  ;;  %v2285_v50 = vld [vmem:[%s2842_s29 + $0x478] sm:$0xf0] }
 0x10d   : > { %1542 = vmatpush.bf16.msrb.mxu1 %v2156_v12  ;;  %1507 = vmatmul.bf16.vlgmr.msra.gmra.mxu2 %v2937_v20  ;;  %v1757_v12 = vld [vmem:[%s2842_s29 + $0x58] sm:$0xf0]  ;;  %v2333_v3 = vld [vmem:[%s2842_s29 + $0x12c] sm:$0xf] }
 0x10e   : > { %1555 = vmatpush.bf16.msrb.mxu2 %v2284_v13  ;;  %1520 = vmatmul.bf16.vlgmr.msra.gmra.mxu3 %v2941_v23  ;;  %v2080_v13 = vor.u32 %v2385_v4, %v2077_v5  ;;  %v1760_v22 = vor.u32 %v2305_v10, %v1757_v12  ;;  %v1885_v56 = vld [vmem:[%s2842_s29 + $0x158] sm:$0xf0]  ;;  %v2365_v5 = vld [vmem:[%s2842_s29 + $0x22c] sm:$0xf] }
 0x10f   : > { %1564 = vmatpush.bf16.msrb.mxu3 %v1840_v17  ;;  %v2381_v17 = vld [vmem:[%s2842_s29 + $0x2ac] sm:$0xf]  ;;  %v2269_v63 = vld [vmem:[%s2842_s29 + $0x458] sm:$0xf0] }
 0x110   : > { %1530 = vmatpush.bf16.msrb.mxu0 %v2012_v25  ;;  %v2301_v25 = vld [vmem:[%s2842_s29 + $0x2c] sm:$0xf]  ;;  %v1869_v4 = vld [vmem:[%s2842_s29 + $0x138] sm:$0xf0]  ;;  %v2272_v6 = vor.u32 %v2433_v62, %v2269_v63 }
 0x111   : > { %1543 = vmatpush.bf16.msrb.mxu1 %v2140_v28  ;;  %v1741_v28 = vld [vmem:[%s2842_s29 + $0x38] sm:$0xf0]  ;;  %v2429_v10 = vld [vmem:[%s2842_s29 + $0x42c] sm:$0xf] }
 0x112   : > { %1556 = vmatpush.bf16.msrb.mxu2 %v2268_v29  ;;  %v2064_v29 = vor.u32 %v2381_v17, %v2061_v18  ;;  %v1744_v37 = vor.u32 %v2301_v25, %v1741_v28  ;;  %v1997_v7 = vld [vmem:[%s2842_s29 + $0x238] sm:$0xf0]  ;;  %v2361_v18 = vld [vmem:[%s2842_s29 + $0x20c] sm:$0xf] }
 0x113   : > { %1565 = vmatpush.bf16.msrb.mxu3 %v1824_v33  ;;  %v2377_v33 = vld [vmem:[%s2842_s29 + $0x28c] sm:$0xf]  ;;  %v2253_v12 = vld [vmem:[%s2842_s29 + $0x438] sm:$0xf0] }
 0x114   : > { %1531 = vmatpush.bf16.msrb.mxu0 %v1996_v39  ;;  %v2297_v39 = vld [vmem:[%s2842_s29 + $0xc] sm:$0xf]  ;;  %v2048_v41 = vor.u32 %v2377_v33, %v2045_v34  ;;  %v1853_v17 = vld [vmem:[%s2842_s29 + $0x118] sm:$0xf0]  ;;  %v2256_v19 = vor.u32 %v2429_v10, %v2253_v12 }
 0x115   : > { %1544 = vmatpush.bf16.msrb.mxu1 %v2124_v42  ;;  %v2176_v42 = vor.u32 %v2409_v35, %v2173_v36  ;;  %v1728_v51 = vor.u32 %v2297_v39, %v1725_v40  ;;  %v1981_v21 = vld [vmem:[%s2842_s29 + $0x218] sm:$0xf0]  ;;  %v1856_v28 = vor.u32 %v2329_v16, %v1853_v17 }
 0x116   : > { %1557 = vmatpush.bf16.msrb.mxu2 %v2252_v43  ;;  %v2341_v43 = vld [vmem:[%s2842_s29 + $0x16c] sm:$0xf]  ;;  %v2237_v25 = vld [vmem:[%s2842_s29 + $0x418] sm:$0xf0] }
 0x117   : > { %1566 = vmatpush.bf16.msrb.mxu3 %v1808_v47  ;;  %v2405_v47 = vld [vmem:[%s2842_s29 + $0x36c] sm:$0xf]  ;;  %v1904_v52 = vor.u32 %v2341_v43, %v1901_v44 }
 0x118   : > { %1532 = vmatpush.bf16.msrb.mxu0 %v1980_v54  ;;  %v2160_v54 = vor.u32 %v2405_v47, %v2157_v48 }
 0x119   : > { %1545 = vmatpush.bf16.msrb.mxu1 %v2108_v58  ;;  %v2288_v58 = vor.u32 %v2437_v49, %v2285_v50 }
 0x11a   : > { %1558 = vmatpush.bf16.msrb.mxu2 %v2236_v59  ;;  %v2013_v59 = vld [vmem:[%s2842_s29 + $0x258] sm:$0xf0] }
 0x11b   : > { %1567 = vmatpush.bf16.msrb.mxu3 %v1792_v60  ;;  %1533 = vmatmul.bf16.vlgmr.msrb.gmra.mxu0 %v2943_v26  ;;  %v2401_v60 = vld [vmem:[%s2842_s29 + $0x34c] sm:$0xf] }
 0x11c   : > { %1577 = vmatpush.bf16.msra.mxu0 %v1968_v61  ;;  %1546 = vmatmul.bf16.vlgmr.msrb.gmra.mxu1 %v2945_v27  ;;  %v2141_v61 = vld [vmem:[%s2842_s29 + $0x358] sm:$0xf0] }
 0x11d   : > { %1590 = vmatpush.bf16.msra.mxu1 %v2096_v0  ;;  %2291 = vmatmul.msk.bf16.vlgmr.msrb.gmra.mxu2 %vm1366_vm0, %v2987_v11  ;;  %v1888_v0 = vor.u32 %v2337_v55, %v1885_v56  ;;  %v2144_v2 = vor.u32 %v2401_v60, %v2141_v61 }
 0x11e   : > { %1603 = vmatpush.bf16.msra.mxu2 %v2224_v1  ;;  %v2016_v1 = vor.u32 %v2369_v57, %v2013_v59 }
 0x11f   : > { %1568 = vmatpush.bf16.msrb.mxu3 %v1776_v8  ;;  %v2397_v8 = vld [vmem:[%s2842_s29 + $0x32c] sm:$0xf] }
 0x120   : > { %1578 = vmatpush.bf16.msra.mxu0 %v1952_v9  ;;  %v2125_v9 = vld [vmem:[%s2842_s29 + $0x338] sm:$0xf0] }
 0x121   : > { %1591 = vmatpush.bf16.msra.mxu1 %v2080_v13  ;;  %v1872_v13 = vor.u32 %v2333_v3, %v1869_v4  ;;  %v2128_v15 = vor.u32 %v2397_v8, %v2125_v9 }
 0x122   : > { %1604 = vmatpush.bf16.msra.mxu2 %v2208_v14  ;;  %v2000_v14 = vor.u32 %v2365_v5, %v1997_v7 }
 0x123   : > { %1569 = vmatpush.bf16.msrb.mxu3 %v1760_v22  ;;  %v2393_v22 = vld [vmem:[%s2842_s29 + $0x30c] sm:$0xf] }
 0x124   : > { %1579 = vmatpush.bf16.msra.mxu0 %v1936_v24  ;;  %v2109_v24 = vld [vmem:[%s2842_s29 + $0x318] sm:$0xf0] }
 0x125   : > { %1592 = vmatpush.bf16.msra.mxu1 %v2064_v29  ;;  %v1984_v29 = vor.u32 %v2361_v18, %v1981_v21 }
 0x126   : > { %1605 = vmatpush.bf16.msra.mxu2 %v2192_v30  ;;  %v2112_v30 = vor.u32 %v2393_v22, %v2109_v24 }
 0x127   : > { %1570 = vmatpush.bf16.msrb.mxu3 %v1744_v37 }
 0x128   : > { %1580 = vmatpush.bf16.msra.mxu0 %v1920_v38 }
 0x129   : > { %1593 = vmatpush.bf16.msra.mxu1 %v2048_v41 }
 0x12a   : > { %1606 = vmatpush.bf16.msra.mxu2 %v2176_v42 }
 0x12b   : > { %1571 = vmatpush.bf16.msrb.mxu3 %v1728_v51 }
 0x12c   : > { %1581 = vmatpush.bf16.msra.mxu0 %v1904_v52 }
 0x12d   : > { %1594 = vmatpush.bf16.msra.mxu1 %v2032_v53 }
 0x12e   : > { %1607 = vmatpush.bf16.msra.mxu2 %v2160_v54  ;;  %1572 = vmatmul.bf16.vlgmr.msrb.gmra.mxu3 %v2937_v20  ;;  %v2425_v20 = vld [vmem:[%s2842_s29 + $0x40c] sm:$0xf] }
 0x12f   : > { %1620 = vmatpush.bf16.msra.mxu3 %v2288_v58  ;;  %v2240_v31 = vor.u32 %v2425_v20, %v2237_v25 }
 0x130   : > { %1582 = vmatpush.bf16.msra.mxu0 %v1888_v0 }
 0x131   : > { %1595 = vmatpush.bf16.msra.mxu1 %v2016_v1 }
 0x132   : > { %1608 = vmatpush.bf16.msra.mxu2 %v2144_v2 }
 0x133   : > { %1621 = vmatpush.bf16.msra.mxu3 %v2272_v6 }
 0x134   : > { %1583 = vmatpush.bf16.msra.mxu0 %v1872_v13 }
 0x135   : > { %1596 = vmatpush.bf16.msra.mxu1 %v2000_v14 }
 0x136   : > { %1609 = vmatpush.bf16.msra.mxu2 %v2128_v15 }
 0x137   : > { %1622 = vmatpush.bf16.msra.mxu3 %v2256_v19 }
 0x138   : > { %1584 = vmatpush.bf16.msra.mxu0 %v1856_v28 }
 0x139   : > { %1597 = vmatpush.bf16.msra.mxu1 %v1984_v29 }
 0x13a   : > { %1610 = vmatpush.bf16.msra.mxu2 %v2112_v30 }
 0x13b   : > { %1623 = vmatpush.bf16.msra.mxu3 %v2240_v31  ;;  %1585 = vmatmul.bf16.vlgmr.msra.gmra.mxu0 %v2941_v23 }
 0x13c   : > { %1598 = vmatmul.bf16.vlgmr.msra.gmra.mxu1 %v2943_v26 }
 0x13d   : > { %1611 = vmatmul.bf16.vlgmr.msra.gmra.mxu2 %v2945_v27 }
 0x13e   : > { %2292 = vmatmul.msk.bf16.vlgmr.msra.gmra.mxu3 %vm1366_vm0, %v2987_v11 }
 0x144   : > { %v630_v23 = vpop.permute.xlu0 %629 }
 0x14b   : > { %v1378_v32 = vpop.f32.mrf.mxu0 }
 0x14c   : > { %v1391_v33 = vpop.f32.mrf.mxu1  ;;  %v1379_v26 = vadd.f32 %v1378_v32, %v630_v23 }
 0x14e   : > { %v1392_v46 = vadd.f32 %v1391_v33, %v1379_v26 }
 0x153   : > { %v1404_v34 = vpop.f32.mrf.mxu2  ;;  %v1380_v35 = vpop.f32.mrf.mxu0 }
 0x154   : > { %v1417_v36 = vpop.f32.mrf.mxu3  ;;  %v1393_v37 = vpop.f32.mrf.mxu1  ;;  %v1405_v48 = vadd.f32 %v1404_v34, %v1392_v46 }
 0x156   : > { %v1418_v53 = vadd.f32 %v1417_v36, %v1405_v48 }
 0x15b   : > { %v1406_v38 = vpop.f32.mrf.mxu2  ;;  %v1430_v40 = vpop.f32.mrf.mxu0 }
 0x15c   : > { %v1419_v39 = vpop.f32.mrf.mxu3  ;;  %v1431_v56 = vadd.f32 %v1430_v40, %v1418_v53 }
 0x163   : > { %v1432_v41 = vpop.f32.mrf.mxu0 }
 0x169   : > { %v1443_v42 = vpop.f32.mrf.mxu1 }
 0x16a   : > { %v1444_v43 = vadd.f32 %v1443_v42, %v630_v23 }
 0x170   : > { %v1456_v44 = vpop.f32.mrf.mxu2 }
 0x171   : > { %v1469_v27 = vpop.f32.mrf.mxu3  ;;  %v1445_v11 = vpop.f32.mrf.mxu1  ;;  %v1457_v45 = vadd.f32 %v1456_v44, %v1444_v43 }
 0x173   : > { %v1470_v47 = vadd.f32 %v1469_v27, %v1457_v45 }
 0x178   : > { %v1482_v49 = vpop.f32.mrf.mxu0  ;;  %v1458_v51 = vpop.f32.mrf.mxu2 }
 0x179   : > { %v1483_v50 = vadd.f32 %v1482_v49, %v1470_v47  ;;  %v1471_v52 = vpop.f32.mrf.mxu3  ;;  %v1495_v54 = vpop.f32.mrf.mxu1 }
 0x17b   : > { %v1496_v55 = vadd.f32 %v1495_v54, %v1483_v50 }
 0x17d   : > { %v1633_v57 = vrot.slane %v1496_v55, 4 }
 0x17f   : > { %v1636_v59 = vsel %vm1635_vm1, %v1431_v56, %v1633_v57 }
 0x180   : > { %v1484_v58 = vpop.f32.mrf.mxu0  ;;  %1640 = vst [vmem:[%s3180_s14] sm:$0x77] %v1636_v59 }
 0x181   : > { %v1497_v60 = vpop.f32.mrf.mxu1 }
 0x190   : > { %v1508_v61 = vpop.f32.mrf.mxu2 }
 0x191   : > { %v1521_v62 = vpop.f32.mrf.mxu3  ;;  %v1509_v8 = vadd.f32 %v1508_v61, %v630_v23 }
 0x193   : > { %v1522_v12 = vadd.f32 %v1521_v62, %v1509_v8 }
 0x198   : > { %v1510_v63 = vpop.f32.mrf.mxu2  ;;  %v1534_v0 = vpop.f32.mrf.mxu0 }
 0x199   : > { %v1523_v1 = vpop.f32.mrf.mxu3  ;;  %v1547_v2 = vpop.f32.mrf.mxu1  ;;  %v1535_v16 = vadd.f32 %v1534_v0, %v1522_v12 }
 0x19b   : > { %v1548_v22 = vadd.f32 %v1547_v2, %v1535_v16 }
 0x1a0   : > { %v1536_v3 = vpop.f32.mrf.mxu0  ;;  %v1560_v5 = vpop.f32.mrf.mxu2 }
 0x1a1   : > { %v1549_v4 = vpop.f32.mrf.mxu1  ;;  %v1561_v28 = vadd.f32 %v1560_v5, %v1548_v22 }
 0x1a8   : > { %v1562_v6 = vpop.f32.mrf.mxu2 }
 0x1b1   : > { %v1573_v7 = vpop.f32.mrf.mxu3 }
 0x1b2   : > { %v1574_v9 = vadd.f32 %v1573_v7, %v630_v23 }
 0x1b8   : > { %v1586_v10 = vpop.f32.mrf.mxu0 }
 0x1b9   : > { %v1599_v13 = vpop.f32.mrf.mxu1  ;;  %v1587_v14 = vadd.f32 %v1586_v10, %v1574_v9  ;;  %v1575_v15 = vpop.f32.mrf.mxu3 }
 0x1bb   : > { %v1600_v17 = vadd.f32 %v1599_v13, %v1587_v14 }
 0x1c0   : > { %v1612_v18 = vpop.f32.mrf.mxu2  ;;  %v1588_v21 = vpop.f32.mrf.mxu0 }
 0x1c1   : > { %v1613_v19 = vadd.f32 %v1612_v18, %v1600_v17  ;;  %v1601_v24 = vpop.f32.mrf.mxu1  ;;  %v1625_v20 = vpop.f32.mrf.mxu3 }
 0x1c3   : > { %v1626_v25 = vadd.f32 %v1625_v20, %v1613_v19 }
 0x1c5   : > { %v1634_v29 = vrot.slane %v1626_v25, 4 }
 0x1c7   : > { %v1637_v30 = vsel %vm1635_vm1, %v1561_v28, %v1634_v29 }
 0x1c8   : > { %v1614_v31 = vpop.f32.mrf.mxu2  ;;  %1641 = vst [vmem:[%s3180_s14 + $0x8] sm:$0x77] %v1637_v30 }
 0x1c9   : > { %v1627_v32 = vpop.f32.mrf.mxu3 }
 0x1ca PF: > { %p10_p9 = scmp.ge.s32.totalorder %s2530_s16, 6   ;;  %s3200_s12 = smov %s2486_s13 }
 0x1cb   : > { %s3201_s13 = smov %s2539_s19  ;;  %s3202_s14 = smov %s2530_s16 }
 0x1cc   :  { %12 = sbr.rel (!%p10_p9) target bundleno = 2 (0x2), region = 91 }

</bundles_post_ra>
